<compile_context>
chip_gen: v7x
topology: tpu7x:2x2x1
jax: 0.10.0
libtpu: 0.0.40
codegen_flags: <defaults>
</compile_context>

<pallas_src>
import functools

import jax
import jax.numpy as jnp
from jax.experimental import pallas as pl
from jax.experimental.pallas import tpu as pltpu


def _round_up(v, m):
    return ((v + m - 1) // m) * m


def _dn_kernel(x_ref, w_ref, m_ref, o_ref, pfb_ref, col_ref, *,
               K, P, W, C, Cp, HW, OFF, LPAD, Bt):
    """Divisive normalization for Bt folded batch elements.

    x_ref  : (Bt*C, H*W)       input slab, spatial flattened onto lanes
    w_ref  : (C, K*K*Cp)       gaussian bank, tap-major (dy, dx, c_in), c_in 0-padded to Cp
    m_ref  : (K, H*W)          per-dx validity masks (1.0 where x+dx-P stays in the row)
    o_ref  : (Bt*C, H*W)       output slab
    pfb_ref: (Cp, LPAD)        flat zero-guarded padded copy of one element (VMEM scratch)
    col_ref: (K*K*Cp, Bt*H*W)  im2col buffer (VMEM scratch)
    """
    # ---- zero ONLY the regions the data write never touches (guard bands +
    #      channel-pad rows of the interior); no full-buffer zero per step and
    #      no first-step gating (megacore-safe). --------------------------------
    pfb_ref[:, 0:OFF] = jnp.zeros((Cp, OFF), jnp.float32)
    pfb_ref[:, OFF + HW:LPAD] = jnp.zeros((Cp, LPAD - OFF - HW), jnp.float32)
    if Cp > C:
        pfb_ref[C:Cp, OFF:OFF + HW] = jnp.zeros((Cp - C, HW), jnp.float32)

    # ---- per-dx masks, broadcast to full sublane height ONCE per dx ----------
    prebroadcast = (K * Cp * HW * 4) <= (1 << 20)   # keep in vregs only when small
    if prebroadcast:
        mrows = [jnp.broadcast_to(m_ref[dx:dx + 1, :], (Cp, HW)) for dx in range(K)]
    else:
        mrows = [m_ref[dx:dx + 1, :] for dx in range(K)]

    # ---- im2col: col[(dy*K+dx)*Cp + c, b*HW + y*W + x] =
    #              xpad_b[c, y+dy-P, x+dx-P]  (horizontal wraps zeroed by mask,
    #              vertical out-of-range lands in the zero guard bands). --------
    base = OFF - P * (W + 1)
    xbs = []
    for b in range(Bt):                               # fully unrolled (static)
        xb = x_ref[b * C:(b + 1) * C, :]              # (C, HW)
        xbs.append(xb)
        # place this element into the zero-guarded interior (rows C..Cp stay 0)
        pfb_ref[0:C, OFF:OFF + HW] = xb

        for dx in range(K):
            mb = mrows[dx]
            for dy in range(K):
                t = dy * K + dx
                s = base + dy * W + dx                # static lane offset
                patch = pfb_ref[:, s:s + HW]          # (Cp, HW) ref-slice load
                val = patch if dx == P else patch * mb
                # 8-sublane-aligned, lane-aligned, unmasked (Cp, HW) store
                col_ref[t * Cp:(t + 1) * Cp, b * HW:(b + 1) * HW] = val

    # ---- the whole conv (all Bt elements) as ONE MXU matmul, f32 accumulation -
    under = jnp.dot(w_ref[...], col_ref[...],
                    preferred_element_type=jnp.float32)        # (C, Bt*HW)

    # bias in the PyTorch module is the constant ones(1, C, 1, 1) -> scalar 1.0
    outs = [xbs[b] / (1.0 + under[:, b * HW:(b + 1) * HW]) for b in range(Bt)]
    res = outs[0] if Bt == 1 else jnp.concatenate(outs, axis=0)
    o_ref[...] = res.astype(o_ref.dtype)              # single (Bt*C, HW) store


def _pick_bt(B, C, HW, KKCp, budget_bytes=8 << 20):
    """Largest Bt dividing B whose col scratch fits the budget and whose sublane
    block (Bt*C) is 8-divisible (or the full array) -- i.e. a legal BlockSpec."""
    valid = [bt for bt in range(1, B + 1)
             if B % bt == 0 and (bt == B or (bt * C) % 8 == 0)]
    in_budget = [bt for bt in valid if KKCp * bt * HW * 4 <= budget_bytes]
    return max(in_budget) if in_budget else min(valid)


def divisive_norm_block(x_nchw, gaussian_bank, ksizeDN):
    """x_nchw: (B, C, H, W) float32; gaussian_bank: (C_out, C_in, K, K) (torch OIHW)."""
    B, C, H, W = x_nchw.shape
    K = 2 * ksizeDN + 1
    P = ksizeDN
    HW = H * W
    Cp = _round_up(C, 8)
    KKCp = K * K * Cp
    assert gaussian_bank.shape == (C, C, K, K)

    # (B, C, H, W) -> (B*C, H*W): contiguity-preserving reshape (no transpose).
    x_flat = x_nchw.reshape(B * C, HW).astype(jnp.float32)

    # OIHW -> (C_out, K*K*Cp), tap-major (dy, dx, c_in) with c_in zero-padded to Cp.
    w = jnp.transpose(gaussian_bank.astype(jnp.float32), (0, 2, 3, 1))  # (Co,K,K,Ci)
    if Cp > C:
        w = jnp.pad(w, ((0, 0), (0, 0), (0, 0), (0, Cp - C)))
    w_flat = w.reshape(C, KKCp)

    # Per-dx validity masks: output column x reads input column x + dx - P.
    xs = jnp.arange(HW, dtype=jnp.int32) % W
    dxs = jnp.arange(K, dtype=jnp.int32)[:, None]
    shifted = xs[None, :] + dxs - P
    masks = ((shifted >= 0) & (shifted < W)).astype(jnp.float32)        # (K, HW)

    # Flat padded-buffer geometry (zero guard bands on both sides of the image).
    OFF = _round_up(P * (W + 1), 128)                 # 128-aligned interior offset
    LPAD = _round_up(OFF + HW + P * (W + 1), 128)     # covers the farthest tap read

    Bt = _pick_bt(B, C, HW, KKCp)                     # batch elements per grid step
    grid = (B // Bt,)

    kernel = functools.partial(_dn_kernel, K=K, P=P, W=W, C=C, Cp=Cp, HW=HW,
                               OFF=OFF, LPAD=LPAD, Bt=Bt)

    # VMEM budget derived from the actual buffers (double-buffered in/out blocks).
    io_bytes = 2 * (2 * Bt * C * HW * 4) + 2 * (C * KKCp * 4 + K * HW * 4)
    scratch_bytes = Cp * LPAD * 4 + KKCp * Bt * HW * 4
    vmem_limit = max(32 << 20,
                     min(2 * (io_bytes + scratch_bytes) + (8 << 20), 64 << 20))

    out_flat = pl.pallas_call(
        kernel,
        out_shape=jax.ShapeDtypeStruct((B * C, HW), jnp.float32),
        grid_spec=pltpu.PrefetchScalarGridSpec(
            num_scalar_prefetch=0,
            grid=grid,
            in_specs=[
                pl.BlockSpec((Bt * C, HW), lambda i: (i, 0)),   # x (single copy)
                pl.BlockSpec((C, KKCp), lambda i: (0, 0)),      # padded weights
                pl.BlockSpec((K, HW), lambda i: (0, 0)),        # per-dx masks
            ],
            out_specs=pl.BlockSpec((Bt * C, HW), lambda i: (i, 0)),
            scratch_shapes=[
                pltpu.VMEM((Cp, LPAD), jnp.float32),            # flat padded input
                pltpu.VMEM((KKCp, Bt * HW), jnp.float32),       # im2col buffer
            ],
        ),
        compiler_params=pltpu.CompilerParams(
            dimension_semantics=("parallel",),
            vmem_limit_bytes=vmem_limit),
    )(x_flat, w_flat, masks)

    return out_flat.reshape(B, C, H, W)


def make_gaussian_bank(key, channel_num, ksizeDN):
    """Deterministic re-implementation of DivisiveNormBlock.__init__ parameters and
    the gaussian bank computed inside dn_f (parameter setup = plain JAX glue)."""
    C = channel_num
    K = 2 * ksizeDN + 1
    k1, k2, k3, k4 = jax.random.split(key, 4)
    thetaD = jax.random.uniform(k1, (C, C, 1, 1), jnp.float32, 0.0, 3.1415926535)
    p = jax.random.uniform(k2, (C, C, 1, 1), jnp.float32, 2.0, 6.0)
    sig = jax.random.uniform(k3, (C, C, 1, 1), jnp.float32, 2.0, 6.0)
    a = jnp.abs(jax.random.normal(k4, (C, C, 1, 1), jnp.float32))

    coords = jnp.linspace(-ksizeDN, ksizeDN, K)
    xv, yv = jnp.meshgrid(coords, coords, indexing="ij")  # torch.meshgrid default 'ij'
    xv = jnp.broadcast_to(xv, (C, C, K, K))
    yv = jnp.broadcast_to(yv, (C, C, K, K))

    xrot = xv * jnp.cos(thetaD) + yv * jnp.sin(thetaD)
    yrot = -xv * jnp.sin(thetaD) + yv * jnp.cos(thetaD)
    gb = jnp.abs(a) / (2.0 * jnp.pi * p * sig) * jnp.exp(
        -0.5 * (xrot ** 2 / p ** 2 + yrot ** 2 / sig ** 2))
    gb = jnp.maximum(gb, 0.0)  # relu (no-op mathematically, kept for parity)
    return gb


def reference(x_nchw, gaussian_bank, ksizeDN):
    """Pure-JAX reference mirroring the PyTorch forward (for validation)."""
    under = jax.lax.conv_general_dilated(
        x_nchw, gaussian_bank, window_strides=(1, 1),
        padding=[(ksizeDN, ksizeDN), (ksizeDN, ksizeDN)],
        dimension_numbers=("NCHW", "OIHW", "NCHW"),
        precision=jax.lax.Precision.HIGHEST)
    return x_nchw / (1.0 + under)


if __name__ == "__main__":
    # Small shapes consistent with the module: channel_num=C, size=spatial,
    # ksizeDN=3 -> 7x7 divisive-normalization kernel.
    B, C, SPATIAL, ksizeDN = 2, 4, 16, 3

    key = jax.random.PRNGKey(0)
    kx, kp = jax.random.split(key)
    x = jax.random.normal(kx, (B, C, SPATIAL, SPATIAL), jnp.float32)
    gb = make_gaussian_bank(kp, C, ksizeDN)

    out = divisive_norm_block(x, gb, ksizeDN)
    out = jax.block_until_ready(out)

    ref = jax.block_until_ready(reference(x, gb, ksizeDN))
    if not jnp.allclose(out, ref, atol=1e-4, rtol=1e-4):
        raise AssertionError("Pallas kernel output mismatch vs reference")

    print("KERNEL_OK")
</pallas_src>

<mosaic_0001>
module attributes {stable_mosaic.version = 11 : i64} {
  func.func @_dn_kernel(%arg0: i32, %arg1: memref<8x256xf32, #tpu.memory_space<vmem>>, %arg2: memref<4x392xf32, #tpu.memory_space<vmem>>, %arg3: memref<7x256xf32, #tpu.memory_space<vmem>>, %arg4: memref<8x256xf32, #tpu.memory_space<vmem>>, %arg5: memref<8x512xf32, #tpu.memory_space<vmem>>, %arg6: memref<392x512xf32, #tpu.memory_space<vmem>>) attributes {dimension_semantics = [#tpu.dimension_semantics<parallel>], iteration_bounds = array<i64: 1>, scalar_prefetch = 0 : i64, scratch_operands = 2 : i64, tpu.core_type = #tpu.core_type<tc>, window_params = [{transform_indices = @transform_0, window_bounds = array<i64: 8, 256>}, {pipeline_mode = #tpu.pipeline_mode<synchronous>, transform_indices = @transform_1, window_bounds = array<i64: 4, 392>}, {pipeline_mode = #tpu.pipeline_mode<synchronous>, transform_indices = @transform_2, window_bounds = array<i64: 7, 256>}, {transform_indices = @transform_3, window_bounds = array<i64: 8, 256>}]} {
    %cst = arith.constant 0.000000e+00 : f32
    %0 = vector.broadcast %cst : f32 to vector<8x128xf32>
    %c0 = arith.constant 0 : index
    %c0_0 = arith.constant 0 : index
    %1 = vector.load %arg5[%c0, %c0_0] : memref<8x512xf32, #tpu.memory_space<vmem>>, vector<8x128xf32>
    tpu.vector_store %arg5[%c0, %c0_0], %0 {strides = array<i32>} : memref<8x512xf32, #tpu.memory_space<vmem>>, vector<8x128xf32>,
    %cst_1 = arith.constant 0.000000e+00 : f32
    %2 = vector.broadcast %cst_1 : f32 to vector<8x128xf32>
    %c0_2 = arith.constant 0 : index
    %c384 = arith.constant 384 : index
    %3 = vector.load %arg5[%c0_2, %c384] : memref<8x512xf32, #tpu.memory_space<vmem>>, vector<8x128xf32>
    tpu.vector_store %arg5[%c0_2, %c384], %2 {strides = array<i32>} : memref<8x512xf32, #tpu.memory_space<vmem>>, vector<8x128xf32>,
    %cst_3 = arith.constant 0.000000e+00 : f32
    %4 = vector.broadcast %cst_3 : f32 to vector<4x256xf32>
    %c4 = arith.constant 4 : index
    %c128 = arith.constant 128 : index
    %5 = vector.load %arg5[%c4, %c128] : memref<8x512xf32, #tpu.memory_space<vmem>>, vector<4x256xf32>
    tpu.vector_store %arg5[%c4, %c128], %4 {strides = array<i32>} : memref<8x512xf32, #tpu.memory_space<vmem>>, vector<4x256xf32>,
    %c0_4 = arith.constant 0 : index
    %c0_5 = arith.constant 0 : index
    %6 = vector.load %arg3[%c0_4, %c0_5] : memref<7x256xf32, #tpu.memory_space<vmem>>, vector<1x256xf32>
    %7 = vector.shape_cast %6 : vector<1x256xf32> to vector<1x256xf32>
    %8 = vector.broadcast %7 : vector<1x256xf32> to vector<8x256xf32>
    %c1 = arith.constant 1 : index
    %c0_6 = arith.constant 0 : index
    %9 = vector.load %arg3[%c1, %c0_6] : memref<7x256xf32, #tpu.memory_space<vmem>>, vector<1x256xf32>
    %10 = vector.shape_cast %9 : vector<1x256xf32> to vector<1x256xf32>
    %11 = vector.broadcast %10 : vector<1x256xf32> to vector<8x256xf32>
    %c2 = arith.constant 2 : index
    %c0_7 = arith.constant 0 : index
    %12 = vector.load %arg3[%c2, %c0_7] : memref<7x256xf32, #tpu.memory_space<vmem>>, vector<1x256xf32>
    %13 = vector.shape_cast %12 : vector<1x256xf32> to vector<1x256xf32>
    %14 = vector.broadcast %13 : vector<1x256xf32> to vector<8x256xf32>
    %c4_8 = arith.constant 4 : index
    %c0_9 = arith.constant 0 : index
    %15 = vector.load %arg3[%c4_8, %c0_9] : memref<7x256xf32, #tpu.memory_space<vmem>>, vector<1x256xf32>
    %16 = vector.shape_cast %15 : vector<1x256xf32> to vector<1x256xf32>
    %17 = vector.broadcast %16 : vector<1x256xf32> to vector<8x256xf32>
    %c5 = arith.constant 5 : index
    %c0_10 = arith.constant 0 : index
    %18 = vector.load %arg3[%c5, %c0_10] : memref<7x256xf32, #tpu.memory_space<vmem>>, vector<1x256xf32>
    %19 = vector.shape_cast %18 : vector<1x256xf32> to vector<1x256xf32>
    %20 = vector.broadcast %19 : vector<1x256xf32> to vector<8x256xf32>
    %c6 = arith.constant 6 : index
    %c0_11 = arith.constant 0 : index
    %21 = vector.load %arg3[%c6, %c0_11] : memref<7x256xf32, #tpu.memory_space<vmem>>, vector<1x256xf32>
    %22 = vector.shape_cast %21 : vector<1x256xf32> to vector<1x256xf32>
    %23 = vector.broadcast %22 : vector<1x256xf32> to vector<8x256xf32>
    %c0_12 = arith.constant 0 : index
    %c0_13 = arith.constant 0 : index
    %24 = vector.load %arg1[%c0_12, %c0_13] : memref<8x256xf32, #tpu.memory_space<vmem>>, vector<4x256xf32>
    %c0_14 = arith.constant 0 : index
    %c128_15 = arith.constant 128 : index
    %25 = vector.load %arg5[%c0_14, %c128_15] : memref<8x512xf32, #tpu.memory_space<vmem>>, vector<4x256xf32>
    tpu.vector_store %arg5[%c0_14, %c128_15], %24 {strides = array<i32>} : memref<8x512xf32, #tpu.memory_space<vmem>>, vector<4x256xf32>,
    %c0_16 = arith.constant 0 : index
    %c77 = arith.constant 77 : index
    %26 = vector.load %arg5[%c0_16, %c77] : memref<8x512xf32, #tpu.memory_space<vmem>>, vector<8x256xf32>
    %27 = arith.mulf %26, %8 : vector<8x256xf32>
    %c0_17 = arith.constant 0 : index
    %c0_18 = arith.constant 0 : index
    %28 = vector.load %arg6[%c0_17, %c0_18] : memref<392x512xf32, #tpu.memory_space<vmem>>, vector<8x256xf32>
    tpu.vector_store %arg6[%c0_17, %c0_18], %27 {strides = array<i32>} : memref<392x512xf32, #tpu.memory_space<vmem>>, vector<8x256xf32>,
    %c0_19 = arith.constant 0 : index
    %c93 = arith.constant 93 : index
    %29 = vector.load %arg5[%c0_19, %c93] : memref<8x512xf32, #tpu.memory_space<vmem>>, vector<8x256xf32>
    %30 = arith.mulf %29, %8 : vector<8x256xf32>
    %c56 = arith.constant 56 : index
    %c0_20 = arith.constant 0 : index
    %31 = vector.load %arg6[%c56, %c0_20] : memref<392x512xf32, #tpu.memory_space<vmem>>, vector<8x256xf32>
    tpu.vector_store %arg6[%c56, %c0_20], %30 {strides = array<i32>} : memref<392x512xf32, #tpu.memory_space<vmem>>, vector<8x256xf32>,
    %c0_21 = arith.constant 0 : index
    %c109 = arith.constant 109 : index
    %32 = vector.load %arg5[%c0_21, %c109] : memref<8x512xf32, #tpu.memory_space<vmem>>, vector<8x256xf32>
    %33 = arith.mulf %32, %8 : vector<8x256xf32>
    %c112 = arith.constant 112 : index
    %c0_22 = arith.constant 0 : index
    %34 = vector.load %arg6[%c112, %c0_22] : memref<392x512xf32, #tpu.memory_space<vmem>>, vector<8x256xf32>
    tpu.vector_store %arg6[%c112, %c0_22], %33 {strides = array<i32>} : memref<392x512xf32, #tpu.memory_space<vmem>>, vector<8x256xf32>,
    %c0_23 = arith.constant 0 : index
    %c125 = arith.constant 125 : index
    %35 = vector.load %arg5[%c0_23, %c125] : memref<8x512xf32, #tpu.memory_space<vmem>>, vector<8x256xf32>
    %36 = arith.mulf %35, %8 : vector<8x256xf32>
    %c168 = arith.constant 168 : index
    %c0_24 = arith.constant 0 : index
    %37 = vector.load %arg6[%c168, %c0_24] : memref<392x512xf32, #tpu.memory_space<vmem>>, vector<8x256xf32>
    tpu.vector_store %arg6[%c168, %c0_24], %36 {strides = array<i32>} : memref<392x512xf32, #tpu.memory_space<vmem>>, vector<8x256xf32>,
    %c0_25 = arith.constant 0 : index
    %c141 = arith.constant 141 : index
    %38 = vector.load %arg5[%c0_25, %c141] : memref<8x512xf32, #tpu.memory_space<vmem>>, vector<8x256xf32>
    %39 = arith.mulf %38, %8 : vector<8x256xf32>
    %c224 = arith.constant 224 : index
    %c0_26 = arith.constant 0 : index
    %40 = vector.load %arg6[%c224, %c0_26] : memref<392x512xf32, #tpu.memory_space<vmem>>, vector<8x256xf32>
    tpu.vector_store %arg6[%c224, %c0_26], %39 {strides = array<i32>} : memref<392x512xf32, #tpu.memory_space<vmem>>, vector<8x256xf32>,
    %c0_27 = arith.constant 0 : index
    %c157 = arith.constant 157 : index
    %41 = vector.load %arg5[%c0_27, %c157] : memref<8x512xf32, #tpu.memory_space<vmem>>, vector<8x256xf32>
    %42 = arith.mulf %41, %8 : vector<8x256xf32>
    %c280 = arith.constant 280 : index
    %c0_28 = arith.constant 0 : index
    %43 = vector.load %arg6[%c280, %c0_28] : memref<392x512xf32, #tpu.memory_space<vmem>>, vector<8x256xf32>
    tpu.vector_store %arg6[%c280, %c0_28], %42 {strides = array<i32>} : memref<392x512xf32, #tpu.memory_space<vmem>>, vector<8x256xf32>,
    %c0_29 = arith.constant 0 : index
    %c173 = arith.constant 173 : index
    %44 = vector.load %arg5[%c0_29, %c173] : memref<8x512xf32, #tpu.memory_space<vmem>>, vector<8x256xf32>
    %45 = arith.mulf %44, %8 : vector<8x256xf32>
    %c336 = arith.constant 336 : index
    %c0_30 = arith.constant 0 : index
    %46 = vector.load %arg6[%c336, %c0_30] : memref<392x512xf32, #tpu.memory_space<vmem>>, vector<8x256xf32>
    tpu.vector_store %arg6[%c336, %c0_30], %45 {strides = array<i32>} : memref<392x512xf32, #tpu.memory_space<vmem>>, vector<8x256xf32>,
    %c0_31 = arith.constant 0 : index
    %c78 = arith.constant 78 : index
    %47 = vector.load %arg5[%c0_31, %c78] : memref<8x512xf32, #tpu.memory_space<vmem>>, vector<8x256xf32>
    %48 = arith.mulf %47, %11 : vector<8x256xf32>
    %c8 = arith.constant 8 : index
    %c0_32 = arith.constant 0 : index
    %49 = vector.load %arg6[%c8, %c0_32] : memref<392x512xf32, #tpu.memory_space<vmem>>, vector<8x256xf32>
    tpu.vector_store %arg6[%c8, %c0_32], %48 {strides = array<i32>} : memref<392x512xf32, #tpu.memory_space<vmem>>, vector<8x256xf32>,
    %c0_33 = arith.constant 0 : index
    %c94 = arith.constant 94 : index
    %50 = vector.load %arg5[%c0_33, %c94] : memref<8x512xf32, #tpu.memory_space<vmem>>, vector<8x256xf32>
    %51 = arith.mulf %50, %11 : vector<8x256xf32>
    %c64 = arith.constant 64 : index
    %c0_34 = arith.constant 0 : index
    %52 = vector.load %arg6[%c64, %c0_34] : memref<392x512xf32, #tpu.memory_space<vmem>>, vector<8x256xf32>
    tpu.vector_store %arg6[%c64, %c0_34], %51 {strides = array<i32>} : memref<392x512xf32, #tpu.memory_space<vmem>>, vector<8x256xf32>,
    %c0_35 = arith.constant 0 : index
    %c110 = arith.constant 110 : index
    %53 = vector.load %arg5[%c0_35, %c110] : memref<8x512xf32, #tpu.memory_space<vmem>>, vector<8x256xf32>
    %54 = arith.mulf %53, %11 : vector<8x256xf32>
    %c120 = arith.constant 120 : index
    %c0_36 = arith.constant 0 : index
    %55 = vector.load %arg6[%c120, %c0_36] : memref<392x512xf32, #tpu.memory_space<vmem>>, vector<8x256xf32>
    tpu.vector_store %arg6[%c120, %c0_36], %54 {strides = array<i32>} : memref<392x512xf32, #tpu.memory_space<vmem>>, vector<8x256xf32>,
    %c0_37 = arith.constant 0 : index
    %c126 = arith.constant 126 : index
    %56 = vector.load %arg5[%c0_37, %c126] : memref<8x512xf32, #tpu.memory_space<vmem>>, vector<8x256xf32>
    %57 = arith.mulf %56, %11 : vector<8x256xf32>
    %c176 = arith.constant 176 : index
    %c0_38 = arith.constant 0 : index
    %58 = vector.load %arg6[%c176, %c0_38] : memref<392x512xf32, #tpu.memory_space<vmem>>, vector<8x256xf32>
    tpu.vector_store %arg6[%c176, %c0_38], %57 {strides = array<i32>} : memref<392x512xf32, #tpu.memory_space<vmem>>, vector<8x256xf32>,
    %c0_39 = arith.constant 0 : index
    %c142 = arith.constant 142 : index
    %59 = vector.load %arg5[%c0_39, %c142] : memref<8x512xf32, #tpu.memory_space<vmem>>, vector<8x256xf32>
    %60 = arith.mulf %59, %11 : vector<8x256xf32>
    %c232 = arith.constant 232 : index
    %c0_40 = arith.constant 0 : index
    %61 = vector.load %arg6[%c232, %c0_40] : memref<392x512xf32, #tpu.memory_space<vmem>>, vector<8x256xf32>
    tpu.vector_store %arg6[%c232, %c0_40], %60 {strides = array<i32>} : memref<392x512xf32, #tpu.memory_space<vmem>>, vector<8x256xf32>,
    %c0_41 = arith.constant 0 : index
    %c158 = arith.constant 158 : index
    %62 = vector.load %arg5[%c0_41, %c158] : memref<8x512xf32, #tpu.memory_space<vmem>>, vector<8x256xf32>
    %63 = arith.mulf %62, %11 : vector<8x256xf32>
    %c288 = arith.constant 288 : index
    %c0_42 = arith.constant 0 : index
    %64 = vector.load %arg6[%c288, %c0_42] : memref<392x512xf32, #tpu.memory_space<vmem>>, vector<8x256xf32>
    tpu.vector_store %arg6[%c288, %c0_42], %63 {strides = array<i32>} : memref<392x512xf32, #tpu.memory_space<vmem>>, vector<8x256xf32>,
    %c0_43 = arith.constant 0 : index
    %c174 = arith.constant 174 : index
    %65 = vector.load %arg5[%c0_43, %c174] : memref<8x512xf32, #tpu.memory_space<vmem>>, vector<8x256xf32>
    %66 = arith.mulf %65, %11 : vector<8x256xf32>
    %c344 = arith.constant 344 : index
    %c0_44 = arith.constant 0 : index
    %67 = vector.load %arg6[%c344, %c0_44] : memref<392x512xf32, #tpu.memory_space<vmem>>, vector<8x256xf32>
    tpu.vector_store %arg6[%c344, %c0_44], %66 {strides = array<i32>} : memref<392x512xf32, #tpu.memory_space<vmem>>, vector<8x256xf32>,
    %c0_45 = arith.constant 0 : index
    %c79 = arith.constant 79 : index
    %68 = vector.load %arg5[%c0_45, %c79] : memref<8x512xf32, #tpu.memory_space<vmem>>, vector<8x256xf32>
    %69 = arith.mulf %68, %14 : vector<8x256xf32>
    %c16 = arith.constant 16 : index
    %c0_46 = arith.constant 0 : index
    %70 = vector.load %arg6[%c16, %c0_46] : memref<392x512xf32, #tpu.memory_space<vmem>>, vector<8x256xf32>
    tpu.vector_store %arg6[%c16, %c0_46], %69 {strides = array<i32>} : memref<392x512xf32, #tpu.memory_space<vmem>>, vector<8x256xf32>,
    %c0_47 = arith.constant 0 : index
    %c95 = arith.constant 95 : index
    %71 = vector.load %arg5[%c0_47, %c95] : memref<8x512xf32, #tpu.memory_space<vmem>>, vector<8x256xf32>
    %72 = arith.mulf %71, %14 : vector<8x256xf32>
    %c72 = arith.constant 72 : index
    %c0_48 = arith.constant 0 : index
    %73 = vector.load %arg6[%c72, %c0_48] : memref<392x512xf32, #tpu.memory_space<vmem>>, vector<8x256xf32>
    tpu.vector_store %arg6[%c72, %c0_48], %72 {strides = array<i32>} : memref<392x512xf32, #tpu.memory_space<vmem>>, vector<8x256xf32>,
    %c0_49 = arith.constant 0 : index
    %c111 = arith.constant 111 : index
    %74 = vector.load %arg5[%c0_49, %c111] : memref<8x512xf32, #tpu.memory_space<vmem>>, vector<8x256xf32>
    %75 = arith.mulf %74, %14 : vector<8x256xf32>
    %c128_50 = arith.constant 128 : index
    %c0_51 = arith.constant 0 : index
    %76 = vector.load %arg6[%c128_50, %c0_51] : memref<392x512xf32, #tpu.memory_space<vmem>>, vector<8x256xf32>
    tpu.vector_store %arg6[%c128_50, %c0_51], %75 {strides = array<i32>} : memref<392x512xf32, #tpu.memory_space<vmem>>, vector<8x256xf32>,
    %c0_52 = arith.constant 0 : index
    %c127 = arith.constant 127 : index
    %77 = vector.load %arg5[%c0_52, %c127] : memref<8x512xf32, #tpu.memory_space<vmem>>, vector<8x256xf32>
    %78 = arith.mulf %77, %14 : vector<8x256xf32>
    %c184 = arith.constant 184 : index
    %c0_53 = arith.constant 0 : index
    %79 = vector.load %arg6[%c184, %c0_53] : memref<392x512xf32, #tpu.memory_space<vmem>>, vector<8x256xf32>
    tpu.vector_store %arg6[%c184, %c0_53], %78 {strides = array<i32>} : memref<392x512xf32, #tpu.memory_space<vmem>>, vector<8x256xf32>,
    %c0_54 = arith.constant 0 : index
    %c143 = arith.constant 143 : index
    %80 = vector.load %arg5[%c0_54, %c143] : memref<8x512xf32, #tpu.memory_space<vmem>>, vector<8x256xf32>
    %81 = arith.mulf %80, %14 : vector<8x256xf32>
    %c240 = arith.constant 240 : index
    %c0_55 = arith.constant 0 : index
    %82 = vector.load %arg6[%c240, %c0_55] : memref<392x512xf32, #tpu.memory_space<vmem>>, vector<8x256xf32>
    tpu.vector_store %arg6[%c240, %c0_55], %81 {strides = array<i32>} : memref<392x512xf32, #tpu.memory_space<vmem>>, vector<8x256xf32>,
    %c0_56 = arith.constant 0 : index
    %c159 = arith.constant 159 : index
    %83 = vector.load %arg5[%c0_56, %c159] : memref<8x512xf32, #tpu.memory_space<vmem>>, vector<8x256xf32>
    %84 = arith.mulf %83, %14 : vector<8x256xf32>
    %c296 = arith.constant 296 : index
    %c0_57 = arith.constant 0 : index
    %85 = vector.load %arg6[%c296, %c0_57] : memref<392x512xf32, #tpu.memory_space<vmem>>, vector<8x256xf32>
    tpu.vector_store %arg6[%c296, %c0_57], %84 {strides = array<i32>} : memref<392x512xf32, #tpu.memory_space<vmem>>, vector<8x256xf32>,
    %c0_58 = arith.constant 0 : index
    %c175 = arith.constant 175 : index
    %86 = vector.load %arg5[%c0_58, %c175] : memref<8x512xf32, #tpu.memory_space<vmem>>, vector<8x256xf32>
    %87 = arith.mulf %86, %14 : vector<8x256xf32>
    %c352 = arith.constant 352 : index
    %c0_59 = arith.constant 0 : index
    %88 = vector.load %arg6[%c352, %c0_59] : memref<392x512xf32, #tpu.memory_space<vmem>>, vector<8x256xf32>
    tpu.vector_store %arg6[%c352, %c0_59], %87 {strides = array<i32>} : memref<392x512xf32, #tpu.memory_space<vmem>>, vector<8x256xf32>,
    %c0_60 = arith.constant 0 : index
    %c80 = arith.constant 80 : index
    %89 = vector.load %arg5[%c0_60, %c80] : memref<8x512xf32, #tpu.memory_space<vmem>>, vector<8x256xf32>
    %c24 = arith.constant 24 : index
    %c0_61 = arith.constant 0 : index
    %90 = vector.load %arg6[%c24, %c0_61] : memref<392x512xf32, #tpu.memory_space<vmem>>, vector<8x256xf32>
    tpu.vector_store %arg6[%c24, %c0_61], %89 {strides = array<i32>} : memref<392x512xf32, #tpu.memory_space<vmem>>, vector<8x256xf32>,
    %c0_62 = arith.constant 0 : index
    %c96 = arith.constant 96 : index
    %91 = vector.load %arg5[%c0_62, %c96] : memref<8x512xf32, #tpu.memory_space<vmem>>, vector<8x256xf32>
    %c80_63 = arith.constant 80 : index
    %c0_64 = arith.constant 0 : index
    %92 = vector.load %arg6[%c80_63, %c0_64] : memref<392x512xf32, #tpu.memory_space<vmem>>, vector<8x256xf32>
    tpu.vector_store %arg6[%c80_63, %c0_64], %91 {strides = array<i32>} : memref<392x512xf32, #tpu.memory_space<vmem>>, vector<8x256xf32>,
    %c0_65 = arith.constant 0 : index
    %c112_66 = arith.constant 112 : index
    %93 = vector.load %arg5[%c0_65, %c112_66] : memref<8x512xf32, #tpu.memory_space<vmem>>, vector<8x256xf32>
    %c136 = arith.constant 136 : index
    %c0_67 = arith.constant 0 : index
    %94 = vector.load %arg6[%c136, %c0_67] : memref<392x512xf32, #tpu.memory_space<vmem>>, vector<8x256xf32>
    tpu.vector_store %arg6[%c136, %c0_67], %93 {strides = array<i32>} : memref<392x512xf32, #tpu.memory_space<vmem>>, vector<8x256xf32>,
    %c0_68 = arith.constant 0 : index
    %c128_69 = arith.constant 128 : index
    %95 = vector.load %arg5[%c0_68, %c128_69] : memref<8x512xf32, #tpu.memory_space<vmem>>, vector<8x256xf32>
    %c192 = arith.constant 192 : index
    %c0_70 = arith.constant 0 : index
    %96 = vector.load %arg6[%c192, %c0_70] : memref<392x512xf32, #tpu.memory_space<vmem>>, vector<8x256xf32>
    tpu.vector_store %arg6[%c192, %c0_70], %95 {strides = array<i32>} : memref<392x512xf32, #tpu.memory_space<vmem>>, vector<8x256xf32>,
    %c0_71 = arith.constant 0 : index
    %c144 = arith.constant 144 : index
    %97 = vector.load %arg5[%c0_71, %c144] : memref<8x512xf32, #tpu.memory_space<vmem>>, vector<8x256xf32>
    %c248 = arith.constant 248 : index
    %c0_72 = arith.constant 0 : index
    %98 = vector.load %arg6[%c248, %c0_72] : memref<392x512xf32, #tpu.memory_space<vmem>>, vector<8x256xf32>
    tpu.vector_store %arg6[%c248, %c0_72], %97 {strides = array<i32>} : memref<392x512xf32, #tpu.memory_space<vmem>>, vector<8x256xf32>,
    %c0_73 = arith.constant 0 : index
    %c160 = arith.constant 160 : index
    %99 = vector.load %arg5[%c0_73, %c160] : memref<8x512xf32, #tpu.memory_space<vmem>>, vector<8x256xf32>
    %c304 = arith.constant 304 : index
    %c0_74 = arith.constant 0 : index
    %100 = vector.load %arg6[%c304, %c0_74] : memref<392x512xf32, #tpu.memory_space<vmem>>, vector<8x256xf32>
    tpu.vector_store %arg6[%c304, %c0_74], %99 {strides = array<i32>} : memref<392x512xf32, #tpu.memory_space<vmem>>, vector<8x256xf32>,
    %c0_75 = arith.constant 0 : index
    %c176_76 = arith.constant 176 : index
    %101 = vector.load %arg5[%c0_75, %c176_76] : memref<8x512xf32, #tpu.memory_space<vmem>>, vector<8x256xf32>
    %c360 = arith.constant 360 : index
    %c0_77 = arith.constant 0 : index
    %102 = vector.load %arg6[%c360, %c0_77] : memref<392x512xf32, #tpu.memory_space<vmem>>, vector<8x256xf32>
    tpu.vector_store %arg6[%c360, %c0_77], %101 {strides = array<i32>} : memref<392x512xf32, #tpu.memory_space<vmem>>, vector<8x256xf32>,
    %c0_78 = arith.constant 0 : index
    %c81 = arith.constant 81 : index
    %103 = vector.load %arg5[%c0_78, %c81] : memref<8x512xf32, #tpu.memory_space<vmem>>, vector<8x256xf32>
    %104 = arith.mulf %103, %17 : vector<8x256xf32>
    %c32 = arith.constant 32 : index
    %c0_79 = arith.constant 0 : index
    %105 = vector.load %arg6[%c32, %c0_79] : memref<392x512xf32, #tpu.memory_space<vmem>>, vector<8x256xf32>
    tpu.vector_store %arg6[%c32, %c0_79], %104 {strides = array<i32>} : memref<392x512xf32, #tpu.memory_space<vmem>>, vector<8x256xf32>,
    %c0_80 = arith.constant 0 : index
    %c97 = arith.constant 97 : index
    %106 = vector.load %arg5[%c0_80, %c97] : memref<8x512xf32, #tpu.memory_space<vmem>>, vector<8x256xf32>
    %107 = arith.mulf %106, %17 : vector<8x256xf32>
    %c88 = arith.constant 88 : index
    %c0_81 = arith.constant 0 : index
    %108 = vector.load %arg6[%c88, %c0_81] : memref<392x512xf32, #tpu.memory_space<vmem>>, vector<8x256xf32>
    tpu.vector_store %arg6[%c88, %c0_81], %107 {strides = array<i32>} : memref<392x512xf32, #tpu.memory_space<vmem>>, vector<8x256xf32>,
    %c0_82 = arith.constant 0 : index
    %c113 = arith.constant 113 : index
    %109 = vector.load %arg5[%c0_82, %c113] : memref<8x512xf32, #tpu.memory_space<vmem>>, vector<8x256xf32>
    %110 = arith.mulf %109, %17 : vector<8x256xf32>
    %c144_83 = arith.constant 144 : index
    %c0_84 = arith.constant 0 : index
    %111 = vector.load %arg6[%c144_83, %c0_84] : memref<392x512xf32, #tpu.memory_space<vmem>>, vector<8x256xf32>
    tpu.vector_store %arg6[%c144_83, %c0_84], %110 {strides = array<i32>} : memref<392x512xf32, #tpu.memory_space<vmem>>, vector<8x256xf32>,
    %c0_85 = arith.constant 0 : index
    %c129 = arith.constant 129 : index
    %112 = vector.load %arg5[%c0_85, %c129] : memref<8x512xf32, #tpu.memory_space<vmem>>, vector<8x256xf32>
    %113 = arith.mulf %112, %17 : vector<8x256xf32>
    %c200 = arith.constant 200 : index
    %c0_86 = arith.constant 0 : index
    %114 = vector.load %arg6[%c200, %c0_86] : memref<392x512xf32, #tpu.memory_space<vmem>>, vector<8x256xf32>
    tpu.vector_store %arg6[%c200, %c0_86], %113 {strides = array<i32>} : memref<392x512xf32, #tpu.memory_space<vmem>>, vector<8x256xf32>,
    %c0_87 = arith.constant 0 : index
    %c145 = arith.constant 145 : index
    %115 = vector.load %arg5[%c0_87, %c145] : memref<8x512xf32, #tpu.memory_space<vmem>>, vector<8x256xf32>
    %116 = arith.mulf %115, %17 : vector<8x256xf32>
    %c256 = arith.constant 256 : index
    %c0_88 = arith.constant 0 : index
    %117 = vector.load %arg6[%c256, %c0_88] : memref<392x512xf32, #tpu.memory_space<vmem>>, vector<8x256xf32>
    tpu.vector_store %arg6[%c256, %c0_88], %116 {strides = array<i32>} : memref<392x512xf32, #tpu.memory_space<vmem>>, vector<8x256xf32>,
    %c0_89 = arith.constant 0 : index
    %c161 = arith.constant 161 : index
    %118 = vector.load %arg5[%c0_89, %c161] : memref<8x512xf32, #tpu.memory_space<vmem>>, vector<8x256xf32>
    %119 = arith.mulf %118, %17 : vector<8x256xf32>
    %c312 = arith.constant 312 : index
    %c0_90 = arith.constant 0 : index
    %120 = vector.load %arg6[%c312, %c0_90] : memref<392x512xf32, #tpu.memory_space<vmem>>, vector<8x256xf32>
    tpu.vector_store %arg6[%c312, %c0_90], %119 {strides = array<i32>} : memref<392x512xf32, #tpu.memory_space<vmem>>, vector<8x256xf32>,
    %c0_91 = arith.constant 0 : index
    %c177 = arith.constant 177 : index
    %121 = vector.load %arg5[%c0_91, %c177] : memref<8x512xf32, #tpu.memory_space<vmem>>, vector<8x256xf32>
    %122 = arith.mulf %121, %17 : vector<8x256xf32>
    %c368 = arith.constant 368 : index
    %c0_92 = arith.constant 0 : index
    %123 = vector.load %arg6[%c368, %c0_92] : memref<392x512xf32, #tpu.memory_space<vmem>>, vector<8x256xf32>
    tpu.vector_store %arg6[%c368, %c0_92], %122 {strides = array<i32>} : memref<392x512xf32, #tpu.memory_space<vmem>>, vector<8x256xf32>,
    %c0_93 = arith.constant 0 : index
    %c82 = arith.constant 82 : index
    %124 = vector.load %arg5[%c0_93, %c82] : memref<8x512xf32, #tpu.memory_space<vmem>>, vector<8x256xf32>
    %125 = arith.mulf %124, %20 : vector<8x256xf32>
    %c40 = arith.constant 40 : index
    %c0_94 = arith.constant 0 : index
    %126 = vector.load %arg6[%c40, %c0_94] : memref<392x512xf32, #tpu.memory_space<vmem>>, vector<8x256xf32>
    tpu.vector_store %arg6[%c40, %c0_94], %125 {strides = array<i32>} : memref<392x512xf32, #tpu.memory_space<vmem>>, vector<8x256xf32>,
    %c0_95 = arith.constant 0 : index
    %c98 = arith.constant 98 : index
    %127 = vector.load %arg5[%c0_95, %c98] : memref<8x512xf32, #tpu.memory_space<vmem>>, vector<8x256xf32>
    %128 = arith.mulf %127, %20 : vector<8x256xf32>
    %c96_96 = arith.constant 96 : index
    %c0_97 = arith.constant 0 : index
    %129 = vector.load %arg6[%c96_96, %c0_97] : memref<392x512xf32, #tpu.memory_space<vmem>>, vector<8x256xf32>
    tpu.vector_store %arg6[%c96_96, %c0_97], %128 {strides = array<i32>} : memref<392x512xf32, #tpu.memory_space<vmem>>, vector<8x256xf32>,
    %c0_98 = arith.constant 0 : index
    %c114 = arith.constant 114 : index
    %130 = vector.load %arg5[%c0_98, %c114] : memref<8x512xf32, #tpu.memory_space<vmem>>, vector<8x256xf32>
    %131 = arith.mulf %130, %20 : vector<8x256xf32>
    %c152 = arith.constant 152 : index
    %c0_99 = arith.constant 0 : index
    %132 = vector.load %arg6[%c152, %c0_99] : memref<392x512xf32, #tpu.memory_space<vmem>>, vector<8x256xf32>
    tpu.vector_store %arg6[%c152, %c0_99], %131 {strides = array<i32>} : memref<392x512xf32, #tpu.memory_space<vmem>>, vector<8x256xf32>,
    %c0_100 = arith.constant 0 : index
    %c130 = arith.constant 130 : index
    %133 = vector.load %arg5[%c0_100, %c130] : memref<8x512xf32, #tpu.memory_space<vmem>>, vector<8x256xf32>
    %134 = arith.mulf %133, %20 : vector<8x256xf32>
    %c208 = arith.constant 208 : index
    %c0_101 = arith.constant 0 : index
    %135 = vector.load %arg6[%c208, %c0_101] : memref<392x512xf32, #tpu.memory_space<vmem>>, vector<8x256xf32>
    tpu.vector_store %arg6[%c208, %c0_101], %134 {strides = array<i32>} : memref<392x512xf32, #tpu.memory_space<vmem>>, vector<8x256xf32>,
    %c0_102 = arith.constant 0 : index
    %c146 = arith.constant 146 : index
    %136 = vector.load %arg5[%c0_102, %c146] : memref<8x512xf32, #tpu.memory_space<vmem>>, vector<8x256xf32>
    %137 = arith.mulf %136, %20 : vector<8x256xf32>
    %c264 = arith.constant 264 : index
    %c0_103 = arith.constant 0 : index
    %138 = vector.load %arg6[%c264, %c0_103] : memref<392x512xf32, #tpu.memory_space<vmem>>, vector<8x256xf32>
    tpu.vector_store %arg6[%c264, %c0_103], %137 {strides = array<i32>} : memref<392x512xf32, #tpu.memory_space<vmem>>, vector<8x256xf32>,
    %c0_104 = arith.constant 0 : index
    %c162 = arith.constant 162 : index
    %139 = vector.load %arg5[%c0_104, %c162] : memref<8x512xf32, #tpu.memory_space<vmem>>, vector<8x256xf32>
    %140 = arith.mulf %139, %20 : vector<8x256xf32>
    %c320 = arith.constant 320 : index
    %c0_105 = arith.constant 0 : index
    %141 = vector.load %arg6[%c320, %c0_105] : memref<392x512xf32, #tpu.memory_space<vmem>>, vector<8x256xf32>
    tpu.vector_store %arg6[%c320, %c0_105], %140 {strides = array<i32>} : memref<392x512xf32, #tpu.memory_space<vmem>>, vector<8x256xf32>,
    %c0_106 = arith.constant 0 : index
    %c178 = arith.constant 178 : index
    %142 = vector.load %arg5[%c0_106, %c178] : memref<8x512xf32, #tpu.memory_space<vmem>>, vector<8x256xf32>
    %143 = arith.mulf %142, %20 : vector<8x256xf32>
    %c376 = arith.constant 376 : index
    %c0_107 = arith.constant 0 : index
    %144 = vector.load %arg6[%c376, %c0_107] : memref<392x512xf32, #tpu.memory_space<vmem>>, vector<8x256xf32>
    tpu.vector_store %arg6[%c376, %c0_107], %143 {strides = array<i32>} : memref<392x512xf32, #tpu.memory_space<vmem>>, vector<8x256xf32>,
    %c0_108 = arith.constant 0 : index
    %c83 = arith.constant 83 : index
    %145 = vector.load %arg5[%c0_108, %c83] : memref<8x512xf32, #tpu.memory_space<vmem>>, vector<8x256xf32>
    %146 = arith.mulf %145, %23 : vector<8x256xf32>
    %c48 = arith.constant 48 : index
    %c0_109 = arith.constant 0 : index
    %147 = vector.load %arg6[%c48, %c0_109] : memref<392x512xf32, #tpu.memory_space<vmem>>, vector<8x256xf32>
    tpu.vector_store %arg6[%c48, %c0_109], %146 {strides = array<i32>} : memref<392x512xf32, #tpu.memory_space<vmem>>, vector<8x256xf32>,
    %c0_110 = arith.constant 0 : index
    %c99 = arith.constant 99 : index
    %148 = vector.load %arg5[%c0_110, %c99] : memref<8x512xf32, #tpu.memory_space<vmem>>, vector<8x256xf32>
    %149 = arith.mulf %148, %23 : vector<8x256xf32>
    %c104 = arith.constant 104 : index
    %c0_111 = arith.constant 0 : index
    %150 = vector.load %arg6[%c104, %c0_111] : memref<392x512xf32, #tpu.memory_space<vmem>>, vector<8x256xf32>
    tpu.vector_store %arg6[%c104, %c0_111], %149 {strides = array<i32>} : memref<392x512xf32, #tpu.memory_space<vmem>>, vector<8x256xf32>,
    %c0_112 = arith.constant 0 : index
    %c115 = arith.constant 115 : index
    %151 = vector.load %arg5[%c0_112, %c115] : memref<8x512xf32, #tpu.memory_space<vmem>>, vector<8x256xf32>
    %152 = arith.mulf %151, %23 : vector<8x256xf32>
    %c160_113 = arith.constant 160 : index
    %c0_114 = arith.constant 0 : index
    %153 = vector.load %arg6[%c160_113, %c0_114] : memref<392x512xf32, #tpu.memory_space<vmem>>, vector<8x256xf32>
    tpu.vector_store %arg6[%c160_113, %c0_114], %152 {strides = array<i32>} : memref<392x512xf32, #tpu.memory_space<vmem>>, vector<8x256xf32>,
    %c0_115 = arith.constant 0 : index
    %c131 = arith.constant 131 : index
    %154 = vector.load %arg5[%c0_115, %c131] : memref<8x512xf32, #tpu.memory_space<vmem>>, vector<8x256xf32>
    %155 = arith.mulf %154, %23 : vector<8x256xf32>
    %c216 = arith.constant 216 : index
    %c0_116 = arith.constant 0 : index
    %156 = vector.load %arg6[%c216, %c0_116] : memref<392x512xf32, #tpu.memory_space<vmem>>, vector<8x256xf32>
    tpu.vector_store %arg6[%c216, %c0_116], %155 {strides = array<i32>} : memref<392x512xf32, #tpu.memory_space<vmem>>, vector<8x256xf32>,
    %c0_117 = arith.constant 0 : index
    %c147 = arith.constant 147 : index
    %157 = vector.load %arg5[%c0_117, %c147] : memref<8x512xf32, #tpu.memory_space<vmem>>, vector<8x256xf32>
    %158 = arith.mulf %157, %23 : vector<8x256xf32>
    %c272 = arith.constant 272 : index
    %c0_118 = arith.constant 0 : index
    %159 = vector.load %arg6[%c272, %c0_118] : memref<392x512xf32, #tpu.memory_space<vmem>>, vector<8x256xf32>
    tpu.vector_store %arg6[%c272, %c0_118], %158 {strides = array<i32>} : memref<392x512xf32, #tpu.memory_space<vmem>>, vector<8x256xf32>,
    %c0_119 = arith.constant 0 : index
    %c163 = arith.constant 163 : index
    %160 = vector.load %arg5[%c0_119, %c163] : memref<8x512xf32, #tpu.memory_space<vmem>>, vector<8x256xf32>
    %161 = arith.mulf %160, %23 : vector<8x256xf32>
    %c328 = arith.constant 328 : index
    %c0_120 = arith.constant 0 : index
    %162 = vector.load %arg6[%c328, %c0_120] : memref<392x512xf32, #tpu.memory_space<vmem>>, vector<8x256xf32>
    tpu.vector_store %arg6[%c328, %c0_120], %161 {strides = array<i32>} : memref<392x512xf32, #tpu.memory_space<vmem>>, vector<8x256xf32>,
    %c0_121 = arith.constant 0 : index
    %c179 = arith.constant 179 : index
    %163 = vector.load %arg5[%c0_121, %c179] : memref<8x512xf32, #tpu.memory_space<vmem>>, vector<8x256xf32>
    %164 = arith.mulf %163, %23 : vector<8x256xf32>
    %c384_122 = arith.constant 384 : index
    %c0_123 = arith.constant 0 : index
    %165 = vector.load %arg6[%c384_122, %c0_123] : memref<392x512xf32, #tpu.memory_space<vmem>>, vector<8x256xf32>
    tpu.vector_store %arg6[%c384_122, %c0_123], %164 {strides = array<i32>} : memref<392x512xf32, #tpu.memory_space<vmem>>, vector<8x256xf32>,
    %c4_124 = arith.constant 4 : index
    %c0_125 = arith.constant 0 : index
    %166 = vector.load %arg1[%c4_124, %c0_125] : memref<8x256xf32, #tpu.memory_space<vmem>>, vector<4x256xf32>
    %c0_126 = arith.constant 0 : index
    %c128_127 = arith.constant 128 : index
    %167 = vector.load %arg5[%c0_126, %c128_127] : memref<8x512xf32, #tpu.memory_space<vmem>>, vector<4x256xf32>
    tpu.vector_store %arg5[%c0_126, %c128_127], %166 {strides = array<i32>} : memref<8x512xf32, #tpu.memory_space<vmem>>, vector<4x256xf32>,
    %c0_128 = arith.constant 0 : index
    %c77_129 = arith.constant 77 : index
    %168 = vector.load %arg5[%c0_128, %c77_129] : memref<8x512xf32, #tpu.memory_space<vmem>>, vector<8x256xf32>
    %169 = arith.mulf %168, %8 : vector<8x256xf32>
    %c0_130 = arith.constant 0 : index
    %c256_131 = arith.constant 256 : index
    %170 = vector.load %arg6[%c0_130, %c256_131] : memref<392x512xf32, #tpu.memory_space<vmem>>, vector<8x256xf32>
    tpu.vector_store %arg6[%c0_130, %c256_131], %169 {strides = array<i32>} : memref<392x512xf32, #tpu.memory_space<vmem>>, vector<8x256xf32>,
    %c0_132 = arith.constant 0 : index
    %c93_133 = arith.constant 93 : index
    %171 = vector.load %arg5[%c0_132, %c93_133] : memref<8x512xf32, #tpu.memory_space<vmem>>, vector<8x256xf32>
    %172 = arith.mulf %171, %8 : vector<8x256xf32>
    %c56_134 = arith.constant 56 : index
    %c256_135 = arith.constant 256 : index
    %173 = vector.load %arg6[%c56_134, %c256_135] : memref<392x512xf32, #tpu.memory_space<vmem>>, vector<8x256xf32>
    tpu.vector_store %arg6[%c56_134, %c256_135], %172 {strides = array<i32>} : memref<392x512xf32, #tpu.memory_space<vmem>>, vector<8x256xf32>,
    %c0_136 = arith.constant 0 : index
    %c109_137 = arith.constant 109 : index
    %174 = vector.load %arg5[%c0_136, %c109_137] : memref<8x512xf32, #tpu.memory_space<vmem>>, vector<8x256xf32>
    %175 = arith.mulf %174, %8 : vector<8x256xf32>
    %c112_138 = arith.constant 112 : index
    %c256_139 = arith.constant 256 : index
    %176 = vector.load %arg6[%c112_138, %c256_139] : memref<392x512xf32, #tpu.memory_space<vmem>>, vector<8x256xf32>
    tpu.vector_store %arg6[%c112_138, %c256_139], %175 {strides = array<i32>} : memref<392x512xf32, #tpu.memory_space<vmem>>, vector<8x256xf32>,
    %c0_140 = arith.constant 0 : index
    %c125_141 = arith.constant 125 : index
    %177 = vector.load %arg5[%c0_140, %c125_141] : memref<8x512xf32, #tpu.memory_space<vmem>>, vector<8x256xf32>
    %178 = arith.mulf %177, %8 : vector<8x256xf32>
    %c168_142 = arith.constant 168 : index
    %c256_143 = arith.constant 256 : index
    %179 = vector.load %arg6[%c168_142, %c256_143] : memref<392x512xf32, #tpu.memory_space<vmem>>, vector<8x256xf32>
    tpu.vector_store %arg6[%c168_142, %c256_143], %178 {strides = array<i32>} : memref<392x512xf32, #tpu.memory_space<vmem>>, vector<8x256xf32>,
    %c0_144 = arith.constant 0 : index
    %c141_145 = arith.constant 141 : index
    %180 = vector.load %arg5[%c0_144, %c141_145] : memref<8x512xf32, #tpu.memory_space<vmem>>, vector<8x256xf32>
    %181 = arith.mulf %180, %8 : vector<8x256xf32>
    %c224_146 = arith.constant 224 : index
    %c256_147 = arith.constant 256 : index
    %182 = vector.load %arg6[%c224_146, %c256_147] : memref<392x512xf32, #tpu.memory_space<vmem>>, vector<8x256xf32>
    tpu.vector_store %arg6[%c224_146, %c256_147], %181 {strides = array<i32>} : memref<392x512xf32, #tpu.memory_space<vmem>>, vector<8x256xf32>,
    %c0_148 = arith.constant 0 : index
    %c157_149 = arith.constant 157 : index
    %183 = vector.load %arg5[%c0_148, %c157_149] : memref<8x512xf32, #tpu.memory_space<vmem>>, vector<8x256xf32>
    %184 = arith.mulf %183, %8 : vector<8x256xf32>
    %c280_150 = arith.constant 280 : index
    %c256_151 = arith.constant 256 : index
    %185 = vector.load %arg6[%c280_150, %c256_151] : memref<392x512xf32, #tpu.memory_space<vmem>>, vector<8x256xf32>
    tpu.vector_store %arg6[%c280_150, %c256_151], %184 {strides = array<i32>} : memref<392x512xf32, #tpu.memory_space<vmem>>, vector<8x256xf32>,
    %c0_152 = arith.constant 0 : index
    %c173_153 = arith.constant 173 : index
    %186 = vector.load %arg5[%c0_152, %c173_153] : memref<8x512xf32, #tpu.memory_space<vmem>>, vector<8x256xf32>
    %187 = arith.mulf %186, %8 : vector<8x256xf32>
    %c336_154 = arith.constant 336 : index
    %c256_155 = arith.constant 256 : index
    %188 = vector.load %arg6[%c336_154, %c256_155] : memref<392x512xf32, #tpu.memory_space<vmem>>, vector<8x256xf32>
    tpu.vector_store %arg6[%c336_154, %c256_155], %187 {strides = array<i32>} : memref<392x512xf32, #tpu.memory_space<vmem>>, vector<8x256xf32>,
    %c0_156 = arith.constant 0 : index
    %c78_157 = arith.constant 78 : index
    %189 = vector.load %arg5[%c0_156, %c78_157] : memref<8x512xf32, #tpu.memory_space<vmem>>, vector<8x256xf32>
    %190 = arith.mulf %189, %11 : vector<8x256xf32>
    %c8_158 = arith.constant 8 : index
    %c256_159 = arith.constant 256 : index
    %191 = vector.load %arg6[%c8_158, %c256_159] : memref<392x512xf32, #tpu.memory_space<vmem>>, vector<8x256xf32>
    tpu.vector_store %arg6[%c8_158, %c256_159], %190 {strides = array<i32>} : memref<392x512xf32, #tpu.memory_space<vmem>>, vector<8x256xf32>,
    %c0_160 = arith.constant 0 : index
    %c94_161 = arith.constant 94 : index
    %192 = vector.load %arg5[%c0_160, %c94_161] : memref<8x512xf32, #tpu.memory_space<vmem>>, vector<8x256xf32>
    %193 = arith.mulf %192, %11 : vector<8x256xf32>
    %c64_162 = arith.constant 64 : index
    %c256_163 = arith.constant 256 : index
    %194 = vector.load %arg6[%c64_162, %c256_163] : memref<392x512xf32, #tpu.memory_space<vmem>>, vector<8x256xf32>
    tpu.vector_store %arg6[%c64_162, %c256_163], %193 {strides = array<i32>} : memref<392x512xf32, #tpu.memory_space<vmem>>, vector<8x256xf32>,
    %c0_164 = arith.constant 0 : index
    %c110_165 = arith.constant 110 : index
    %195 = vector.load %arg5[%c0_164, %c110_165] : memref<8x512xf32, #tpu.memory_space<vmem>>, vector<8x256xf32>
    %196 = arith.mulf %195, %11 : vector<8x256xf32>
    %c120_166 = arith.constant 120 : index
    %c256_167 = arith.constant 256 : index
    %197 = vector.load %arg6[%c120_166, %c256_167] : memref<392x512xf32, #tpu.memory_space<vmem>>, vector<8x256xf32>
    tpu.vector_store %arg6[%c120_166, %c256_167], %196 {strides = array<i32>} : memref<392x512xf32, #tpu.memory_space<vmem>>, vector<8x256xf32>,
    %c0_168 = arith.constant 0 : index
    %c126_169 = arith.constant 126 : index
    %198 = vector.load %arg5[%c0_168, %c126_169] : memref<8x512xf32, #tpu.memory_space<vmem>>, vector<8x256xf32>
    %199 = arith.mulf %198, %11 : vector<8x256xf32>
    %c176_170 = arith.constant 176 : index
    %c256_171 = arith.constant 256 : index
    %200 = vector.load %arg6[%c176_170, %c256_171] : memref<392x512xf32, #tpu.memory_space<vmem>>, vector<8x256xf32>
    tpu.vector_store %arg6[%c176_170, %c256_171], %199 {strides = array<i32>} : memref<392x512xf32, #tpu.memory_space<vmem>>, vector<8x256xf32>,
    %c0_172 = arith.constant 0 : index
    %c142_173 = arith.constant 142 : index
    %201 = vector.load %arg5[%c0_172, %c142_173] : memref<8x512xf32, #tpu.memory_space<vmem>>, vector<8x256xf32>
    %202 = arith.mulf %201, %11 : vector<8x256xf32>
    %c232_174 = arith.constant 232 : index
    %c256_175 = arith.constant 256 : index
    %203 = vector.load %arg6[%c232_174, %c256_175] : memref<392x512xf32, #tpu.memory_space<vmem>>, vector<8x256xf32>
    tpu.vector_store %arg6[%c232_174, %c256_175], %202 {strides = array<i32>} : memref<392x512xf32, #tpu.memory_space<vmem>>, vector<8x256xf32>,
    %c0_176 = arith.constant 0 : index
    %c158_177 = arith.constant 158 : index
    %204 = vector.load %arg5[%c0_176, %c158_177] : memref<8x512xf32, #tpu.memory_space<vmem>>, vector<8x256xf32>
    %205 = arith.mulf %204, %11 : vector<8x256xf32>
    %c288_178 = arith.constant 288 : index
    %c256_179 = arith.constant 256 : index
    %206 = vector.load %arg6[%c288_178, %c256_179] : memref<392x512xf32, #tpu.memory_space<vmem>>, vector<8x256xf32>
    tpu.vector_store %arg6[%c288_178, %c256_179], %205 {strides = array<i32>} : memref<392x512xf32, #tpu.memory_space<vmem>>, vector<8x256xf32>,
    %c0_180 = arith.constant 0 : index
    %c174_181 = arith.constant 174 : index
    %207 = vector.load %arg5[%c0_180, %c174_181] : memref<8x512xf32, #tpu.memory_space<vmem>>, vector<8x256xf32>
    %208 = arith.mulf %207, %11 : vector<8x256xf32>
    %c344_182 = arith.constant 344 : index
    %c256_183 = arith.constant 256 : index
    %209 = vector.load %arg6[%c344_182, %c256_183] : memref<392x512xf32, #tpu.memory_space<vmem>>, vector<8x256xf32>
    tpu.vector_store %arg6[%c344_182, %c256_183], %208 {strides = array<i32>} : memref<392x512xf32, #tpu.memory_space<vmem>>, vector<8x256xf32>,
    %c0_184 = arith.constant 0 : index
    %c79_185 = arith.constant 79 : index
    %210 = vector.load %arg5[%c0_184, %c79_185] : memref<8x512xf32, #tpu.memory_space<vmem>>, vector<8x256xf32>
    %211 = arith.mulf %210, %14 : vector<8x256xf32>
    %c16_186 = arith.constant 16 : index
    %c256_187 = arith.constant 256 : index
    %212 = vector.load %arg6[%c16_186, %c256_187] : memref<392x512xf32, #tpu.memory_space<vmem>>, vector<8x256xf32>
    tpu.vector_store %arg6[%c16_186, %c256_187], %211 {strides = array<i32>} : memref<392x512xf32, #tpu.memory_space<vmem>>, vector<8x256xf32>,
    %c0_188 = arith.constant 0 : index
    %c95_189 = arith.constant 95 : index
    %213 = vector.load %arg5[%c0_188, %c95_189] : memref<8x512xf32, #tpu.memory_space<vmem>>, vector<8x256xf32>
    %214 = arith.mulf %213, %14 : vector<8x256xf32>
    %c72_190 = arith.constant 72 : index
    %c256_191 = arith.constant 256 : index
    %215 = vector.load %arg6[%c72_190, %c256_191] : memref<392x512xf32, #tpu.memory_space<vmem>>, vector<8x256xf32>
    tpu.vector_store %arg6[%c72_190, %c256_191], %214 {strides = array<i32>} : memref<392x512xf32, #tpu.memory_space<vmem>>, vector<8x256xf32>,
    %c0_192 = arith.constant 0 : index
    %c111_193 = arith.constant 111 : index
    %216 = vector.load %arg5[%c0_192, %c111_193] : memref<8x512xf32, #tpu.memory_space<vmem>>, vector<8x256xf32>
    %217 = arith.mulf %216, %14 : vector<8x256xf32>
    %c128_194 = arith.constant 128 : index
    %c256_195 = arith.constant 256 : index
    %218 = vector.load %arg6[%c128_194, %c256_195] : memref<392x512xf32, #tpu.memory_space<vmem>>, vector<8x256xf32>
    tpu.vector_store %arg6[%c128_194, %c256_195], %217 {strides = array<i32>} : memref<392x512xf32, #tpu.memory_space<vmem>>, vector<8x256xf32>,
    %c0_196 = arith.constant 0 : index
    %c127_197 = arith.constant 127 : index
    %219 = vector.load %arg5[%c0_196, %c127_197] : memref<8x512xf32, #tpu.memory_space<vmem>>, vector<8x256xf32>
    %220 = arith.mulf %219, %14 : vector<8x256xf32>
    %c184_198 = arith.constant 184 : index
    %c256_199 = arith.constant 256 : index
    %221 = vector.load %arg6[%c184_198, %c256_199] : memref<392x512xf32, #tpu.memory_space<vmem>>, vector<8x256xf32>
    tpu.vector_store %arg6[%c184_198, %c256_199], %220 {strides = array<i32>} : memref<392x512xf32, #tpu.memory_space<vmem>>, vector<8x256xf32>,
    %c0_200 = arith.constant 0 : index
    %c143_201 = arith.constant 143 : index
    %222 = vector.load %arg5[%c0_200, %c143_201] : memref<8x512xf32, #tpu.memory_space<vmem>>, vector<8x256xf32>
    %223 = arith.mulf %222, %14 : vector<8x256xf32>
    %c240_202 = arith.constant 240 : index
    %c256_203 = arith.constant 256 : index
    %224 = vector.load %arg6[%c240_202, %c256_203] : memref<392x512xf32, #tpu.memory_space<vmem>>, vector<8x256xf32>
    tpu.vector_store %arg6[%c240_202, %c256_203], %223 {strides = array<i32>} : memref<392x512xf32, #tpu.memory_space<vmem>>, vector<8x256xf32>,
    %c0_204 = arith.constant 0 : index
    %c159_205 = arith.constant 159 : index
    %225 = vector.load %arg5[%c0_204, %c159_205] : memref<8x512xf32, #tpu.memory_space<vmem>>, vector<8x256xf32>
    %226 = arith.mulf %225, %14 : vector<8x256xf32>
    %c296_206 = arith.constant 296 : index
    %c256_207 = arith.constant 256 : index
    %227 = vector.load %arg6[%c296_206, %c256_207] : memref<392x512xf32, #tpu.memory_space<vmem>>, vector<8x256xf32>
    tpu.vector_store %arg6[%c296_206, %c256_207], %226 {strides = array<i32>} : memref<392x512xf32, #tpu.memory_space<vmem>>, vector<8x256xf32>,
    %c0_208 = arith.constant 0 : index
    %c175_209 = arith.constant 175 : index
    %228 = vector.load %arg5[%c0_208, %c175_209] : memref<8x512xf32, #tpu.memory_space<vmem>>, vector<8x256xf32>
    %229 = arith.mulf %228, %14 : vector<8x256xf32>
    %c352_210 = arith.constant 352 : index
    %c256_211 = arith.constant 256 : index
    %230 = vector.load %arg6[%c352_210, %c256_211] : memref<392x512xf32, #tpu.memory_space<vmem>>, vector<8x256xf32>
    tpu.vector_store %arg6[%c352_210, %c256_211], %229 {strides = array<i32>} : memref<392x512xf32, #tpu.memory_space<vmem>>, vector<8x256xf32>,
    %c0_212 = arith.constant 0 : index
    %c80_213 = arith.constant 80 : index
    %231 = vector.load %arg5[%c0_212, %c80_213] : memref<8x512xf32, #tpu.memory_space<vmem>>, vector<8x256xf32>
    %c24_214 = arith.constant 24 : index
    %c256_215 = arith.constant 256 : index
    %232 = vector.load %arg6[%c24_214, %c256_215] : memref<392x512xf32, #tpu.memory_space<vmem>>, vector<8x256xf32>
    tpu.vector_store %arg6[%c24_214, %c256_215], %231 {strides = array<i32>} : memref<392x512xf32, #tpu.memory_space<vmem>>, vector<8x256xf32>,
    %c0_216 = arith.constant 0 : index
    %c96_217 = arith.constant 96 : index
    %233 = vector.load %arg5[%c0_216, %c96_217] : memref<8x512xf32, #tpu.memory_space<vmem>>, vector<8x256xf32>
    %c80_218 = arith.constant 80 : index
    %c256_219 = arith.constant 256 : index
    %234 = vector.load %arg6[%c80_218, %c256_219] : memref<392x512xf32, #tpu.memory_space<vmem>>, vector<8x256xf32>
    tpu.vector_store %arg6[%c80_218, %c256_219], %233 {strides = array<i32>} : memref<392x512xf32, #tpu.memory_space<vmem>>, vector<8x256xf32>,
    %c0_220 = arith.constant 0 : index
    %c112_221 = arith.constant 112 : index
    %235 = vector.load %arg5[%c0_220, %c112_221] : memref<8x512xf32, #tpu.memory_space<vmem>>, vector<8x256xf32>
    %c136_222 = arith.constant 136 : index
    %c256_223 = arith.constant 256 : index
    %236 = vector.load %arg6[%c136_222, %c256_223] : memref<392x512xf32, #tpu.memory_space<vmem>>, vector<8x256xf32>
    tpu.vector_store %arg6[%c136_222, %c256_223], %235 {strides = array<i32>} : memref<392x512xf32, #tpu.memory_space<vmem>>, vector<8x256xf32>,
    %c0_224 = arith.constant 0 : index
    %c128_225 = arith.constant 128 : index
    %237 = vector.load %arg5[%c0_224, %c128_225] : memref<8x512xf32, #tpu.memory_space<vmem>>, vector<8x256xf32>
    %c192_226 = arith.constant 192 : index
    %c256_227 = arith.constant 256 : index
    %238 = vector.load %arg6[%c192_226, %c256_227] : memref<392x512xf32, #tpu.memory_space<vmem>>, vector<8x256xf32>
    tpu.vector_store %arg6[%c192_226, %c256_227], %237 {strides = array<i32>} : memref<392x512xf32, #tpu.memory_space<vmem>>, vector<8x256xf32>,
    %c0_228 = arith.constant 0 : index
    %c144_229 = arith.constant 144 : index
    %239 = vector.load %arg5[%c0_228, %c144_229] : memref<8x512xf32, #tpu.memory_space<vmem>>, vector<8x256xf32>
    %c248_230 = arith.constant 248 : index
    %c256_231 = arith.constant 256 : index
    %240 = vector.load %arg6[%c248_230, %c256_231] : memref<392x512xf32, #tpu.memory_space<vmem>>, vector<8x256xf32>
    tpu.vector_store %arg6[%c248_230, %c256_231], %239 {strides = array<i32>} : memref<392x512xf32, #tpu.memory_space<vmem>>, vector<8x256xf32>,
    %c0_232 = arith.constant 0 : index
    %c160_233 = arith.constant 160 : index
    %241 = vector.load %arg5[%c0_232, %c160_233] : memref<8x512xf32, #tpu.memory_space<vmem>>, vector<8x256xf32>
    %c304_234 = arith.constant 304 : index
    %c256_235 = arith.constant 256 : index
    %242 = vector.load %arg6[%c304_234, %c256_235] : memref<392x512xf32, #tpu.memory_space<vmem>>, vector<8x256xf32>
    tpu.vector_store %arg6[%c304_234, %c256_235], %241 {strides = array<i32>} : memref<392x512xf32, #tpu.memory_space<vmem>>, vector<8x256xf32>,
    %c0_236 = arith.constant 0 : index
    %c176_237 = arith.constant 176 : index
    %243 = vector.load %arg5[%c0_236, %c176_237] : memref<8x512xf32, #tpu.memory_space<vmem>>, vector<8x256xf32>
    %c360_238 = arith.constant 360 : index
    %c256_239 = arith.constant 256 : index
    %244 = vector.load %arg6[%c360_238, %c256_239] : memref<392x512xf32, #tpu.memory_space<vmem>>, vector<8x256xf32>
    tpu.vector_store %arg6[%c360_238, %c256_239], %243 {strides = array<i32>} : memref<392x512xf32, #tpu.memory_space<vmem>>, vector<8x256xf32>,
    %c0_240 = arith.constant 0 : index
    %c81_241 = arith.constant 81 : index
    %245 = vector.load %arg5[%c0_240, %c81_241] : memref<8x512xf32, #tpu.memory_space<vmem>>, vector<8x256xf32>
    %246 = arith.mulf %245, %17 : vector<8x256xf32>
    %c32_242 = arith.constant 32 : index
    %c256_243 = arith.constant 256 : index
    %247 = vector.load %arg6[%c32_242, %c256_243] : memref<392x512xf32, #tpu.memory_space<vmem>>, vector<8x256xf32>
    tpu.vector_store %arg6[%c32_242, %c256_243], %246 {strides = array<i32>} : memref<392x512xf32, #tpu.memory_space<vmem>>, vector<8x256xf32>,
    %c0_244 = arith.constant 0 : index
    %c97_245 = arith.constant 97 : index
    %248 = vector.load %arg5[%c0_244, %c97_245] : memref<8x512xf32, #tpu.memory_space<vmem>>, vector<8x256xf32>
    %249 = arith.mulf %248, %17 : vector<8x256xf32>
    %c88_246 = arith.constant 88 : index
    %c256_247 = arith.constant 256 : index
    %250 = vector.load %arg6[%c88_246, %c256_247] : memref<392x512xf32, #tpu.memory_space<vmem>>, vector<8x256xf32>
    tpu.vector_store %arg6[%c88_246, %c256_247], %249 {strides = array<i32>} : memref<392x512xf32, #tpu.memory_space<vmem>>, vector<8x256xf32>,
    %c0_248 = arith.constant 0 : index
    %c113_249 = arith.constant 113 : index
    %251 = vector.load %arg5[%c0_248, %c113_249] : memref<8x512xf32, #tpu.memory_space<vmem>>, vector<8x256xf32>
    %252 = arith.mulf %251, %17 : vector<8x256xf32>
    %c144_250 = arith.constant 144 : index
    %c256_251 = arith.constant 256 : index
    %253 = vector.load %arg6[%c144_250, %c256_251] : memref<392x512xf32, #tpu.memory_space<vmem>>, vector<8x256xf32>
    tpu.vector_store %arg6[%c144_250, %c256_251], %252 {strides = array<i32>} : memref<392x512xf32, #tpu.memory_space<vmem>>, vector<8x256xf32>,
    %c0_252 = arith.constant 0 : index
    %c129_253 = arith.constant 129 : index
    %254 = vector.load %arg5[%c0_252, %c129_253] : memref<8x512xf32, #tpu.memory_space<vmem>>, vector<8x256xf32>
    %255 = arith.mulf %254, %17 : vector<8x256xf32>
    %c200_254 = arith.constant 200 : index
    %c256_255 = arith.constant 256 : index
    %256 = vector.load %arg6[%c200_254, %c256_255] : memref<392x512xf32, #tpu.memory_space<vmem>>, vector<8x256xf32>
    tpu.vector_store %arg6[%c200_254, %c256_255], %255 {strides = array<i32>} : memref<392x512xf32, #tpu.memory_space<vmem>>, vector<8x256xf32>,
    %c0_256 = arith.constant 0 : index
    %c145_257 = arith.constant 145 : index
    %257 = vector.load %arg5[%c0_256, %c145_257] : memref<8x512xf32, #tpu.memory_space<vmem>>, vector<8x256xf32>
    %258 = arith.mulf %257, %17 : vector<8x256xf32>
    %c256_258 = arith.constant 256 : index
    %c256_259 = arith.constant 256 : index
    %259 = vector.load %arg6[%c256_258, %c256_259] : memref<392x512xf32, #tpu.memory_space<vmem>>, vector<8x256xf32>
    tpu.vector_store %arg6[%c256_258, %c256_259], %258 {strides = array<i32>} : memref<392x512xf32, #tpu.memory_space<vmem>>, vector<8x256xf32>,
    %c0_260 = arith.constant 0 : index
    %c161_261 = arith.constant 161 : index
    %260 = vector.load %arg5[%c0_260, %c161_261] : memref<8x512xf32, #tpu.memory_space<vmem>>, vector<8x256xf32>
    %261 = arith.mulf %260, %17 : vector<8x256xf32>
    %c312_262 = arith.constant 312 : index
    %c256_263 = arith.constant 256 : index
    %262 = vector.load %arg6[%c312_262, %c256_263] : memref<392x512xf32, #tpu.memory_space<vmem>>, vector<8x256xf32>
    tpu.vector_store %arg6[%c312_262, %c256_263], %261 {strides = array<i32>} : memref<392x512xf32, #tpu.memory_space<vmem>>, vector<8x256xf32>,
    %c0_264 = arith.constant 0 : index
    %c177_265 = arith.constant 177 : index
    %263 = vector.load %arg5[%c0_264, %c177_265] : memref<8x512xf32, #tpu.memory_space<vmem>>, vector<8x256xf32>
    %264 = arith.mulf %263, %17 : vector<8x256xf32>
    %c368_266 = arith.constant 368 : index
    %c256_267 = arith.constant 256 : index
    %265 = vector.load %arg6[%c368_266, %c256_267] : memref<392x512xf32, #tpu.memory_space<vmem>>, vector<8x256xf32>
    tpu.vector_store %arg6[%c368_266, %c256_267], %264 {strides = array<i32>} : memref<392x512xf32, #tpu.memory_space<vmem>>, vector<8x256xf32>,
    %c0_268 = arith.constant 0 : index
    %c82_269 = arith.constant 82 : index
    %266 = vector.load %arg5[%c0_268, %c82_269] : memref<8x512xf32, #tpu.memory_space<vmem>>, vector<8x256xf32>
    %267 = arith.mulf %266, %20 : vector<8x256xf32>
    %c40_270 = arith.constant 40 : index
    %c256_271 = arith.constant 256 : index
    %268 = vector.load %arg6[%c40_270, %c256_271] : memref<392x512xf32, #tpu.memory_space<vmem>>, vector<8x256xf32>
    tpu.vector_store %arg6[%c40_270, %c256_271], %267 {strides = array<i32>} : memref<392x512xf32, #tpu.memory_space<vmem>>, vector<8x256xf32>,
    %c0_272 = arith.constant 0 : index
    %c98_273 = arith.constant 98 : index
    %269 = vector.load %arg5[%c0_272, %c98_273] : memref<8x512xf32, #tpu.memory_space<vmem>>, vector<8x256xf32>
    %270 = arith.mulf %269, %20 : vector<8x256xf32>
    %c96_274 = arith.constant 96 : index
    %c256_275 = arith.constant 256 : index
    %271 = vector.load %arg6[%c96_274, %c256_275] : memref<392x512xf32, #tpu.memory_space<vmem>>, vector<8x256xf32>
    tpu.vector_store %arg6[%c96_274, %c256_275], %270 {strides = array<i32>} : memref<392x512xf32, #tpu.memory_space<vmem>>, vector<8x256xf32>,
    %c0_276 = arith.constant 0 : index
    %c114_277 = arith.constant 114 : index
    %272 = vector.load %arg5[%c0_276, %c114_277] : memref<8x512xf32, #tpu.memory_space<vmem>>, vector<8x256xf32>
    %273 = arith.mulf %272, %20 : vector<8x256xf32>
    %c152_278 = arith.constant 152 : index
    %c256_279 = arith.constant 256 : index
    %274 = vector.load %arg6[%c152_278, %c256_279] : memref<392x512xf32, #tpu.memory_space<vmem>>, vector<8x256xf32>
    tpu.vector_store %arg6[%c152_278, %c256_279], %273 {strides = array<i32>} : memref<392x512xf32, #tpu.memory_space<vmem>>, vector<8x256xf32>,
    %c0_280 = arith.constant 0 : index
    %c130_281 = arith.constant 130 : index
    %275 = vector.load %arg5[%c0_280, %c130_281] : memref<8x512xf32, #tpu.memory_space<vmem>>, vector<8x256xf32>
    %276 = arith.mulf %275, %20 : vector<8x256xf32>
    %c208_282 = arith.constant 208 : index
    %c256_283 = arith.constant 256 : index
    %277 = vector.load %arg6[%c208_282, %c256_283] : memref<392x512xf32, #tpu.memory_space<vmem>>, vector<8x256xf32>
    tpu.vector_store %arg6[%c208_282, %c256_283], %276 {strides = array<i32>} : memref<392x512xf32, #tpu.memory_space<vmem>>, vector<8x256xf32>,
    %c0_284 = arith.constant 0 : index
    %c146_285 = arith.constant 146 : index
    %278 = vector.load %arg5[%c0_284, %c146_285] : memref<8x512xf32, #tpu.memory_space<vmem>>, vector<8x256xf32>
    %279 = arith.mulf %278, %20 : vector<8x256xf32>
    %c264_286 = arith.constant 264 : index
    %c256_287 = arith.constant 256 : index
    %280 = vector.load %arg6[%c264_286, %c256_287] : memref<392x512xf32, #tpu.memory_space<vmem>>, vector<8x256xf32>
    tpu.vector_store %arg6[%c264_286, %c256_287], %279 {strides = array<i32>} : memref<392x512xf32, #tpu.memory_space<vmem>>, vector<8x256xf32>,
    %c0_288 = arith.constant 0 : index
    %c162_289 = arith.constant 162 : index
    %281 = vector.load %arg5[%c0_288, %c162_289] : memref<8x512xf32, #tpu.memory_space<vmem>>, vector<8x256xf32>
    %282 = arith.mulf %281, %20 : vector<8x256xf32>
    %c320_290 = arith.constant 320 : index
    %c256_291 = arith.constant 256 : index
    %283 = vector.load %arg6[%c320_290, %c256_291] : memref<392x512xf32, #tpu.memory_space<vmem>>, vector<8x256xf32>
    tpu.vector_store %arg6[%c320_290, %c256_291], %282 {strides = array<i32>} : memref<392x512xf32, #tpu.memory_space<vmem>>, vector<8x256xf32>,
    %c0_292 = arith.constant 0 : index
    %c178_293 = arith.constant 178 : index
    %284 = vector.load %arg5[%c0_292, %c178_293] : memref<8x512xf32, #tpu.memory_space<vmem>>, vector<8x256xf32>
    %285 = arith.mulf %284, %20 : vector<8x256xf32>
    %c376_294 = arith.constant 376 : index
    %c256_295 = arith.constant 256 : index
    %286 = vector.load %arg6[%c376_294, %c256_295] : memref<392x512xf32, #tpu.memory_space<vmem>>, vector<8x256xf32>
    tpu.vector_store %arg6[%c376_294, %c256_295], %285 {strides = array<i32>} : memref<392x512xf32, #tpu.memory_space<vmem>>, vector<8x256xf32>,
    %c0_296 = arith.constant 0 : index
    %c83_297 = arith.constant 83 : index
    %287 = vector.load %arg5[%c0_296, %c83_297] : memref<8x512xf32, #tpu.memory_space<vmem>>, vector<8x256xf32>
    %288 = arith.mulf %287, %23 : vector<8x256xf32>
    %c48_298 = arith.constant 48 : index
    %c256_299 = arith.constant 256 : index
    %289 = vector.load %arg6[%c48_298, %c256_299] : memref<392x512xf32, #tpu.memory_space<vmem>>, vector<8x256xf32>
    tpu.vector_store %arg6[%c48_298, %c256_299], %288 {strides = array<i32>} : memref<392x512xf32, #tpu.memory_space<vmem>>, vector<8x256xf32>,
    %c0_300 = arith.constant 0 : index
    %c99_301 = arith.constant 99 : index
    %290 = vector.load %arg5[%c0_300, %c99_301] : memref<8x512xf32, #tpu.memory_space<vmem>>, vector<8x256xf32>
    %291 = arith.mulf %290, %23 : vector<8x256xf32>
    %c104_302 = arith.constant 104 : index
    %c256_303 = arith.constant 256 : index
    %292 = vector.load %arg6[%c104_302, %c256_303] : memref<392x512xf32, #tpu.memory_space<vmem>>, vector<8x256xf32>
    tpu.vector_store %arg6[%c104_302, %c256_303], %291 {strides = array<i32>} : memref<392x512xf32, #tpu.memory_space<vmem>>, vector<8x256xf32>,
    %c0_304 = arith.constant 0 : index
    %c115_305 = arith.constant 115 : index
    %293 = vector.load %arg5[%c0_304, %c115_305] : memref<8x512xf32, #tpu.memory_space<vmem>>, vector<8x256xf32>
    %294 = arith.mulf %293, %23 : vector<8x256xf32>
    %c160_306 = arith.constant 160 : index
    %c256_307 = arith.constant 256 : index
    %295 = vector.load %arg6[%c160_306, %c256_307] : memref<392x512xf32, #tpu.memory_space<vmem>>, vector<8x256xf32>
    tpu.vector_store %arg6[%c160_306, %c256_307], %294 {strides = array<i32>} : memref<392x512xf32, #tpu.memory_space<vmem>>, vector<8x256xf32>,
    %c0_308 = arith.constant 0 : index
    %c131_309 = arith.constant 131 : index
    %296 = vector.load %arg5[%c0_308, %c131_309] : memref<8x512xf32, #tpu.memory_space<vmem>>, vector<8x256xf32>
    %297 = arith.mulf %296, %23 : vector<8x256xf32>
    %c216_310 = arith.constant 216 : index
    %c256_311 = arith.constant 256 : index
    %298 = vector.load %arg6[%c216_310, %c256_311] : memref<392x512xf32, #tpu.memory_space<vmem>>, vector<8x256xf32>
    tpu.vector_store %arg6[%c216_310, %c256_311], %297 {strides = array<i32>} : memref<392x512xf32, #tpu.memory_space<vmem>>, vector<8x256xf32>,
    %c0_312 = arith.constant 0 : index
    %c147_313 = arith.constant 147 : index
    %299 = vector.load %arg5[%c0_312, %c147_313] : memref<8x512xf32, #tpu.memory_space<vmem>>, vector<8x256xf32>
    %300 = arith.mulf %299, %23 : vector<8x256xf32>
    %c272_314 = arith.constant 272 : index
    %c256_315 = arith.constant 256 : index
    %301 = vector.load %arg6[%c272_314, %c256_315] : memref<392x512xf32, #tpu.memory_space<vmem>>, vector<8x256xf32>
    tpu.vector_store %arg6[%c272_314, %c256_315], %300 {strides = array<i32>} : memref<392x512xf32, #tpu.memory_space<vmem>>, vector<8x256xf32>,
    %c0_316 = arith.constant 0 : index
    %c163_317 = arith.constant 163 : index
    %302 = vector.load %arg5[%c0_316, %c163_317] : memref<8x512xf32, #tpu.memory_space<vmem>>, vector<8x256xf32>
    %303 = arith.mulf %302, %23 : vector<8x256xf32>
    %c328_318 = arith.constant 328 : index
    %c256_319 = arith.constant 256 : index
    %304 = vector.load %arg6[%c328_318, %c256_319] : memref<392x512xf32, #tpu.memory_space<vmem>>, vector<8x256xf32>
    tpu.vector_store %arg6[%c328_318, %c256_319], %303 {strides = array<i32>} : memref<392x512xf32, #tpu.memory_space<vmem>>, vector<8x256xf32>,
    %c0_320 = arith.constant 0 : index
    %c179_321 = arith.constant 179 : index
    %305 = vector.load %arg5[%c0_320, %c179_321] : memref<8x512xf32, #tpu.memory_space<vmem>>, vector<8x256xf32>
    %306 = arith.mulf %305, %23 : vector<8x256xf32>
    %c384_322 = arith.constant 384 : index
    %c256_323 = arith.constant 256 : index
    %307 = vector.load %arg6[%c384_322, %c256_323] : memref<392x512xf32, #tpu.memory_space<vmem>>, vector<8x256xf32>
    tpu.vector_store %arg6[%c384_322, %c256_323], %306 {strides = array<i32>} : memref<392x512xf32, #tpu.memory_space<vmem>>, vector<8x256xf32>,
    %c0_324 = arith.constant 0 : index
    %c0_325 = arith.constant 0 : index
    %308 = vector.load %arg2[%c0_324, %c0_325] : memref<4x392xf32, #tpu.memory_space<vmem>>, vector<4x392xf32>
    %c0_326 = arith.constant 0 : index
    %c0_327 = arith.constant 0 : index
    %309 = vector.load %arg6[%c0_326, %c0_327] : memref<392x512xf32, #tpu.memory_space<vmem>>, vector<392x512xf32>
    %cst_328 = arith.constant dense<0.000000e+00> : vector<4x512xf32>
    %310 = tpu.matmul %308, %309, %cst_328 {dimension_numbers = #tpu.dot_dimension_numbers<[1], [0], [0], [1], [0, 0, 1, 1], [], []>} : vector<4x392xf32>, vector<392x512xf32>, vector<4x512xf32> -> vector<4x512xf32>
    %311 = vector.extract_strided_slice %310 {offsets = [0, 0], sizes = [4, 256], strides = [1, 1]} : vector<4x512xf32> to vector<4x256xf32>
    %cst_329 = arith.constant 1.000000e+00 : f32
    %312 = vector.broadcast %cst_329 : f32 to vector<4x256xf32>
    %313 = arith.addf %312, %311 : vector<4x256xf32>
    %314 = arith.divf %24, %313 : vector<4x256xf32>
    %315 = vector.extract_strided_slice %310 {offsets = [0, 256], sizes = [4, 256], strides = [1, 1]} : vector<4x512xf32> to vector<4x256xf32>
    %cst_330 = arith.constant 1.000000e+00 : f32
    %316 = vector.broadcast %cst_330 : f32 to vector<4x256xf32>
    %317 = arith.addf %316, %315 : vector<4x256xf32>
    %318 = arith.divf %166, %317 : vector<4x256xf32>
    %319 = tpu.concatenate %314, %318 in 0 : vector<4x256xf32>, vector<4x256xf32> -> vector<8x256xf32>
    %c0_331 = arith.constant 0 : index
    %c0_332 = arith.constant 0 : index
    %320 = vector.load %arg4[%c0_331, %c0_332] : memref<8x256xf32, #tpu.memory_space<vmem>>, vector<8x256xf32>
    tpu.vector_store %arg4[%c0_331, %c0_332], %319 {strides = array<i32>} : memref<8x256xf32, #tpu.memory_space<vmem>>, vector<8x256xf32>,
    return
  }
  func.func @transform_0(%arg0: i32) -> (i32, i32) {
    %c0_i32 = arith.constant 0 : i32
    %c0_i32_0 = arith.constant 0 : i32
    return %arg0, %c0_i32 : i32, i32
  }
  func.func @transform_1(%arg0: i32) -> (i32, i32) {
    %c0_i32 = arith.constant 0 : i32
    %c0_i32_0 = arith.constant 0 : i32
    %c0_i32_1 = arith.constant 0 : i32
    return %c0_i32, %c0_i32_0 : i32, i32
  }
  func.func @transform_2(%arg0: i32) -> (i32, i32) {
    %c0_i32 = arith.constant 0 : i32
    %c0_i32_0 = arith.constant 0 : i32
    %c0_i32_1 = arith.constant 0 : i32
    return %c0_i32, %c0_i32_0 : i32, i32
  }
  func.func @transform_3(%arg0: i32) -> (i32, i32) {
    %c0_i32 = arith.constant 0 : i32
    %c0_i32_0 = arith.constant 0 : i32
    return %arg0, %c0_i32 : i32, i32
  }
}

</mosaic_0001>

<bundles_post_ra>
// kernel: tpu_custom_call.1
= control target key start
LH: loop header
LB: loop body
LE: loop exit
PB: predicated region body
PF: predicated region fallthrough
CT: control target
= control target key end

     0   :  { %8 = vsyncpa [#allocation5], 0  ;;  %s5882_s0 = inlined_call_operand.hbm [shape: f32[8,256], index: 0, kind: input, shape index: {}]   ;;  %s5883_s1 = inlined_call_operand.hbm [shape: f32[4,392], index: 1, kind: input, shape index: {}]   ;;  %s5884_s2 = inlined_call_operand.hbm [shape: f32[7,256], index: 2, kind: input, shape index: {}]   ;;  %s5885_s3 = inlined_call_operand.hbm [shape: f32[8,256], index: 3, kind: output, shape index: {}]  }
   0x1   :  { %9 = vsyncpa [#allocation8], 0 }
   0x2   :  { %10 = vsyncpa [#allocation6], 0  ;;  %s4102_s12 = smov [#allocation7]   ;;  %s4103_s14 = smov [#allocation4]  }
   0x3   :  { %s27_s13 = sshll.u32 %s4102_s12, 4  ;;  %s17_s15 = sshll.u32 %s4103_s14, 4  ;;  %s28_s13 = int_to_ptr.vmem [resolvable:$true] %s27_s13  ;;  %s18_s15 = int_to_ptr.vmem [resolvable:$true] %s17_s15 }
   0x4   :  { %s4008_s18 = scalar_lea.hbm %s5883_s1, 256 }
   0x5   :  { %p4009_p0 = scmp.ne.s32.totalorder %s5883_s1, %s4008_s18  ;;  %p4012_p1 = scmp.lt.u32.totalorder %s4008_s18, %s5883_s1 }
   0x7   :  { %p4014_p2 = pnand %p4012_p1, %p4009_p0 }
   0x9   :  { %4017 = shalt.err (!%p4014_p2)
}
   0xa   :  { %s4018_s23 = scalar_lea.vmem %s28_s13, 256  ;;  %p4023_p4 = scmp.lt.s32.totalorder %s28_s13, %s28_s13 }
   0xb   :  { %p4019_p3 = scmp.ne.s32.totalorder %s28_s13, %s4018_s23  ;;  %p4024_p5 = scmp.lt.s32.totalorder %s4018_s23, %s4018_s23 }
   0xd   :  { %p4025_p6 = por %p4024_p5, %p4023_p4 }
   0xf   :  { %p4026_p7 = pnand %p4025_p6, %p4019_p3 }
  0x11   :  { %4029 = shalt.err (!%p4026_p7)
}
  0x12   :  { %30 = dma.hbm_to_vmem [thread:$0]  %s5883_s1, 256, %s28_s13, [#allocation8]  }
  0x13   :  { %s4030_s28 = scalar_lea.hbm %s5882_s0, 256 }
  0x14   :  { %p4031_p8 = scmp.ne.s32.totalorder %s5882_s0, %s4030_s28  ;;  %p4034_p9 = scmp.lt.u32.totalorder %s4030_s28, %s5882_s0 }
  0x16   :  { %p4036_p10 = pnand %p4034_p9, %p4031_p8 }
  0x18   :  { %4039 = shalt.err (!%p4036_p10)
}
  0x19   :  { %s4040_s6 = scalar_lea.vmem %s18_s15, 256  ;;  %p4045_p12 = scmp.lt.s32.totalorder %s18_s15, %s18_s15 }
  0x1a   :  { %p4041_p11 = scmp.ne.s32.totalorder %s18_s15, %s4040_s6  ;;  %p4046_p13 = scmp.lt.s32.totalorder %s4040_s6, %s4040_s6 }
  0x1c   :  { %p4047_p0 = por %p4046_p13, %p4045_p12 }
  0x1e   :  { %p4048_p1 = pnand %p4047_p0, %p4041_p11 }
  0x20   :  { %4051 = shalt.err (!%p4048_p1)
}
  0x21   :  { %20 = dma.hbm_to_vmem [thread:$0]  %s5882_s0, 256, %s18_s15, [#allocation5]  }
  0x22   :  { %s4104_s8 = smov [#allocation9]   ;;  %s4052_s12 = scalar_lea.hbm %s5884_s2, 256 }
  0x23   :  { %s37_s9 = sshll.u32 %s4104_s8, 4  ;;  %p4053_p2 = scmp.ne.s32.totalorder %s5884_s2, %s4052_s12  ;;  %s38_s9 = int_to_ptr.vmem [resolvable:$true] %s37_s9 }
  0x24   :  { %p4056_p3 = scmp.lt.u32.totalorder %s4052_s12, %s5884_s2 }
  0x26   :  { %p4058_p4 = pnand %p4056_p3, %p4053_p2 }
  0x28   :  { %4061 = shalt.err (!%p4058_p4)
}
  0x29   :  { %s4062_s18 = scalar_lea.vmem %s38_s9, 256  ;;  %p4067_p6 = scmp.lt.s32.totalorder %s38_s9, %s38_s9 }
  0x2a   :  { %p4063_p5 = scmp.ne.s32.totalorder %s38_s9, %s4062_s18  ;;  %p4068_p7 = scmp.lt.s32.totalorder %s4062_s18, %s4062_s18 }
  0x2c   :  { %p4069_p8 = por %p4068_p7, %p4067_p6 }
  0x2e   :  { %p4070_p9 = pnand %p4069_p8, %p4063_p5 }
  0x30   :  { %4073 = shalt.err (!%p4070_p9)
}
  0x31   :  { %40 = dma.hbm_to_vmem [thread:$0]  %s5884_s2, 256, %s38_s9, [#allocation8]  }
  0x32   :  { %4096 = dma.done.wait [#allocation5], 256  }
  0x33   :  { %4097 = vsyncadd [#allocation5], 4294967040 }
  0x34   :  { %4098 = dma.done.wait [#allocation8], 512  }
  0x35   :  { %4099 = vsyncadd [#allocation8], 4294966784  ;;  %v56_v0 = vlaneseq  ;;  %v5898_v1 = vmov 0.0   ;;  %v54_v5 = vld [vmem:[#allocation9] ss:$8 sm:$0x3] }
  0x36   :  { %50 = vst [vmem:[#allocation2] sm:$0xff] %v5898_v1  ;;  %52 = vst [vmem:[#allocation2 + $0x8] sm:$0xf0] %v5898_v1  ;;  %v4220_v8 = vld [vmem:[#allocation4 + $0x8] sm:$0xf]  ;;  %s5886_s2 = smov 77  }
  0x37   :  { %53 = vst [vmem:[#allocation2 + $0x10] sm:$0xf0] %v5898_v1  ;;  %v57_v2 = vshrl.u32 %v56_v0, 7  ;;  %6033 = vst [vmem:[#allocation14_spill] sm:$0xff] %v4220_v8  ;;  %s5893_s19 = smov 93   ;;  %s5895_s20 = smov 109  }
  0x38   :  { %122 = vst [vmem:[#allocation2 + $0x10] sm:$0xf] %v4220_v8  ;;  %v4225_v9 = vld [vmem:[#allocation4] sm:$0xf]  ;;  %v1502_v10 = vld [vmem:[#allocation4 + $0x8] sm:$0xf0] }
  0x39   :  { %v4214_v3 = vsub.s32 0, %v57_v2  ;;  %v4216_v4 = vsub.s32 1, %v57_v2  ;;  %6034 = vst [vmem:[#allocation15_spill] sm:$0xff] %v4225_v9  ;;  %121 = vst [vmem:[#allocation2 + $0x8] sm:$0xf] %v4225_v9  ;;  %v1506_v12 = vrot.slane %v1502_v10, 4 }
  0x3a   :  { %v1501_v11 = vld [vmem:[#allocation4] sm:$0xf0]  ;;  %s5933_s21 = smov 125   ;;  %s5935_s22 = smov 13   ;;  %vm5890_vm0 = vcmask 629760   ;;  %vm5929_vm1 = vcmask 760832  }
  0x3b   :  { %v59_v6 = vrot.slane %v54_v5, %v4214_v3  ;;  %v63_v7 = vrot.slane %v54_v5, %v4216_v4  ;;  %v1505_v13 = vrot.slane %v1501_v11, 4  ;;  %s5949_s23 = smov 29   ;;  %v65_v16 = vld [vmem:[#allocation9 + $0x1] ss:$8 sm:$0x3]  ;;  %s5959_s24 = smov 45  }
  0x3c   :  { %v74_v17 = vrot.slane %v65_v16, %v4216_v4  ;;  %s5888_s25 = smov 78   ;;  %v70_v18 = vrot.slane %v65_v16, %v4214_v3  ;;  %s5891_s26 = smov 94   ;;  %v76_v19 = vld [vmem:[#allocation9 + $0x2] ss:$8 sm:$0x3]  ;;  %vm5948_vm2 = vcmask 891904  }
  0x3d   :  { %126 = vrot.lane.b32.xlu0 %v59_v6, %s5886_s2  ;;  %159 = vrot.lane.b32.xlu1 %v63_v7, %s5893_s19  ;;  %s5923_s27 = smov 110   ;;  %s5925_s28 = smov 126   ;;  %v4259_v20 = vrot.slane %v76_v19, %v4216_v4  ;;  %v4266_v21 = vrot.slane %v76_v19, %v4214_v3  ;;  %vm5999_vm3 = vcmask 1022976   ;;  %vm6025_vm4 = vcmask 105472  }
  0x3e   :  { %s5942_s29 = smov 14   ;;  %s5944_s30 = smov 30   ;;  %vm285_vm5 = vcmask 236544   ;;  %vm316_vm6 = vcmask 367616   ;;  %vm5903_vm7 = vcmask 637952   ;;  %vm5914_vm8 = vcmask 769024  }
  0x3f   :  { %v4230_v14 = vld [vmem:[#allocation2 + $0x10] sm:$0xff]  ;;  %s4119_s4 = smov 46   ;;  %s6021_s5 = smov 79   ;;  %vm5967_vm9 = vcmask 900096   ;;  %vm5978_vm10 = vcmask 1031168   ;;  %vm471_vm11 = vcmask 113664  }
  0x40   :  { %1510 = vst [vmem:[#allocation2 + $0x10] sm:$0xf] %v1506_v12  ;;  %v4234_v15 = vld [vmem:[#allocation2 + $0x8] sm:$0xff]  ;;  %s4121_s6 = smov 95   ;;  %s4122_s1 = smov 111   ;;  %vm502_vm12 = vcmask 244736  }
  0x41   :  { %128 = vrot.lane.b32.xlu0 %v63_v7, %s5886_s2  ;;  %190 = vrot.lane.b32.xlu1 %v63_v7, %s5895_s20  ;;  %1509 = vst [vmem:[#allocation2 + $0x8] sm:$0xf] %v1505_v13  ;;  %s5963_s7 = smov 51   ;;  %s5957_s8 = smov 35   ;;  %vm533_vm13 = vcmask 375808   ;;  %vm5897_vm14 = vcmask 646144  }
  0x42   :  { %s5961_s9 = smov 19   ;;  %s4126_s10 = smov 3   ;;  %vm5939_vm15 = vcmask 777216  }
  0x43   :  { %s4127_s11 = smov 115   ;;  %s4128_s12 = smov 99  }
  0x44   :  { %s4129_s13 = smov 83   ;;  %s4130_s14 = smov 50  }
  0x45   :  { %157 = vrot.lane.b32.xlu0 %v59_v6, %s5893_s19  ;;  %221 = vrot.lane.b32.xlu1 %v63_v7, %s5933_s21  ;;  %s5955_s16 = smov 34   ;;  %s4132_s17 = smov 18  }
  0x46   :  { %s4133_s18 = smov 2   ;;  %s4134_s0 = smov 114  }
  0x47   :  { %v4341_v62 = vld [vmem:[#allocation2 + $0x10] sm:$0xff]  ;;  %s4135_s15 = smov 98   ;;  %s4136_s2 = smov 82  }
  0x48   :  { %v4289_v27 = vld [vmem:[#allocation2 + $0x8] sm:$0xff]  ;;  %s4139_s19 = smov 17  }
  0x49   :  { %188 = vrot.lane.b32.xlu0 %v59_v6, %s5895_s20  ;;  %252 = vrot.lane.b32.xlu1 %v63_v7, %s5935_s22  ;;  %s4140_s20 = smov 127  }
  0x4d   :  { %219 = vrot.lane.b32.xlu0 %v59_v6, %s5933_s21  ;;  %283 = vrot.lane.b32.xlu1 %v63_v7, %s5949_s23  ;;  %s4143_s21 = smov 113  }
  0x51   :  { %250 = vrot.lane.b32.xlu0 %v59_v6, %s5935_s22  ;;  %314 = vrot.lane.b32.xlu1 %v63_v7, %s5959_s24  ;;  %s4144_s22 = smov 31  }
  0x55   :  { %281 = vrot.lane.b32.xlu0 %v59_v6, %s5949_s23  ;;  %345 = vrot.lane.b32.xlu1 %v74_v17, %s5888_s25  ;;  %s6023_s23 = smov 81  }
  0x59   :  { %312 = vrot.lane.b32.xlu0 %v59_v6, %s5959_s24  ;;  %376 = vrot.lane.b32.xlu1 %v74_v17, %s5891_s26  ;;  %s4150_s24 = smov 16  }
  0x5d   :  { %343 = vrot.lane.b32.xlu0 %v70_v18, %s5888_s25  ;;  %407 = vrot.lane.b32.xlu1 %v74_v17, %s5923_s27  ;;  %s4137_s25 = smov 49  }
  0x61   :  { %374 = vrot.lane.b32.xlu0 %v70_v18, %s5891_s26  ;;  %438 = vrot.lane.b32.xlu1 %v74_v17, %s5925_s28  ;;  %s4138_s26 = smov 33  }
  0x65   :  { %405 = vrot.lane.b32.xlu0 %v70_v18, %s5923_s27  ;;  %469 = vrot.lane.b32.xlu1 %v74_v17, %s5942_s29  ;;  %s4141_s27 = smov 1  }
  0x69   :  { %436 = vrot.lane.b32.xlu0 %v70_v18, %s5925_s28  ;;  %500 = vrot.lane.b32.xlu1 %v74_v17, %s5944_s30  ;;  %s4142_s28 = smov 15  }
  0x6d   :  { %467 = vrot.lane.b32.xlu0 %v70_v18, %s5942_s29  ;;  %531 = vrot.lane.b32.xlu1 %v74_v17, %s4119_s4  ;;  %s4145_s29 = smov 97  }
  0x71   :  { %498 = vrot.lane.b32.xlu0 %v70_v18, %s5944_s30  ;;  %562 = vrot.lane.b32.xlu1 %v4259_v20, %s6021_s5  ;;  %s4146_s30 = smov 47  }
  0x75   :  { %529 = vrot.lane.b32.xlu0 %v70_v18, %s4119_s4  ;;  %593 = vrot.lane.b32.xlu1 %v4259_v20, %s4121_s6 }
  0x79   :  { %560 = vrot.lane.b32.xlu0 %v4266_v21, %s6021_s5  ;;  %624 = vrot.lane.b32.xlu1 %v4259_v20, %s4122_s1 }
  0x7d   :  { %591 = vrot.lane.b32.xlu0 %v4266_v21, %s4121_s6 }
  0x81   :  { %622 = vrot.lane.b32.xlu0 %v4266_v21, %s4122_s1 }
  0xaf   :  { %v4278_v22 = vpop.permute.xlu0 %126  ;;  %v4280_v23 = vpop.permute.xlu1 %159 }
  0xb0   :  { %v135_v28 = vmul.f32 0.0, %v4278_v22  ;;  %v168_v37 = vmul.f32 %v4280_v23, %v4230_v14 }
  0xb3   :  { %v4282_v24 = vpop.permute.xlu0 %128  ;;  %v4284_v25 = vpop.permute.xlu1 %190 }
  0xb4   :  { %v131_v26 = vsel %vm5890_vm0, %v4278_v22, %v4282_v24  ;;  %v137_v30 = vmul.f32 %v4282_v24, %v4230_v14  ;;  %v199_v44 = vmul.f32 %v4284_v25, %v4230_v14  ;;  %vm5966_vm0 = vcmask 908288  }
  0xb5   :  { %v136_v29 = vmul.f32 %v131_v26, %v4234_v15  ;;  %v1515_v33 = vmul.f32 %v4289_v27, %v131_v26 }
  0xb7   :  { %v4295_v31 = vpop.permute.xlu0 %157  ;;  %v3285_v32 = vpack.i.bf16 %v136_v29, %v135_v28  ;;  %v4298_v34 = vpop.permute.xlu1 %221  ;;  %v3290_v42 = vpack.i.bf16 %v1515_v33, %v137_v30 }
  0xb8   :  { %v162_v35 = vsel %vm5929_vm1, %v4295_v31, %v4280_v23  ;;  %v166_v36 = vmul.f32 0.0, %v4295_v31  ;;  %v230_v53 = vmul.f32 %v4298_v34, %v4230_v14  ;;  %vm688_vm1 = vcmask 121856  }
  0xb9   :  { %3286 = vrot.lane.b32.xlu1 %v3285_v32, %s5963_s7  ;;  %v167_v38 = vmul.f32 %v162_v35, %v4234_v15  ;;  %v1536_v39 = vmul.f32 %v4289_v27, %v162_v35 }
  0xbb   :  { %v4309_v40 = vpop.permute.xlu0 %188  ;;  %v3295_v41 = vpack.i.bf16 %v167_v38, %v166_v36  ;;  %v4311_v43 = vpop.permute.xlu1 %252  ;;  %v3300_v48 = vpack.i.bf16 %v1536_v39, %v168_v37 }
  0xbc   :  { %v193_v45 = vsel %vm5948_vm2, %v4309_v40, %v4284_v25  ;;  %v197_v46 = vmul.f32 0.0, %v4309_v40  ;;  %v261_v63 = vmul.f32 0.0, %v4311_v43  ;;  %vm750_vm2 = vcmask 384000  }
  0xbd   :  { %3296 = vrot.lane.b32.xlu0 %v3295_v41, %s5957_s8  ;;  %3291 = vrot.lane.b32.xlu1 %v3290_v42, %s5963_s7  ;;  %v198_v47 = vmul.f32 %v193_v45, %v4234_v15  ;;  %v1557_v49 = vmul.f32 %v4289_v27, %v193_v45  ;;  %s4152_s7 = smov 96  }
  0xbf   :  { %v4323_v50 = vpop.permute.xlu0 %219  ;;  %v3305_v51 = vpack.i.bf16 %v198_v47, %v197_v46  ;;  %v4325_v52 = vpop.permute.xlu1 %283  ;;  %v3310_v57 = vpack.i.bf16 %v1557_v49, %v199_v44 }
  0xc0   :  { %v224_v54 = vsel %vm5999_vm3, %v4323_v50, %v4298_v34  ;;  %v228_v55 = vmul.f32 0.0, %v4323_v50  ;;  %v292_v13 = vmul.f32 0.0, %v4325_v52  ;;  %vm643_vm3 = vcmask 138240  }
  0xc1   :  { %3306 = vrot.lane.b32.xlu0 %v3305_v51, %s5961_s9  ;;  %3301 = vrot.lane.b32.xlu1 %v3300_v48, %s5957_s8  ;;  %v229_v56 = vmul.f32 %v224_v54, %v4234_v15  ;;  %v1578_v58 = vmul.f32 %v4289_v27, %v224_v54  ;;  %s5965_s8 = smov 32  }
  0xc3   :  { %v4337_v59 = vpop.permute.xlu0 %250  ;;  %v3315_v60 = vpack.i.bf16 %v229_v56, %v228_v55  ;;  %v4339_v61 = vpop.permute.xlu1 %314  ;;  %v3320_v6 = vpack.i.bf16 %v1578_v58, %v230_v53 }
  0xc4   :  { %6035 = vst [vmem:[#allocation16_spill] sm:$0xff] %v4339_v61  ;;  %v255_v0 = vsel %vm6025_vm4, %v4337_v59, %v4311_v43  ;;  %v259_v2 = vmul.f32 %v4337_v59, %v4234_v15  ;;  %v323_v32 = vmul.f32 0.0, %v4339_v61  ;;  %vm6026_vm4 = vcmask 801792  }
  0xc5   :  { %3316 = vrot.lane.b32.xlu0 %v3315_v60, %s4126_s10  ;;  %3311 = vrot.lane.b32.xlu1 %v3310_v57, %s5961_s9  ;;  %v260_v5 = vmul.f32 %v255_v0, %v4230_v14  ;;  %v1599_v7 = vmul.f32 %v4341_v62, %v255_v0  ;;  %s4151_s9 = smov 112  }
  0xc7   :  { %v4353_v10 = vpop.permute.xlu0 %281  ;;  %v3325_v11 = vpack.i.bf16 %v260_v5, %v259_v2  ;;  %v4355_v12 = vpop.permute.xlu1 %345  ;;  %v3330_v19 = vpack.i.bf16 %v1599_v7, %v261_v63 }
  0xc8   :  { %v286_v16 = vsel %vm285_vm5, %v4353_v10, %v4325_v52  ;;  %v290_v17 = vmul.f32 %v4353_v10, %v4234_v15  ;;  %v354_v44 = vmul.f32 %v4355_v12, %v4230_v14 }
  0xc9   :  { %3326 = vrot.lane.b32.xlu0 %v3325_v11, %s4127_s11  ;;  %3321 = vrot.lane.b32.xlu1 %v3320_v6, %s4126_s10  ;;  %v291_v18 = vmul.f32 %v286_v16, %v4230_v14  ;;  %v1620_v26 = vmul.f32 %v4341_v62, %v286_v16 }
  0xcb   :  { %v4367_v28 = vpop.permute.xlu0 %312  ;;  %v3335_v29 = vpack.i.bf16 %v291_v18, %v290_v17  ;;  %v4369_v30 = vpop.permute.xlu1 %376  ;;  %v3340_v37 = vpack.i.bf16 %v1620_v26, %v292_v13 }
  0xcc   :  { %6036 = vst [vmem:[#allocation17_spill] sm:$0xff] %v4367_v28  ;;  %v317_v33 = vsel %vm316_vm6, %v4367_v28, %v4339_v61  ;;  %v321_v35 = vmul.f32 %v4367_v28, %v4234_v15  ;;  %v385_v55 = vmul.f32 %v4369_v30, %v4230_v14 }
  0xcd   :  { %3336 = vrot.lane.b32.xlu0 %v3335_v29, %s4128_s12  ;;  %3331 = vrot.lane.b32.xlu1 %v3330_v19, %s4127_s11  ;;  %v322_v36 = vmul.f32 %v317_v33, %v4230_v14  ;;  %v1641_v38 = vmul.f32 %v4341_v62, %v317_v33 }
  0xcf   :  { %v4381_v39 = vpop.permute.xlu0 %343  ;;  %v3345_v41 = vpack.i.bf16 %v322_v36, %v321_v35  ;;  %v4383_v42 = vpop.permute.xlu1 %407  ;;  %v3350_v48 = vpack.i.bf16 %v1641_v38, %v323_v32 }
  0xd0   :  { %v348_v45 = vsel %vm5903_vm7, %v4381_v39, %v4355_v12  ;;  %v352_v46 = vmul.f32 0.0, %v4381_v39  ;;  %v416_v6 = vmul.f32 %v4383_v42, %v4230_v14  ;;  %vm6032_vm7 = vcmask 416768  }
  0xd1   :  { %3346 = vrot.lane.b32.xlu0 %v3345_v41, %s4129_s13  ;;  %3341 = vrot.lane.b32.xlu1 %v3340_v37, %s4128_s12  ;;  %v353_v47 = vmul.f32 %v348_v45, %v4234_v15  ;;  %v1662_v49 = vmul.f32 %v4289_v27, %v348_v45 }
  0xd3   :  { %v4395_v51 = vpop.permute.xlu0 %374  ;;  %v3355_v53 = vpack.i.bf16 %v353_v47, %v352_v46  ;;  %v4397_v54 = vpop.permute.xlu1 %438  ;;  %v3360_v60 = vpack.i.bf16 %v1662_v49, %v354_v44 }
  0xd4   :  { %v379_v56 = vsel %vm5914_vm8, %v4395_v51, %v4369_v30  ;;  %v383_v57 = vmul.f32 0.0, %v4395_v51  ;;  %v447_v29 = vmul.f32 %v4397_v54, %v4230_v14  ;;  %vm6004_vm8 = vcmask 1039360  }
  0xd5   :  { %3356 = vrot.lane.b32.xlu0 %v3355_v53, %s4130_s14  ;;  %3351 = vrot.lane.b32.xlu1 %v3350_v48, %s4129_s13  ;;  %v384_v58 = vmul.f32 %v379_v56, %v4234_v15  ;;  %v1683_v63 = vmul.f32 %v4289_v27, %v379_v56 }
  0xd7   :  { %v4409_v0 = vpop.permute.xlu0 %405  ;;  %v3365_v2 = vpack.i.bf16 %v384_v58, %v383_v57  ;;  %v4411_v5 = vpop.permute.xlu1 %469  ;;  %v3370_v16 = vpack.i.bf16 %v1683_v63, %v385_v55 }
  0xd8   :  { %v410_v7 = vsel %vm5967_vm9, %v4409_v0, %v4383_v42  ;;  %v414_v11 = vmul.f32 0.0, %v4409_v0  ;;  %v478_v44 = vmul.f32 0.0, %v4411_v5  ;;  %vm786_vm9 = vcmask 392192  }
  0xd9   :  { %3366 = vrot.lane.b32.xlu0 %v3365_v2, %s5955_s16  ;;  %3361 = vrot.lane.b32.xlu1 %v3360_v60, %s4130_s14  ;;  %v415_v13 = vmul.f32 %v410_v7, %v4234_v15  ;;  %v1704_v17 = vmul.f32 %v4289_v27, %v410_v7 }
  0xdb   :  { %v4423_v18 = vpop.permute.xlu0 %436  ;;  %v3375_v19 = vpack.i.bf16 %v415_v13, %v414_v11  ;;  %v4425_v26 = vpop.permute.xlu1 %500  ;;  %v3380_v36 = vpack.i.bf16 %v1704_v17, %v416_v6 }
  0xdc   :  { %v441_v32 = vsel %vm5978_vm10, %v4423_v18, %v4397_v54  ;;  %v445_v33 = vmul.f32 0.0, %v4423_v18  ;;  %v509_v57 = vmul.f32 0.0, %v4425_v26  ;;  %vm5983_vm10 = vcmask 662528  }
  0xdd   :  { %3376 = vrot.lane.b32.xlu0 %v3375_v19, %s4132_s17  ;;  %3371 = vrot.lane.b32.xlu1 %v3370_v16, %s5955_s16  ;;  %v446_v35 = vmul.f32 %v441_v32, %v4234_v15  ;;  %v1725_v37 = vmul.f32 %v4289_v27, %v441_v32  ;;  %s4148_s16 = smov 48  }
  0xdf   :  { %v4437_v38 = vpop.permute.xlu0 %467  ;;  %v3385_v41 = vpack.i.bf16 %v446_v35, %v445_v33  ;;  %v3390_v48 = vpack.i.bf16 %v1725_v37, %v447_v29  ;;  %v4448_v49 = vpop.permute.xlu1 %531 }
  0xe0   :  { %v472_v45 = vsel %vm471_vm11, %v4437_v38, %v4411_v5  ;;  %v476_v46 = vmul.f32 %v4437_v38, %v4234_v15  ;;  %v540_v16 = vmul.f32 0.0, %v4448_v49 }
  0xe1   :  { %3386 = vrot.lane.b32.xlu0 %v3385_v41, %s4133_s18  ;;  %3381 = vrot.lane.b32.xlu1 %v3380_v36, %s4132_s17  ;;  %v477_v47 = vmul.f32 %v472_v45, %v4230_v14  ;;  %v1746_v53 = vmul.f32 %v4341_v62, %v472_v45 }
  0xe3   :  { %v4451_v55 = vpop.permute.xlu0 %498  ;;  %v3395_v56 = vpack.i.bf16 %v477_v47, %v476_v46  ;;  %v3400_v2 = vpack.i.bf16 %v1746_v53, %v478_v44  ;;  %v4465_v13 = vpop.permute.xlu1 %562 }
  0xe4   :  { %6037 = vst [vmem:[#allocation18_spill] sm:$0xff] %v4451_v55  ;;  %v503_v58 = vsel %vm502_vm12, %v4451_v55, %v4425_v26  ;;  %v507_v60 = vmul.f32 %v4451_v55, %v4234_v15  ;;  %v571_v37 = vmul.f32 %v4465_v13, %v4230_v14 }
  0xe5   :  { %3396 = vrot.lane.b32.xlu0 %v3395_v56, %s4134_s0  ;;  %3391 = vrot.lane.b32.xlu1 %v3390_v48, %s4133_s18  ;;  %v508_v63 = vmul.f32 %v503_v58, %v4230_v14  ;;  %v1767_v6 = vmul.f32 %v4341_v62, %v503_v58 }
  0xe7   :  { %v4463_v7 = vpop.permute.xlu0 %529  ;;  %v3405_v11 = vpack.i.bf16 %v508_v63, %v507_v60  ;;  %v3410_v32 = vpack.i.bf16 %v1767_v6, %v509_v57  ;;  %v4487_v45 = vpop.permute.xlu1 %593 }
  0xe8   :  { %6038 = vst [vmem:[#allocation19_spill] sm:$0xff] %v4463_v7  ;;  %v534_v17 = vsel %vm533_vm13, %v4463_v7, %v4448_v49  ;;  %v538_v19 = vmul.f32 %v4463_v7, %v4234_v15  ;;  %v602_v57 = vmul.f32 %v4487_v45, %v4230_v14 }
  0xe9   :  { %3406 = vrot.lane.b32.xlu0 %v3405_v11, %s4135_s15  ;;  %3401 = vrot.lane.b32.xlu1 %v3400_v2, %s4134_s0  ;;  %v539_v29 = vmul.f32 %v534_v17, %v4230_v14  ;;  %v1788_v33 = vmul.f32 %v4341_v62, %v534_v17 }
  0xeb   :  { %v4477_v35 = vpop.permute.xlu0 %560  ;;  %v3415_v36 = vpack.i.bf16 %v539_v29, %v538_v19  ;;  %v3420_v47 = vpack.i.bf16 %v1788_v33, %v540_v16  ;;  %v4502_v6 = vpop.permute.xlu1 %624 }
  0xec   :  { %v565_v41 = vsel %vm5897_vm14, %v4477_v35, %v4465_v13  ;;  %v569_v44 = vmul.f32 0.0, %v4477_v35  ;;  %v633_v19 = vmul.f32 %v4502_v6, %v4230_v14  ;;  %vm364_vm14 = vcmask 408576  }
  0xed   :  { %3416 = vrot.lane.b32.xlu0 %v3415_v36, %s4136_s2  ;;  %3411 = vrot.lane.b32.xlu1 %v3410_v32, %s4135_s15  ;;  %v570_v46 = vmul.f32 %v565_v41, %v4234_v15  ;;  %v1809_v48 = vmul.f32 %v4289_v27, %v565_v41 }
  0xef   :  { %v4491_v53 = vpop.permute.xlu0 %591  ;;  %v3425_v56 = vpack.i.bf16 %v570_v46, %v569_v44  ;;  %v3430_v2 = vpack.i.bf16 %v1809_v48, %v571_v37 }
  0xf0   :  { %v596_v58 = vsel %vm5939_vm15, %v4491_v53, %v4487_v45  ;;  %v600_v60 = vmul.f32 0.0, %v4491_v53  ;;  %vm719_vm15 = vcmask 252928  }
  0xf1   :  { %3426 = vrot.lane.b32.xlu0 %v3425_v56, %s4137_s25  ;;  %3421 = vrot.lane.b32.xlu1 %v3420_v47, %s4136_s2  ;;  %v601_v63 = vmul.f32 %v596_v58, %v4234_v15  ;;  %v1830_v11 = vmul.f32 %v4289_v27, %v596_v58 }
  0xf3   :  { %v3435_v16 = vpack.i.bf16 %v601_v63, %v600_v60  ;;  %v4505_v17 = vpop.permute.xlu0 %622  ;;  %v3440_v33 = vpack.i.bf16 %v1830_v11, %v602_v57 }
  0xf4   :  { %v627_v29 = vsel %vm5966_vm0, %v4505_v17, %v4502_v6  ;;  %v631_v32 = vmul.f32 0.0, %v4505_v17  ;;  %vm581_vm0 = vcmask 400384  }
  0xf5   :  { %3436 = vrot.lane.b32.xlu0 %v3435_v16, %s4138_s26  ;;  %3431 = vrot.lane.b32.xlu1 %v3430_v2, %s4137_s25  ;;  %v632_v36 = vmul.f32 %v627_v29, %v4234_v15  ;;  %v1851_v37 = vmul.f32 %v4289_v27, %v627_v29 }
  0xf7   :  { %v3445_v41 = vpack.i.bf16 %v632_v36, %v631_v32  ;;  %v3450_v44 = vpack.i.bf16 %v1851_v37, %v633_v19 }
  0xf9   :  { %3441 = vrot.lane.b32.xlu1 %v3440_v33, %s4138_s26  ;;  %3446 = vrot.lane.b32.xlu0 %v3445_v41, %s4139_s19 }
  0xfd   :  { %3451 = vrot.lane.b32.xlu1 %v3450_v44, %s4139_s19  ;;  %653 = vrot.lane.b32.xlu0 %v4266_v21, %s4140_s20 }
 0x101   :  { %655 = vrot.lane.b32.xlu1 %v4259_v20, %s4140_s20 }
 0x12b   :  { %v3287_v46 = vpop.permute.xlu1 %3286 }
 0x12c   :  { %v3289_v44 = vunpack.i.h.bf16 %v3287_v46  ;;  %v3288_v1 = vunpack.i.l.bf16 %v3287_v46 }
 0x12e   :  { %v148_v46 = vsel %vm6032_vm7, %v3288_v1, %v3289_v44 }
 0x12f   :  { %v4524_v47 = vpop.permute.xlu0 %3296  ;;  %v4526_v48 = vpop.permute.xlu1 %3291 }
 0x130   :  { %6039 = vst [vmem:[#allocation20_spill] sm:$0xff] %v4524_v47  ;;  %6040 = vst [vmem:[#allocation21_spill] sm:$0xff] %v4526_v48  ;;  %v3293_v41 = vunpack.i.l.bf16 %v4526_v48 }
 0x133   :  { %v4528_v56 = vpop.permute.xlu0 %3306  ;;  %v4530_v57 = vpop.permute.xlu1 %3301 }
 0x134   :  { %6041 = vst [vmem:[#allocation22_spill] sm:$0xff] %v4528_v56  ;;  %6042 = vst [vmem:[#allocation23_spill] sm:$0xff] %v4530_v57 }
 0x137   :  { %v4532_v58 = vpop.permute.xlu0 %3316  ;;  %v4534_v60 = vpop.permute.xlu1 %3311 }
 0x138   :  { %6043 = vst [vmem:[#allocation24_spill] sm:$0xff] %v4532_v58  ;;  %6044 = vst [vmem:[#allocation25_spill] sm:$0xff] %v4534_v60 }
 0x13b   :  { %v4536_v63 = vpop.permute.xlu0 %3326  ;;  %v4538_v2 = vpop.permute.xlu1 %3321 }
 0x13c   :  { %6045 = vst [vmem:[#allocation26_spill] sm:$0xff] %v4536_v63  ;;  %6046 = vst [vmem:[#allocation27_spill] sm:$0xff] %v4538_v2 }
 0x13f   :  { %v4540_v11 = vpop.permute.xlu0 %3336  ;;  %v4542_v16 = vpop.permute.xlu1 %3331 }
 0x140   :  { %6047 = vst [vmem:[#allocation28_spill] sm:$0xff] %v4540_v11  ;;  %6048 = vst [vmem:[#allocation29_spill] sm:$0xff] %v4542_v16 }
 0x143   :  { %v4544_v19 = vpop.permute.xlu0 %3346  ;;  %v4546_v29 = vpop.permute.xlu1 %3341 }
 0x144   :  { %6049 = vst [vmem:[#allocation30_spill] sm:$0xff] %v4544_v19  ;;  %6050 = vst [vmem:[#allocation31_spill] sm:$0xff] %v4546_v29  ;;  %v149_v29 = vsel %vm6032_vm7, %v3289_v44, %v3293_v41 }
 0x147   :  { %v3357_v32 = vpop.permute.xlu0 %3356  ;;  %v4548_v33 = vpop.permute.xlu1 %3351 }
 0x148   :  { %6051 = vst [vmem:[#allocation32_spill] sm:$0xff] %v4548_v33  ;;  %v3359_v36 = vunpack.i.h.bf16 %v3357_v32  ;;  %v3358_v37 = vunpack.i.l.bf16 %v3357_v32 }
 0x14a   :  { %v365_v19 = vsel %vm364_vm14, %v3358_v37, %v3359_v36 }
 0x14b   :  { %v4551_v8 = vpop.permute.xlu0 %3366  ;;  %v4553_v9 = vpop.permute.xlu1 %3361  ;;  %v3038_v2 = vpack.c.bf16 %v365_v19, %v148_v46 }
 0x14c   :  { %6052 = vst [vmem:[#allocation33_spill] sm:$0xff] %v4551_v8  ;;  %6053 = vst [vmem:[#allocation34_spill] sm:$0xff] %v4553_v9  ;;  %v3363_v16 = vunpack.i.l.bf16 %v4553_v9 }
 0x14e   :  { %v366_v33 = vsel %vm364_vm14, %v3359_v36, %v3363_v16 }
 0x14f   :  { %v4559_v11 = vpop.permute.xlu0 %3376  ;;  %v4561_v32 = vpop.permute.xlu1 %3371  ;;  %v3036_v63 = vpack.c.bf16 %v366_v33, %v149_v29 }
 0x150   :  { %6054 = vst [vmem:[#allocation35_spill] sm:$0xff] %v4559_v11  ;;  %6055 = vst [vmem:[#allocation36_spill] sm:$0xff] %v4561_v32 }
 0x151   :  { %3037 = vmatprep.subr.bf16.mxu0 %v3036_v63 }
 0x152   :  { %3039 = vmatpush1.bf16.msra.mxu0 %v3038_v2 }
 0x153   :  { %v4564_v58 = vpop.permute.xlu0 %3386  ;;  %v4566_v60 = vpop.permute.xlu1 %3381 }
 0x154   :  { %6056 = vst [vmem:[#allocation37_spill] sm:$0xff] %v4564_v58  ;;  %6057 = vst [vmem:[#allocation38_spill] sm:$0xff] %v4566_v60 }
 0x157   :  { %v4568_v28 = vpop.permute.xlu0 %3396  ;;  %v4570_v37 = vpop.permute.xlu1 %3391 }
 0x158   :  { %6058 = vst [vmem:[#allocation39_spill] sm:$0xff] %v4568_v28  ;;  %6059 = vst [vmem:[#allocation40_spill] sm:$0xff] %v4570_v37 }
 0x15b   :  { %v4572_v41 = vpop.permute.xlu0 %3406  ;;  %v4574_v16 = vpop.permute.xlu1 %3401 }
 0x15c   :  { %6060 = vst [vmem:[#allocation41_spill] sm:$0xff] %v4572_v41  ;;  %6061 = vst [vmem:[#allocation42_spill] sm:$0xff] %v4574_v16 }
 0x15f   :  { %v4576_v36 = vpop.permute.xlu0 %3416  ;;  %v4578_v29 = vpop.permute.xlu1 %3411 }
 0x160   :  { %6062 = vst [vmem:[#allocation43_spill] sm:$0xff] %v4576_v36  ;;  %6063 = vst [vmem:[#allocation44_spill] sm:$0xff] %v4578_v29 }
 0x163   :  { %v4580_v1 = vpop.permute.xlu0 %3426  ;;  %v4582_v63 = vpop.permute.xlu1 %3421 }
 0x164   :  { %6064 = vst [vmem:[#allocation45_spill] sm:$0xff] %v4582_v63 }
 0x167   :  { %v4584_v2 = vpop.permute.xlu0 %3436  ;;  %v4586_v19 = vpop.permute.xlu1 %3431 }
 0x168   :  { %6065 = vst [vmem:[#allocation46_spill] sm:$0xff] %v4584_v2  ;;  %6066 = vst [vmem:[#allocation47_spill] sm:$0xff] %v4586_v19 }
 0x16b   :  { %v4588_v33 = vpop.permute.xlu1 %3441  ;;  %v4590_v44 = vpop.permute.xlu0 %3446 }
 0x16c   :  { %6067 = vst [vmem:[#allocation48_spill] sm:$0xff] %v4588_v33  ;;  %6068 = vst [vmem:[#allocation49_spill] sm:$0xff] %v4590_v44 }
 0x16f   :  { %v4592_v46 = vpop.permute.xlu1 %3451  ;;  %v4594_v41 = vpop.permute.xlu0 %653 }
 0x170   :  { %6069 = vst [vmem:[#allocation50_spill] sm:$0xff] %v4592_v46  ;;  %6070 = vst [vmem:[#allocation51_spill] sm:$0xff] %v4594_v41  ;;  %v662_v36 = vmul.f32 0.0, %v4594_v41 }
 0x173   :  { %v4597_v29 = vpop.permute.xlu1 %655 }
 0x174   :  { %6071 = vst [vmem:[#allocation52_spill] sm:$0xff] %v4597_v29  ;;  %v658_v63 = vsel %vm6004_vm8, %v4594_v41, %v4597_v29  ;;  %v664_v16 = vmul.f32 %v4597_v29, %v4230_v14  ;;  %vm612_vm8 = vcmask 269312  }
 0x175   :  { %v1872_v37 = vmul.f32 %v4289_v27, %v658_v63  ;;  %v663_v28 = vmul.f32 %v658_v63, %v4234_v15  ;;  %v4616_v63 = vld [vmem:[#allocation2 + $0x10] sm:$0xff] }
 0x177   :  { %v3460_v58 = vpack.i.bf16 %v1872_v37, %v664_v16  ;;  %v3455_v46 = vpack.i.bf16 %v663_v28, %v662_v36 }
 0x179   :  { %3461 = vrot.lane.b32.xlu1 %v3460_v58, %s4141_s27  ;;  %3456 = vrot.lane.b32.xlu0 %v3455_v46, %s4141_s27 }
 0x17d   :  { %686 = vrot.lane.b32.xlu1 %v4259_v20, %s4142_s28  ;;  %684 = vrot.lane.b32.xlu0 %v4266_v21, %s4142_s28 }
 0x1eb   :  { %v4612_v44 = vpop.permute.xlu1 %3461  ;;  %v4614_v60 = vpop.permute.xlu0 %3456 }
 0x1ec   :  { %6072 = vst [vmem:[#allocation53_spill] sm:$0xff] %v4612_v44  ;;  %6073 = vst [vmem:[#allocation54_spill] sm:$0xff] %v4614_v60 }
 0x1ef   :  { %v4618_v28 = vpop.permute.xlu1 %686  ;;  %v4620_v37 = vpop.permute.xlu0 %684 }
 0x1f0   :  { %6074 = vst [vmem:[#allocation55_spill] sm:$0xff] %v4618_v28  ;;  %6075 = vst [vmem:[#allocation56_spill] sm:$0xff] %v4620_v37  ;;  %v695_v58 = vmul.f32 0.0, %v4618_v28  ;;  %v689_v16 = vsel %vm688_vm1, %v4620_v37, %v4618_v28  ;;  %v693_v36 = vmul.f32 %v4620_v37, %v4234_v15  ;;  %v4680_v37 = vld [vmem:[#allocation2 + $0x8] sm:$0xff] }
 0x1f1   :  { %v1893_v46 = vmul.f32 %v4616_v63, %v689_v16  ;;  %v694_v60 = vmul.f32 %v689_v16, %v4230_v14 }
 0x1f3   :  { %v3470_v44 = vpack.i.bf16 %v1893_v46, %v695_v58  ;;  %v3465_v11 = vpack.i.bf16 %v694_v60, %v693_v36 }
 0x1f5   :  { %3471 = vrot.lane.b32.xlu1 %v3470_v44, %s4143_s21  ;;  %3466 = vrot.lane.b32.xlu0 %v3465_v11, %s4143_s21 }
 0x1f9   :  { %717 = vrot.lane.b32.xlu1 %v4259_v20, %s4144_s22  ;;  %715 = vrot.lane.b32.xlu0 %v4266_v21, %s4144_s22 }
 0x267   :  { %v4636_v61 = vpop.permute.xlu1 %3471  ;;  %v4638_v56 = vpop.permute.xlu0 %3466 }
 0x268   :  { %6076 = vst [vmem:[#allocation57_spill] sm:$0xff] %v4636_v61  ;;  %6077 = vst [vmem:[#allocation58_spill] sm:$0xff] %v4638_v56 }
 0x26b   :  { %v4640_v16 = vpop.permute.xlu1 %717  ;;  %v4642_v60 = vpop.permute.xlu0 %715 }
 0x26c   :  { %6078 = vst [vmem:[#allocation59_spill] sm:$0xff] %v4640_v16  ;;  %6079 = vst [vmem:[#allocation60_spill] sm:$0xff] %v4642_v60  ;;  %v726_v44 = vmul.f32 0.0, %v4640_v16  ;;  %v720_v11 = vsel %vm719_vm15, %v4642_v60, %v4640_v16  ;;  %v724_v58 = vmul.f32 %v4642_v60, %v4234_v15 }
 0x26d   :  { %v1914_v36 = vmul.f32 %v4616_v63, %v720_v11  ;;  %v725_v46 = vmul.f32 %v720_v11, %v4230_v14 }
 0x26f   :  { %v3480_v61 = vpack.i.bf16 %v1914_v36, %v726_v44  ;;  %v3475_v56 = vpack.i.bf16 %v725_v46, %v724_v58 }
 0x271   :  { %3481 = vrot.lane.b32.xlu1 %v3480_v61, %s4145_s29  ;;  %3476 = vrot.lane.b32.xlu0 %v3475_v56, %s4145_s29 }
 0x275   :  { %748 = vrot.lane.b32.xlu1 %v4259_v20, %s4146_s30  ;;  %746 = vrot.lane.b32.xlu0 %v4266_v21, %s4146_s30 }
 0x2e3   :  { %v4658_v16 = vpop.permute.xlu1 %3481  ;;  %v4660_v60 = vpop.permute.xlu0 %3476 }
 0x2e4   :  { %6080 = vst [vmem:[#allocation61_spill] sm:$0xff] %v4658_v16  ;;  %6081 = vst [vmem:[#allocation62_spill] sm:$0xff] %v4660_v60  ;;  %v3500_v60 = vpack.i.bf16 %v4289_v27, %v4230_v14  ;;  %v6084_v16 = vmov 0.0  }
 0x2e5   :  { %v3530_v27 = vpack.i.bf16 %v4616_v63, %v6084_v16 }
 0x2e7   :  { %v4662_v11 = vpop.permute.xlu1 %748  ;;  %v4664_v44 = vpop.permute.xlu0 %746 }
 0x2e8   :  { %6082 = vst [vmem:[#allocation63_spill] sm:$0xff] %v4662_v11  ;;  %6083 = vst [vmem:[#allocation64_spill] sm:$0xff] %v4664_v44  ;;  %v757_v61 = vmul.f32 0.0, %v4662_v11  ;;  %v751_v56 = vsel %vm750_vm2, %v4664_v44, %v4662_v11  ;;  %v755_v20 = vmul.f32 %v4664_v44, %v4234_v15  ;;  %v3495_v11 = vpack.i.bf16 %v4234_v15, %v6084_v16 }
 0x2e9   :  { %v1935_v21 = vmul.f32 %v4616_v63, %v751_v56  ;;  %v756_v58 = vmul.f32 %v751_v56, %v4230_v14  ;;  %v87_v56 = vld [vmem:[#allocation9 + $0x4] ss:$8 sm:$0x3] }
 0x2ea   :  { %v4701_v16 = vrot.slane %v87_v56, %v4216_v4 }
 0x2eb   :  { %v3490_v36 = vpack.i.bf16 %v1935_v21, %v757_v61  ;;  %v3485_v46 = vpack.i.bf16 %v756_v58, %v755_v20  ;;  %v3510_v61 = vpack.i.bf16 %v4680_v37, %v4230_v14  ;;  %v3429_v58 = vunpack.i.h.bf16 %v4580_v1 }
 0x2ed   :  { %3491 = vrot.lane.b32.xlu1 %v3490_v36, %s6023_s23  ;;  %3486 = vrot.lane.b32.xlu0 %v3485_v46, %s6023_s23  ;;  %v3428_v36 = vunpack.i.l.bf16 %v4580_v1  ;;  %v3433_v46 = vunpack.i.l.bf16 %v4586_v19 }
 0x2ef   :  { %v583_v28 = vsel %vm581_vm0, %v3429_v58, %v3433_v46 }
 0x2f1   :  { %3501 = vrot.lane.b32.xlu1 %v3500_v60, %s4148_s16  ;;  %3496 = vrot.lane.b32.xlu0 %v3495_v11, %s4148_s16  ;;  %v3525_v60 = vpack.i.bf16 %v4230_v14, %v4234_v15 }
 0x2f5   :  { %3511 = vrot.lane.b32.xlu1 %v3510_v61, %s5965_s8  ;;  %3506 = vrot.lane.b32.xlu0 %v3495_v11, %s5965_s8  ;;  %s4153_s8 = smov 80  }
 0x2f9   :  { %3521 = vrot.lane.b32.xlu1 %v3510_v61, %s4150_s24  ;;  %3516 = vrot.lane.b32.xlu0 %v3495_v11, %s4150_s24  ;;  %v4704_v11 = vrot.slane %v87_v56, %v4214_v3 }
 0x2fd   :  { %3531 = vrot.lane.b32.xlu1 %v3530_v27, %s4151_s9  ;;  %3526 = vrot.lane.b32.xlu0 %v3525_v60, %s4151_s9 }
 0x301   :  { %3541 = vrot.lane.b32.xlu1 %v3530_v27, %s4152_s7  ;;  %3536 = vrot.lane.b32.xlu0 %v3525_v60, %s4152_s7 }
 0x305   :  { %3551 = vrot.lane.b32.xlu1 %v3530_v27, %s4153_s8  ;;  %3546 = vrot.lane.b32.xlu0 %v3525_v60, %s4153_s8 }
 0x309   :  { %897 = vrot.lane.b32.xlu1 %v4701_v16, %s6023_s23  ;;  %895 = vrot.lane.b32.xlu0 %v4704_v11, %s6023_s23  ;;  %s6117_s23 = smov 19  }
 0x35f   :  { %v4710_v20 = vpop.permute.xlu1 %3491  ;;  %v4712_v21 = vpop.permute.xlu0 %3486 }
 0x360   :  { %6085 = vst [vmem:[#allocation65_spill] sm:$0xff] %v4710_v20  ;;  %6086 = vst [vmem:[#allocation66_spill] sm:$0xff] %v4712_v21  ;;  %v582_v21 = vsel %vm581_vm0, %v3428_v36, %v3429_v58 }
 0x363   :  { %v4717_v61 = vpop.permute.xlu1 %3501  ;;  %v3497_v27 = vpop.permute.xlu0 %3496 }
 0x364   :  { %6087 = vst [vmem:[#allocation67_spill] sm:$0xff] %v4717_v61  ;;  %v3503_v60 = vunpack.i.l.bf16 %v4717_v61  ;;  %v3499_v56 = vunpack.i.h.bf16 %v3497_v27  ;;  %v3498_v44 = vunpack.i.l.bf16 %v3497_v27 }
 0x366   :  { %v788_v20 = vsel %vm786_vm9, %v3499_v56, %v3503_v60  ;;  %v787_v33 = vsel %vm786_vm9, %v3498_v44, %v3499_v56 }
 0x367   :  { %v4724_v1 = vpop.permute.xlu1 %3511  ;;  %v4726_v19 = vpop.permute.xlu0 %3506  ;;  %v3040_v2 = vpack.c.bf16 %v788_v20, %v583_v28  ;;  %v3042_v32 = vpack.c.bf16 %v787_v33, %v582_v21 }
 0x368   :  { %6088 = vst [vmem:[#allocation68_spill] sm:$0xff] %v4724_v1  ;;  %6089 = vst [vmem:[#allocation69_spill] sm:$0xff] %v4726_v19 }
 0x369   :  { %3041 = vmatprep.subr.bf16.mxu0 %v3040_v2 }
 0x36a   :  { %3043 = vmatpush1.bf16.msra.mxu0 %v3042_v32 }
 0x36b   :  { %v4728_v8 = vpop.permute.xlu1 %3521  ;;  %v4730_v61 = vpop.permute.xlu0 %3516 }
 0x36c   :  { %6090 = vst [vmem:[#allocation70_spill] sm:$0xff] %v4728_v8  ;;  %6091 = vst [vmem:[#allocation71_spill] sm:$0xff] %v4730_v61 }
 0x36f   :  { %v4732_v27 = vpop.permute.xlu1 %3531  ;;  %v4734_v46 = vpop.permute.xlu0 %3526 }
 0x370   :  { %6092 = vst [vmem:[#allocation72_spill] sm:$0xff] %v4732_v27  ;;  %6093 = vst [vmem:[#allocation73_spill] sm:$0xff] %v4734_v46 }
 0x373   :  { %v4736_v60 = vpop.permute.xlu1 %3541  ;;  %v4738_v58 = vpop.permute.xlu0 %3536 }
 0x374   :  { %6094 = vst [vmem:[#allocation74_spill] sm:$0xff] %v4736_v60  ;;  %6095 = vst [vmem:[#allocation75_spill] sm:$0xff] %v4738_v58 }
 0x377   :  { %v4740_v44 = vpop.permute.xlu1 %3551  ;;  %v4742_v36 = vpop.permute.xlu0 %3546 }
 0x378   :  { %6096 = vst [vmem:[#allocation76_spill] sm:$0xff] %v4740_v44  ;;  %6097 = vst [vmem:[#allocation77_spill] sm:$0xff] %v4742_v36 }
 0x37b   :  { %v4744_v33 = vpop.permute.xlu1 %897  ;;  %v4746_v32 = vpop.permute.xlu0 %895 }
 0x37c   :  { %v905_v2 = vmul.f32 %v4744_v33, %v4230_v14  ;;  %v899_v28 = vsel %vm5983_vm10, %v4746_v32, %v4744_v33  ;;  %v903_v20 = vmul.f32 0.0, %v4746_v32  ;;  %vm5989_vm10 = vcmask 793600  }
 0x37d   :  { %v904_v21 = vmul.f32 %v899_v28, %v4234_v15  ;;  %v2068_v56 = vmul.f32 %v4680_v37, %v899_v28 }
 0x37f   :  { %v3560_v44 = vpack.i.bf16 %v2068_v56, %v905_v2  ;;  %v3555_v36 = vpack.i.bf16 %v904_v21, %v903_v20 }
 0x381   :  { %3561 = vrot.lane.b32.xlu1 %v3560_v44, %s4146_s30  ;;  %3556 = vrot.lane.b32.xlu0 %v3555_v36, %s4146_s30 }
 0x385   :  { %926 = vrot.lane.b32.xlu1 %v4701_v16, %s4145_s29  ;;  %924 = vrot.lane.b32.xlu0 %v4704_v11, %s4145_s29 }
 0x3f3   :  { %v4762_v58 = vpop.permute.xlu1 %3561  ;;  %v4764_v60 = vpop.permute.xlu0 %3556 }
 0x3f7   :  { %v4766_v46 = vpop.permute.xlu1 %926  ;;  %v4768_v28 = vpop.permute.xlu0 %924 }
 0x3f8   :  { %v934_v44 = vmul.f32 %v4766_v46, %v4230_v14  ;;  %v928_v36 = vsel %vm5989_vm10, %v4768_v28, %v4766_v46  ;;  %v932_v2 = vmul.f32 0.0, %v4768_v28  ;;  %vm5994_vm10 = vcmask 924672  }
 0x3f9   :  { %v933_v20 = vmul.f32 %v928_v36, %v4234_v15  ;;  %v2089_v21 = vmul.f32 %v4680_v37, %v928_v36 }
 0x3fb   :  { %v3570_v56 = vpack.i.bf16 %v2089_v21, %v934_v44  ;;  %v3565_v27 = vpack.i.bf16 %v933_v20, %v932_v2  ;;  %v4794_v2 = vld [vmem:[#allocation2] sm:$0xff] }
 0x3fd   :  { %3571 = vrot.lane.b32.xlu1 %v3570_v56, %s4144_s22  ;;  %3566 = vrot.lane.b32.xlu0 %v3565_v27, %s4144_s22 }
 0x401   :  { %955 = vrot.lane.b32.xlu1 %v4701_v16, %s4143_s21  ;;  %953 = vrot.lane.b32.xlu0 %v4704_v11, %s4143_s21 }
 0x46f   :  { %v4784_v61 = vpop.permute.xlu1 %3571  ;;  %v4786_v8 = vpop.permute.xlu0 %3566 }
 0x470   :  { %6098 = vst [vmem:[#allocation78_spill] sm:$0xff] %v4784_v61  ;;  %6099 = vst [vmem:[#allocation79_spill] sm:$0xff] %v4786_v8 }
 0x473   :  { %v4788_v19 = vpop.permute.xlu1 %955  ;;  %v954_v36 = vpop.permute.xlu0 %953 }
 0x474   :  { %v963_v44 = vmul.f32 %v4788_v19, %v4230_v14  ;;  %v957_v27 = vsel %vm5994_vm10, %v954_v36, %v4788_v19  ;;  %v4797_v20 = vmul.f32 %v4794_v2, %v954_v36  ;;  %vm6017_vm10 = vcmask 7168  }
 0x475   :  { %v962_v21 = vmul.f32 %v957_v27, %v4234_v15  ;;  %v2110_v56 = vmul.f32 %v4680_v37, %v957_v27 }
 0x477   :  { %v3580_v8 = vpack.i.bf16 %v2110_v56, %v963_v44  ;;  %v3575_v61 = vpack.i.bf16 %v962_v21, %v4797_v20 }
 0x479   :  { %3581 = vrot.lane.b32.xlu1 %v3580_v8, %s4142_s28  ;;  %3576 = vrot.lane.b32.xlu0 %v3575_v61, %s4142_s28 }
 0x47d   :  { %984 = vrot.lane.b32.xlu1 %v4701_v16, %s4141_s27  ;;  %982 = vrot.lane.b32.xlu0 %v4704_v11, %s4141_s27 }
 0x4eb   :  { %v4808_v1 = vpop.permute.xlu1 %3581  ;;  %v4810_v36 = vpop.permute.xlu0 %3576 }
 0x4ec   :  { %6100 = vst [vmem:[#allocation80_spill] sm:$0xff] %v4808_v1  ;;  %6101 = vst [vmem:[#allocation81_spill] sm:$0xff] %v4810_v36 }
 0x4ef   :  { %v985_v57 = vpop.permute.xlu1 %984  ;;  %v4812_v27 = vpop.permute.xlu0 %982 }
 0x4f0   :  { %6102 = vst [vmem:[#allocation82_spill] sm:$0xff] %v4812_v27  ;;  %v4815_v44 = vmul.f32 %v4794_v2, %v985_v57  ;;  %v986_v8 = vsel %vm6017_vm10, %v4812_v27, %v985_v57  ;;  %v990_v61 = vmul.f32 %v4812_v27, %v4234_v15  ;;  %vm6022_vm10 = vcmask 670720  }
 0x4f1   :  { %v991_v21 = vmul.f32 %v986_v8, %v4230_v14  ;;  %v2131_v56 = vmul.f32 %v4616_v63, %v986_v8 }
 0x4f2   :  { %6103 = vst [vmem:[#allocation83_spill] sm:$0xff] %v4815_v44 }
 0x4f3   :  { %v3590_v1 = vpack.i.bf16 %v2131_v56, %v4815_v44  ;;  %v3585_v36 = vpack.i.bf16 %v991_v21, %v990_v61  ;;  %v98_v44 = vld [vmem:[#allocation9 + $0x5] ss:$8 sm:$0x3] }
 0x4f5   :  { %3591 = vrot.lane.b32.xlu1 %v3590_v1, %s4140_s20  ;;  %3586 = vrot.lane.b32.xlu0 %v3585_v36, %s4140_s20 }
 0x4f9   :  { %1013 = vrot.lane.b32.xlu1 %v4701_v16, %s4139_s19  ;;  %1011 = vrot.lane.b32.xlu0 %v4704_v11, %s4139_s19 }
 0x567   :  { %v4830_v57 = vpop.permute.xlu1 %3591  ;;  %v4832_v7 = vpop.permute.xlu0 %3586 }
 0x568   :  { %6104 = vst [vmem:[#allocation84_spill] sm:$0xff] %v4830_v57  ;;  %6105 = vst [vmem:[#allocation85_spill] sm:$0xff] %v4832_v7 }
 0x56b   :  { %v1014_v29 = vpop.permute.xlu1 %1013  ;;  %v4834_v8 = vpop.permute.xlu0 %1011 }
 0x56c   :  { %6106 = vst [vmem:[#allocation86_spill] sm:$0xff] %v4834_v8  ;;  %v4837_v61 = vmul.f32 %v4794_v2, %v1014_v29  ;;  %v1015_v1 = vsel %vm643_vm3, %v4834_v8, %v1014_v29  ;;  %v1019_v36 = vmul.f32 %v4834_v8, %v4234_v15  ;;  %v4853_v29 = vrot.slane %v98_v44, %v4216_v4 }
 0x56d   :  { %v1020_v21 = vmul.f32 %v1015_v1, %v4230_v14  ;;  %v2152_v56 = vmul.f32 %v4616_v63, %v1015_v1  ;;  %v4856_v8 = vrot.slane %v98_v44, %v4214_v3  ;;  %v109_v1 = vld [vmem:[#allocation9 + $0x6] ss:$8 sm:$0x3] }
 0x56e   :  { %6107 = vst [vmem:[#allocation87_spill] sm:$0xff] %v4837_v61 }
 0x56f   :  { %v3600_v57 = vpack.i.bf16 %v2152_v56, %v4837_v61  ;;  %v3595_v7 = vpack.i.bf16 %v1020_v21, %v1019_v36 }
 0x571   :  { %3601 = vrot.lane.b32.xlu1 %v3600_v57, %s4122_s1  ;;  %3596 = vrot.lane.b32.xlu0 %v3595_v7, %s4122_s1  ;;  %v4863_v7 = vrot.slane %v109_v1, %v4216_v4  ;;  %v4866_v57 = vrot.slane %v109_v1, %v4214_v3 }
 0x575   :  { %1042 = vrot.lane.b32.xlu1 %v4701_v16, %s4138_s26  ;;  %1040 = vrot.lane.b32.xlu0 %v4704_v11, %s4138_s26 }
 0x579   :  { %1100 = vrot.lane.b32.xlu1 %v4853_v29, %s4136_s2  ;;  %1098 = vrot.lane.b32.xlu0 %v4856_v8, %s4136_s2 }
 0x57d   :  { %1303 = vrot.lane.b32.xlu1 %v4863_v7, %s4129_s13  ;;  %1301 = vrot.lane.b32.xlu0 %v4866_v57, %s4129_s13 }
 0x5e3   :  { %v4872_v44 = vpop.permute.xlu1 %3601  ;;  %v4874_v36 = vpop.permute.xlu0 %3596 }
 0x5e4   :  { %6108 = vst [vmem:[#allocation88_spill] sm:$0xff] %v4872_v44  ;;  %6109 = vst [vmem:[#allocation89_spill] sm:$0xff] %v4874_v36 }
 0x5e7   :  { %v4876_v21 = vpop.permute.xlu1 %1042  ;;  %v4878_v56 = vpop.permute.xlu0 %1040 }
 0x5e8   :  { %6110 = vst [vmem:[#allocation90_spill] sm:$0xff] %v4876_v21  ;;  %6111 = vst [vmem:[#allocation91_spill] sm:$0xff] %v4878_v56  ;;  %v1050_v4 = vmul.f32 %v4794_v2, %v4876_v21  ;;  %v1044_v3 = vsel %vm612_vm8, %v4878_v56, %v4876_v21  ;;  %v1048_v1 = vmul.f32 %v4878_v56, %v4234_v15 }
 0x5e9   :  { %v1049_v61 = vmul.f32 %v1044_v3, %v4230_v14  ;;  %v2173_v44 = vmul.f32 %v4616_v63, %v1044_v3 }
 0x5eb   :  { %v3610_v36 = vpack.i.bf16 %v2173_v44, %v1050_v4  ;;  %v3605_v41 = vpack.i.bf16 %v1049_v61, %v1048_v1 }
 0x5ed   :  { %3611 = vrot.lane.b32.xlu1 %v3610_v36, %s4121_s6  ;;  %3606 = vrot.lane.b32.xlu0 %v3605_v41, %s4121_s6  ;;  %v1101_v41 = vpop.permute.xlu1 %1100 }
 0x5f1   :  { %1127 = vrot.lane.b32.xlu1 %v4856_v8, %s4135_s15  ;;  %1069 = vrot.lane.b32.xlu0 %v4704_v11, %s4137_s25  ;;  %v1099_v11 = vpop.permute.xlu0 %1098  ;;  %v1304_v61 = vpop.permute.xlu1 %1303 }
 0x5f2   :  { %v1102_v27 = vsel %vm6022_vm10, %v1099_v11, %v1101_v41  ;;  %vm6024_vm10 = vcmask 678912  }
 0x5f5   :  { %1330 = vrot.lane.b32.xlu1 %v4866_v57, %s4128_s12  ;;  %1129 = vrot.lane.b32.xlu0 %v4853_v29, %s4135_s15  ;;  %v1302_v44 = vpop.permute.xlu0 %1301 }
 0x5f9   :  { %1071 = vrot.lane.b32.xlu1 %v4701_v16, %s4137_s25  ;;  %1332 = vrot.lane.b32.xlu0 %v4863_v7, %s4128_s12 }
 0x5fd   :  { %1156 = vrot.lane.b32.xlu1 %v4856_v8, %s4134_s0 }
 0x601   :  { %1359 = vrot.lane.b32.xlu1 %v4866_v57, %s4127_s11 }
 0x65f   :  { %v4907_v36 = vpop.permute.xlu1 %3611  ;;  %v4911_v3 = vpop.permute.xlu0 %3606 }
 0x660   :  { %6112 = vst [vmem:[#allocation92_spill] sm:$0xff] %v4907_v36  ;;  %6113 = vst [vmem:[#allocation93_spill] sm:$0xff] %v4911_v3 }
 0x663   :  { %v4909_v4 = vpop.permute.xlu1 %1127  ;;  %v4915_v1 = vpop.permute.xlu0 %1069 }
 0x664   :  { %6114 = vst [vmem:[#allocation94_spill] sm:$0xff] %v4915_v1  ;;  %v1077_v56 = vmul.f32 %v4915_v1, %v4234_v15 }
 0x667   :  { %v4913_v16 = vpop.permute.xlu1 %1330 }
 0x66b   :  { %v4919_v21 = vpop.permute.xlu1 %1071 }
 0x66c   :  { %6115 = vst [vmem:[#allocation95_spill] sm:$0xff] %v4919_v21  ;;  %v1073_v9 = vsel %vm581_vm0, %v4915_v1, %v4919_v21  ;;  %v1079_v36 = vmul.f32 %v4794_v2, %v4919_v21  ;;  %v1108_v21 = vmul.f32 %v1101_v41, %v4230_v14  ;;  %v1106_v1 = vmul.f32 %v4794_v2, %v1099_v11 }
 0x66d   :  { %v1078_v48 = vmul.f32 %v1073_v9, %v4230_v14  ;;  %v2194_v3 = vmul.f32 %v4616_v63, %v1073_v9  ;;  %v1107_v9 = vmul.f32 %v1102_v27, %v4234_v15 }
 0x66f   :  { %v3620_v47 = vpack.i.bf16 %v2194_v3, %v1079_v36  ;;  %v3615_v55 = vpack.i.bf16 %v1078_v48, %v1077_v56  ;;  %v2215_v48 = vmul.f32 %v4680_v37, %v1102_v27  ;;  %v3625_v36 = vpack.i.bf16 %v1107_v9, %v1106_v1 }
 0x670   :  { %v1516_v27 = vmul.f32 %v4341_v62, %v4282_v24  ;;  %v1808_v24 = vmul.f32 %v4794_v2, %v4477_v35  ;;  %v2216_v3 = vmul.f32 %v4616_v63, %v1101_v41  ;;  %v1305_v9 = vsel %vm6024_vm10, %v1302_v44, %v1304_v61 }
 0x671   :  { %3621 = vrot.lane.b32.xlu1 %v3620_v47, %s6021_s5  ;;  %3616 = vrot.lane.b32.xlu0 %v3615_v55, %s6021_s5  ;;  %v1663_v55 = vmul.f32 %v4341_v62, %v4355_v12  ;;  %v1661_v47 = vmul.f32 %v4794_v2, %v4381_v39  ;;  %v3630_v56 = vpack.i.bf16 %v2215_v48, %v1108_v21  ;;  %s6116_s5 = smov 51   ;;  %vm6027_vm10 = vcmask 809984  }
 0x672   :  { %v1514_v12 = vmul.f32 %v4794_v2, %v4278_v22  ;;  %v4962_v39 = vpack.i.bf16 %v4794_v2, %v4616_v63  ;;  %v1810_v22 = vmul.f32 %v4341_v62, %v4465_v13  ;;  %v2363_v48 = vmul.f32 %v4616_v63, %v1304_v61 }
 0x673   :  { %v3640_v11 = vpack.i.bf16 %v1661_v47, %v1663_v55  ;;  %v2362_v55 = vmul.f32 %v4680_v37, %v1305_v9  ;;  %v3660_v47 = vpack.i.bf16 %v1106_v1, %v2216_v3  ;;  %v2069_v62 = vmul.f32 %v4616_v63, %v4744_v33  ;;  %v4990_v1 = vld [vmem:[#allocation2 + $0x10] sm:$0xff] }
 0x674   :  { %v3635_v21 = vpack.i.bf16 %v1514_v12, %v1516_v27  ;;  %v2067_v13 = vmul.f32 %v4794_v2, %v4746_v32  ;;  %v1311_v35 = vmul.f32 %v1304_v61, %v4230_v14  ;;  %v1309_v41 = vmul.f32 %v4794_v2, %v1302_v44 }
 0x675   :  { %1185 = vrot.lane.b32.xlu1 %v4856_v8, %s4133_s18  ;;  %1158 = vrot.lane.b32.xlu0 %v4853_v29, %s4134_s0  ;;  %v1535_v33 = vmul.f32 %v4794_v2, %v4295_v31  ;;  %v1831_v32 = vmul.f32 %v4990_v1, %v4487_v45  ;;  %v1829_v61 = vmul.f32 %v4794_v2, %v4491_v53 }
 0x676   :  { %v3680_v44 = vpack.i.bf16 %v1309_v41, %v1311_v35  ;;  %v3655_v27 = vpack.i.bf16 %v2067_v13, %v2069_v62  ;;  %v1310_v12 = vmul.f32 %v1305_v9, %v4234_v15  ;;  %v1684_v31 = vmul.f32 %v4990_v1, %v4369_v30 }
 0x677   :  { %v1682_v45 = vmul.f32 %v4794_v2, %v4395_v51  ;;  %v2090_v3 = vmul.f32 %v4616_v63, %v4766_v46  ;;  %v2088_v9 = vmul.f32 %v4794_v2, %v4768_v28  ;;  %v2382_v62 = vmul.f32 %v4794_v2, %v4913_v16 }
 0x678   :  { %v3675_v53 = vpack.i.bf16 %v1310_v12, %v1309_v41 }
 0x679   :  { %1388 = vrot.lane.b32.xlu1 %v4866_v57, %s4126_s10  ;;  %1361 = vrot.lane.b32.xlu0 %v4863_v7, %s4127_s11 }
 0x67d   :  { %3631 = vrot.lane.b32.xlu1 %v3630_v56, %s4119_s4  ;;  %3626 = vrot.lane.b32.xlu0 %v3625_v36, %s4119_s4  ;;  %v3645_v56 = vpack.i.bf16 %v1808_v24, %v1810_v22  ;;  %v3670_v36 = vpack.i.bf16 %v2363_v48, %v2362_v55  ;;  %v3690_v22 = vpack.i.bf16 %v1829_v61, %v1831_v32 }
 0x67e   :  { %v3685_v48 = vpack.i.bf16 %v1682_v45, %v1684_v31 }
 0x681   :  { %3641 = vrot.lane.b32.xlu1 %v3640_v11, %s4130_s14  ;;  %1187 = vrot.lane.b32.xlu0 %v4853_v29, %s4133_s18  ;;  %v1537_v11 = vmul.f32 %v4990_v1, %v4280_v23 }
 0x683   :  { %v3665_v23 = vpack.i.bf16 %v1535_v33, %v1537_v11  ;;  %v1703_v11 = vmul.f32 %v4794_v2, %v4409_v0  ;;  %v1556_v0 = vmul.f32 %v4794_v2, %v4309_v40  ;;  %v2111_v40 = vmul.f32 %v4616_v63, %v4788_v19 }
 0x685   :  { %1216 = vrot.lane.b32.xlu1 %v4853_v29, %s4132_s17  ;;  %1390 = vrot.lane.b32.xlu0 %v4863_v7, %s4126_s10 }
 0x689   :  { %3651 = vrot.lane.b32.xlu1 %v4962_v39, %s4148_s16  ;;  %3636 = vrot.lane.b32.xlu0 %v3635_v21, %s6116_s5  ;;  %s6118_s16 = smov 45   ;;  %v1130_v21 = vpop.permute.xlu0 %1129 }
 0x68a   :  { %v2237_v35 = vmul.f32 %v4616_v63, %v1130_v21 }
 0x68d   :  { %1419 = vrot.lane.b32.xlu1 %v4863_v7, %s6117_s23  ;;  %1214 = vrot.lane.b32.xlu0 %v4856_v8, %s4132_s17  ;;  %v1333_v24 = vpop.permute.xlu0 %1332 }
 0x68e   :  { %v1334_v30 = vsel %vm6027_vm10, %v4913_v16, %v1333_v24  ;;  %v2384_v55 = vmul.f32 %v4616_v63, %v1333_v24  ;;  %v1340_v41 = vmul.f32 %v1333_v24, %v4230_v14  ;;  %v1705_v16 = vmul.f32 %v4990_v1, %v4383_v42 }
 0x68f   :  { %v2383_v51 = vmul.f32 %v4680_v37, %v1334_v30  ;;  %v1339_v46 = vmul.f32 %v1334_v30, %v4234_v15  ;;  %v1558_v42 = vmul.f32 %v4990_v1, %v4284_v25  ;;  %v1850_v25 = vmul.f32 %v4794_v2, %v4505_v17 }
 0x690   :  { %v3730_v61 = vpack.i.bf16 %v2382_v62, %v1340_v41  ;;  %vm6028_vm10 = vcmask 941056  }
 0x691   :  { %3661 = vrot.lane.b32.xlu1 %v3660_v47, %s4119_s4  ;;  %3646 = vrot.lane.b32.xlu0 %v3645_v56, %s4137_s25  ;;  %s6119_s25 = smov 35   ;;  %s6120_s4 = smov 34   ;;  %v3700_v47 = vpack.i.bf16 %v2088_v9, %v2090_v3  ;;  %v3710_v28 = vpack.i.bf16 %v2384_v55, %v2383_v51  ;;  %v1131_v56 = vsel %vm6026_vm4, %v4909_v4, %v1130_v21  ;;  %vm6029_vm4 = vcmask 932864  }
 0x692   :  { %v2236_v13 = vmul.f32 %v4680_v37, %v1131_v56  ;;  %v1136_v33 = vmul.f32 %v1131_v56, %v4234_v15  ;;  %v1579_v9 = vmul.f32 %v4990_v1, %v4298_v34  ;;  %v5101_v34 = vmul.f32 %v4794_v2, %v4311_v43 }
 0x694   :  { %v3705_v32 = vpack.i.bf16 %v2237_v35, %v2236_v13  ;;  %v5106_v13 = vld [vmem:[#allocation2 + $0x10] sm:$0xff]  ;;  %v5108_v35 = vld [vmem:[#allocation2 + $0x8] sm:$0xff] }
 0x695   :  { %3671 = vrot.lane.b32.xlu1 %v3670_v36, %s6118_s16  ;;  %1417 = vrot.lane.b32.xlu0 %v4866_v57, %s6117_s23  ;;  %v3720_v36 = vpack.i.bf16 %v1339_v46, %v2382_v62  ;;  %v3558_v62 = vunpack.i.l.bf16 %v4764_v60  ;;  %v5112_v41 = vmul.f32 %v5108_v35, %v4337_v59 }
 0x699   :  { %3681 = vrot.lane.b32.xlu1 %v3680_v44, %s6118_s16  ;;  %3656 = vrot.lane.b32.xlu0 %v3655_v27, %s4146_s30  ;;  %v2235_v44 = vmul.f32 %v4794_v2, %v4909_v4  ;;  %s6123_s30 = smov 30   ;;  %v1137_v27 = vmul.f32 %v1130_v21, %v4230_v14  ;;  %v3735_v4 = vpack.i.bf16 %v1556_v0, %v1558_v42 }
 0x69a   :  { %v1852_v21 = vmul.f32 %v4990_v1, %v4502_v6  ;;  %v1157_v6 = vpop.permute.xlu1 %1156  ;;  %v1724_v0 = vmul.f32 %v4794_v2, %v4423_v18 }
 0x69b   :  { %v3715_v12 = vpack.i.bf16 %v1136_v33, %v2235_v44  ;;  %v1726_v33 = vmul.f32 %v4990_v1, %v4397_v54 }
 0x69c   :  { %v3745_v31 = vpack.i.bf16 %v1850_v25, %v1852_v21 }
 0x69d   :  { %3691 = vrot.lane.b32.xlu1 %v3690_v22, %s4138_s26  ;;  %3666 = vrot.lane.b32.xlu0 %v3665_v23, %s6119_s25  ;;  %s6121_s26 = smov 29   ;;  %v3740_v22 = vpack.i.bf16 %v1703_v11, %v1705_v16  ;;  %v3725_v23 = vpack.i.bf16 %v2235_v44, %v1137_v27 }
 0x6a1   :  { %1245 = vrot.lane.b32.xlu1 %v4853_v29, %s6120_s4  ;;  %3676 = vrot.lane.b32.xlu0 %v3675_v53, %s6118_s16 }
 0x6a5   :  { %1448 = vrot.lane.b32.xlu1 %v4863_v7, %s6119_s25  ;;  %3686 = vrot.lane.b32.xlu0 %v3685_v48, %s6120_s4  ;;  %v1577_v48 = vmul.f32 %v4794_v2, %v4323_v50  ;;  %v3563_v50 = vunpack.i.l.bf16 %v4762_v58 }
 0x6a7   :  { %v3775_v11 = vpack.i.bf16 %v1577_v48, %v1579_v9  ;;  %v6128_v48 = vld [vmem:[#allocation20_spill] sm:$0xff] }
 0x6a9   :  { %3701 = vrot.lane.b32.xlu1 %v3700_v47, %s4144_s22  ;;  %1243 = vrot.lane.b32.xlu0 %v4856_v8, %s6120_s4  ;;  %s6122_s22 = smov 32  }
 0x6ad   :  { %1446 = vrot.lane.b32.xlu0 %v4866_v57, %s6119_s25  ;;  %3711 = vrot.lane.b32.xlu1 %v3710_v28, %s6121_s26 }
 0x6b1   :  { %3696 = vrot.lane.b32.xlu0 %v4962_v39, %s6122_s22  ;;  %3721 = vrot.lane.b32.xlu1 %v3720_v36, %s6121_s26 }
 0x6b5   :  { %3706 = vrot.lane.b32.xlu0 %v3705_v32, %s6123_s30  ;;  %3731 = vrot.lane.b32.xlu1 %v3730_v61, %s6121_s26 }
 0x6b9   :  { %3716 = vrot.lane.b32.xlu0 %v3715_v12, %s6123_s30  ;;  %3741 = vrot.lane.b32.xlu1 %v3740_v22, %s4132_s17 }
 0x6bd   :  { %3726 = vrot.lane.b32.xlu0 %v3725_v23, %s6123_s30  ;;  %1274 = vrot.lane.b32.xlu1 %v4853_v29, %s4130_s14  ;;  %v3755_v29 = vpack.i.bf16 %v4797_v20, %v2111_v40 }
 0x6c1   :  { %3736 = vrot.lane.b32.xlu0 %v3735_v4, %s6117_s23  ;;  %3751 = vrot.lane.b32.xlu1 %v4962_v39, %s4150_s24  ;;  %v1360_v39 = vpop.permute.xlu1 %1359  ;;  %s6125_s23 = smov 13   ;;  %s6143_s24 = smov 126  }
 0x6c2   :  { %v5094_v28 = vmul.f32 %v4794_v2, %v1360_v39 }
 0x6c5   :  { %1272 = vrot.lane.b32.xlu0 %v4856_v8, %s4130_s14  ;;  %v2256_v8 = vmul.f32 %v4794_v2, %v1157_v6 }
 0x6c9   :  { %3746 = vrot.lane.b32.xlu0 %v3745_v31, %s4139_s19  ;;  %s6124_s19 = smov 14   ;;  %v5138_v31 = vmul.f32 %v5108_v35, %v4437_v38  ;;  %v5153_v38 = vmul.f32 %v4794_v2, %v4425_v26 }
 0x6cd   :  { %3756 = vrot.lane.b32.xlu0 %v3755_v29, %s4142_s28  ;;  %s6172_s28 = smov 93  }
 0x6d1   :  { %1475 = vrot.lane.b32.xlu0 %v4866_v57, %s6116_s5 }
 0x6e3   :  { %v5075_v45 = vpop.permute.xlu1 %3621  ;;  %v5077_v17 = vpop.permute.xlu0 %3616 }
 0x6e7   :  { %v5080_v53 = vpop.permute.xlu1 %1185  ;;  %v1159_v19 = vpop.permute.xlu0 %1158 }
 0x6e8   :  { %v1160_v24 = vsel %vm6029_vm4, %v1157_v6, %v1159_v19  ;;  %v2258_v57 = vmul.f32 %v4616_v63, %v1159_v19  ;;  %v3559_v63 = vunpack.i.h.bf16 %v4764_v60  ;;  %v1166_v36 = vmul.f32 %v1159_v19, %v4230_v14 }
 0x6e9   :  { %v1165_v20 = vmul.f32 %v1160_v24, %v4234_v15  ;;  %v2257_v3 = vmul.f32 %v4680_v37, %v1160_v24  ;;  %v5143_v6 = vmul.f32 %v4794_v2, %v4325_v52  ;;  %vm6030_vm4 = vcmask 15360  }
 0x6ea   :  { %v916_v12 = vsel %vm750_vm2, %v3559_v63, %v3563_v50  ;;  %v915_v54 = vsel %vm750_vm2, %v3558_v62, %v3559_v63  ;;  %v3770_v21 = vpack.i.bf16 %v2256_v8, %v1166_v36  ;;  %v3840_v52 = vpack.i.bf16 %v5112_v41, %v5101_v34  ;;  %v6130_v36 = vld [vmem:[#allocation34_spill] sm:$0xff]  ;;  %v2505_v41 = vld [vmem:[#allocation7] sm:$0xff] }
 0x6eb   :  { %v5090_v30 = vpop.permute.xlu1 %1388  ;;  %v1362_v51 = vpop.permute.xlu0 %1361  ;;  %v3760_v55 = vpack.i.bf16 %v2258_v57, %v2257_v3  ;;  %v3765_v47 = vpack.i.bf16 %v1165_v20, %v2256_v8  ;;  %v6126_v8 = vld [vmem:[#allocation82_spill] sm:$0xff]  ;;  %v3795_v20 = vpack.i.bf16 %v1724_v0, %v1726_v33 }
 0x6ec   :  { %v1363_v46 = vsel %vm6028_vm10, %v1360_v39, %v1362_v51  ;;  %v2405_v27 = vmul.f32 %v5106_v13, %v1362_v51  ;;  %v1369_v29 = vmul.f32 %v1362_v51, %v4230_v14  ;;  %vm6031_vm10 = vcmask 23552   ;;  %v6127_v3 = vld [vmem:[#allocation18_spill] sm:$0xff] }
 0x6ed   :  { %v1368_v56 = vmul.f32 %v1363_v46, %v4234_v15  ;;  %3761 = vrot.lane.b32.xlu1 %v3760_v55, %s6124_s19  ;;  %3766 = vrot.lane.b32.xlu0 %v3765_v47, %s6124_s19  ;;  %v2404_v44 = vmul.f32 %v4680_v37, %v1363_v46  ;;  %v5159_v39 = vmul.f32 %v4794_v2, %v4448_v49  ;;  %v3299_v51 = vunpack.i.h.bf16 %v6128_v48 }
 0x6ee   :  { %v2130_v19 = vmul.f32 %v4680_v37, %v6126_v8  ;;  %v5167_v26 = vmul.f32 %v5108_v35, %v6127_v3  ;;  %v3790_v57 = vpack.i.bf16 %v5094_v28, %v1369_v29 }
 0x6ef   :  { %v5115_v16 = vpop.permute.xlu1 %3631  ;;  %v3627_v43 = vpop.permute.xlu0 %3626  ;;  %v3785_v59 = vpack.i.bf16 %v1368_v56, %v5094_v28  ;;  %v3780_v18 = vpack.i.bf16 %v2405_v27, %v2404_v44  ;;  %v3298_v28 = vunpack.i.l.bf16 %v6128_v48  ;;  %v6129_v56 = vld [vmem:[#allocation21_spill] sm:$0xff]  ;;  %v6133_v27 = vld [vmem:[#allocation83_spill] sm:$0xff] }
 0x6f0   :  { %v3633_v32 = vunpack.i.l.bf16 %v5115_v16  ;;  %v3629_v60 = vunpack.i.h.bf16 %v3627_v43  ;;  %v3628_v61 = vunpack.i.l.bf16 %v3627_v43  ;;  %v3294_v50 = vunpack.i.h.bf16 %v6129_v56 }
 0x6f1   :  { %1477 = vrot.lane.b32.xlu1 %v4863_v7, %s6116_s5  ;;  %3776 = vrot.lane.b32.xlu0 %v3775_v11, %s4126_s10  ;;  %v5134_v7 = vmul.f32 %v4794_v2, %v4411_v5  ;;  %v5149_v5 = vmul.f32 %v5108_v35, %v4353_v10  ;;  %v3364_v43 = vunpack.i.h.bf16 %v6130_v36  ;;  %v6131_v11 = vld [vmem:[#allocation51_spill] sm:$0xff]  ;;  %v6137_v36 = vld [vmem:[#allocation33_spill] sm:$0xff]  ;;  %s6183_s5 = smov 78  }
 0x6f2   :  { %v1119_v22 = vsel %vm533_vm13, %v3629_v60, %v3633_v32  ;;  %v1118_v42 = vsel %vm533_vm13, %v3628_v61, %v3629_v60  ;;  %v1871_v33 = vmul.f32 %v4794_v2, %v6131_v11  ;;  %v6132_v32 = vld [vmem:[#allocation52_spill] sm:$0xff] }
 0x6f3   :  { %v3642_v23 = vpop.permute.xlu1 %3641  ;;  %v1188_v4 = vpop.permute.xlu0 %1187  ;;  %v3044_v25 = vpack.c.bf16 %v1119_v22, %v916_v12  ;;  %v3046_v40 = vpack.c.bf16 %v1118_v42, %v915_v54  ;;  %v3845_v49 = vpack.i.bf16 %v5138_v31, %v5134_v7  ;;  %v1873_v60 = vmul.f32 %v4990_v1, %v6132_v32  ;;  %v6139_v32 = vld [vmem:[#allocation46_spill] sm:$0xff] }
 0x6f4   :  { %v1189_v55 = vsel %vm6030_vm4, %v5080_v53, %v1188_v4  ;;  %v3644_v63 = vunpack.i.h.bf16 %v3642_v23  ;;  %v3643_v62 = vunpack.i.l.bf16 %v3642_v23  ;;  %v2424_v12 = vmul.f32 %v4680_v37, %v5090_v30 }
 0x6f5   :  { %3771 = vrot.lane.b32.xlu1 %v3770_v21, %s6124_s19  ;;  %3786 = vrot.lane.b32.xlu0 %v3785_v59, %s6125_s23  ;;  %v3805_v59 = vpack.i.bf16 %v2130_v19, %v6133_v27  ;;  %v2278_v22 = vmul.f32 %v5106_v13, %v1189_v55  ;;  %v5195_v0 = vmul.f32 %v4794_v2, %v1188_v4  ;;  %vm178_vm4 = vcmask 285696   ;;  %v6141_v27 = vld [vmem:[#allocation48_spill] sm:$0xff] }
 0x6f6   :  { %3045 = vmatprep.subr.bf16.mxu0 %v3044_v25  ;;  %v1674_v25 = vsel %vm364_vm14, %v3364_v43, %v3643_v62  ;;  %v1673_v29 = vsel %vm364_vm14, %v3644_v63, %v3364_v43  ;;  %v5221_v56 = vsel %vm178_vm4, %v3298_v28, %v3299_v51  ;;  %v6136_v62 = vld [vmem:[#allocation23_spill] sm:$0xff]  ;;  %v3369_v43 = vunpack.i.h.bf16 %v6137_v36 }
 0x6f7   :  { %3047 = vmatpush1.bf16.msra.mxu0 %v3046_v40  ;;  %v5163_v24 = vpop.permute.xlu1 %1216  ;;  %v1391_v10 = vpop.permute.xlu0 %1390  ;;  %v3439_v28 = vunpack.i.h.bf16 %v6139_v32  ;;  %v3444_v48 = vunpack.i.h.bf16 %v6141_v27 }
 0x6f8   :  { %v1392_v9 = vsel %vm6031_vm10, %v5090_v30, %v1391_v10  ;;  %v5179_v46 = vmul.f32 %v4794_v2, %v1391_v10  ;;  %v3800_v10 = vpack.i.bf16 %v1871_v33, %v1873_v60  ;;  %vm395_vm10 = vcmask 277504   ;;  %v6140_v60 = vld [vmem:[#allocation47_spill] sm:$0xff] }
 0x6f9   :  { %v2425_v47 = vmul.f32 %v5106_v13, %v1392_v9  ;;  %3781 = vrot.lane.b32.xlu1 %v3780_v18, %s6125_s23  ;;  %3796 = vrot.lane.b32.xlu0 %v3795_v20, %s4133_s18  ;;  %v1397_v21 = vmul.f32 %v1392_v9, %v4230_v14  ;;  %v6134_v18 = vld [vmem:[#allocation19_spill] sm:$0xff]  ;;  %v1396_v9 = vmul.f32 %v5090_v30, %v4234_v15 }
 0x6fa   :  { %v5207_v4 = vmul.f32 %v5108_v35, %v6134_v18 }
 0x6fb   :  { %v3652_v61 = vpop.permute.xlu1 %3651  ;;  %v3637_v44 = vpop.permute.xlu0 %3636  ;;  %v3815_v23 = vpack.i.bf16 %v5179_v46, %v2425_v47  ;;  %v1194_v47 = vmul.f32 %v1189_v55, %v4230_v14  ;;  %v3825_v63 = vpack.i.bf16 %v1397_v21, %v2424_v12  ;;  %v6138_v55 = vld [vmem:[#allocation36_spill] sm:$0xff] }
 0x6fc   :  { %v3639_v54 = vunpack.i.h.bf16 %v3637_v44  ;;  %v3638_v42 = vunpack.i.l.bf16 %v3637_v44  ;;  %v3654_v30 = vunpack.i.h.bf16 %v3652_v61  ;;  %v3653_v11 = vunpack.i.l.bf16 %v3652_v61 }
 0x6fd   :  { %3791 = vrot.lane.b32.xlu1 %v3790_v57, %s6125_s23  ;;  %3806 = vrot.lane.b32.xlu0 %v3805_v59, %s4140_s20  ;;  %v2277_v57 = vmul.f32 %v4680_v37, %v5080_v53  ;;  %s6135_s20 = smov 125   ;;  %v3303_v37 = vunpack.i.l.bf16 %v6136_v62  ;;  %v3373_v33 = vunpack.i.l.bf16 %v6138_v55  ;;  %v3434_v44 = vunpack.i.h.bf16 %v6140_v60 }
 0x6fe   :  { %v1527_v1 = vsel %vm6032_vm7, %v3294_v50, %v3638_v42  ;;  %v1526_v40 = vsel %vm6032_vm7, %v3639_v54, %v3294_v50  ;;  %v3810_v50 = vpack.i.bf16 %v5195_v0, %v2278_v22  ;;  %vm426_vm7 = vcmask 146432   ;;  %v6142_v54 = vld [vmem:[#allocation67_spill] sm:$0xff] }
 0x6ff   :  { %v5209_v8 = vpop.permute.xlu1 %1419  ;;  %v5211_v19 = vpop.permute.xlu0 %1214  ;;  %v3132_v20 = vpack.c.bf16 %v1674_v25, %v1527_v1  ;;  %v3134_v3 = vpack.c.bf16 %v1673_v29, %v1526_v40  ;;  %v3443_v59 = vunpack.i.l.bf16 %v6141_v27  ;;  %v3504_v42 = vunpack.i.h.bf16 %v6142_v54  ;;  %v5267_v54 = vld [vmem:[#allocation2 + $0x8] sm:$0xff] }
 0x700   :  { %v3438_v61 = vunpack.i.l.bf16 %v6139_v32  ;;  %v3820_v25 = vpack.i.bf16 %v1194_v47, %v2277_v57  ;;  %v3835_v40 = vpack.i.bf16 %v1396_v9, %v5179_v46  ;;  %v6145_v32 = vld [vmem:[#allocation56_spill] sm:$0xff] }
 0x701   :  { %3801 = vrot.lane.b32.xlu1 %v3800_v10, %s4141_s27  ;;  %3816 = vrot.lane.b32.xlu0 %v3815_v23, %s6135_s20  ;;  %v1193_v23 = vmul.f32 %v5080_v53, %v4234_v15  ;;  %v1965_v18 = vsel %vm786_vm9, %v3504_v42, %v3653_v11  ;;  %v6144_v53 = vld [vmem:[#allocation55_spill] sm:$0xff]  ;;  %v5249_v57 = vmul.f32 %v5108_v35, %v6145_v32  ;;  %s6151_s27 = smov 110  }
 0x702   :  { %3133 = vmatprep.subr.bf16.mxu1 %v3132_v20  ;;  %v1964_v20 = vsel %vm786_vm9, %v3654_v30, %v3504_v42  ;;  %v5260_v30 = vsel %vm178_vm4, %v3299_v51, %v3303_v37  ;;  %v5263_v60 = vsel %vm612_vm8, %v3439_v28, %v3443_v59  ;;  %v1218_v51 = vsel %vm426_vm7, %v5211_v19, %v5163_v24 }
 0x703   :  { %3135 = vmatpush1.bf16.msra.mxu1 %v3134_v3  ;;  %v3662_v12 = vpop.permute.xlu1 %3661  ;;  %v3647_v22 = vpop.permute.xlu0 %3646  ;;  %v5245_v3 = vmul.f32 %v4794_v2, %v6144_v53  ;;  %v5281_v37 = vsel %vm612_vm8, %v3438_v61, %v3439_v28  ;;  %v3564_v59 = vunpack.i.h.bf16 %v4762_v58  ;;  %v5295_v58 = vpack.i.bf16 %v5267_v54, %v4794_v2 }
 0x704   :  { %v3649_v21 = vunpack.i.h.bf16 %v3647_v22  ;;  %v3648_v1 = vunpack.i.l.bf16 %v3647_v22  ;;  %v3830_v22 = vpack.i.bf16 %v1193_v23, %v5195_v0  ;;  %v3664_v42 = vunpack.i.h.bf16 %v3662_v12 }
 0x705   :  { %3811 = vrot.lane.b32.xlu1 %v3810_v50, %s6143_s24  ;;  %3826 = vrot.lane.b32.xlu0 %v3825_v63, %s6135_s20  ;;  %v3304_v63 = vunpack.i.h.bf16 %v6136_v62  ;;  %v5278_v0 = vsel %vm395_vm10, %v3369_v43, %v3373_v33  ;;  %v5291_v33 = vmul.f32 %v4794_v2, %v5163_v24  ;;  %vm6202_vm9 = vcmask 105472  }
 0x706   :  { %v1821_v29 = vsel %vm581_vm0, %v3434_v44, %v3648_v1  ;;  %v1820_v10 = vsel %vm581_vm0, %v3649_v21, %v3434_v44  ;;  %v3374_v44 = vunpack.i.h.bf16 %v6138_v55  ;;  %v3663_v21 = vunpack.i.l.bf16 %v3662_v12 }
 0x707   :  { %v5251_v46 = vpop.permute.xlu1 %3671  ;;  %v5253_v9 = vpop.permute.xlu0 %1417  ;;  %v3136_v47 = vpack.c.bf16 %v1965_v18, %v1821_v29  ;;  %v3138_v50 = vpack.c.bf16 %v1964_v20, %v1820_v10  ;;  %vm209_vm0 = vcmask 154624   ;;  %v3634_v12 = vunpack.i.h.bf16 %v5115_v16  ;;  %v6146_v16 = vld [vmem:[#allocation68_spill] sm:$0xff] }
 0x708   :  { %v2299_v18 = vmul.f32 %v5106_v13, %v1218_v51  ;;  %v3674_v20 = vunpack.i.h.bf16 %v5251_v46  ;;  %v3673_v53 = vunpack.i.l.bf16 %v5251_v46 }
 0x709   :  { %3821 = vrot.lane.b32.xlu1 %v3820_v25, %s6143_s24  ;;  %3836 = vrot.lane.b32.xlu0 %v3835_v40, %s6135_s20  ;;  %v3850_v25 = vpack.i.bf16 %v5249_v57, %v5245_v3  ;;  %v2227_v24 = vsel %vm533_vm13, %v3634_v12, %v3663_v21  ;;  %v2226_v10 = vsel %vm533_vm13, %v3664_v42, %v3634_v12  ;;  %v6147_v57 = vld [vmem:[#allocation69_spill] sm:$0xff]  ;;  %v6149_v21 = vld [vmem:[#allocation79_spill] sm:$0xff]  ;;  %v6150_v12 = vld [vmem:[#allocation86_spill] sm:$0xff] }
 0x70a   :  { %3137 = vmatprep.subr.bf16.mxu1 %v3136_v47  ;;  %v5315_v42 = vld [vmem:[#allocation2 + $0x8] sm:$0xff]  ;;  %v2374_v34 = vsel %vm316_vm6, %v3673_v53, %v3674_v20 }
 0x70b   :  { %3139 = vmatpush1.bf16.msra.mxu1 %v3138_v50  ;;  %v3682_v23 = vpop.permute.xlu1 %3681  ;;  %v3657_v1 = vpop.permute.xlu0 %3656  ;;  %v6148_v50 = vld [vmem:[#allocation78_spill] sm:$0xff]  ;;  %v2151_v46 = vmul.f32 %v5315_v42, %v6150_v12 }
 0x70c   :  { %v3659_v29 = vunpack.i.h.bf16 %v3657_v1  ;;  %v3658_v28 = vunpack.i.l.bf16 %v3657_v1  ;;  %v3684_v47 = vunpack.i.h.bf16 %v3682_v23  ;;  %v6154_v55 = vunpack.i.l.bf16 %v6148_v50 }
 0x70d   :  { %3831 = vrot.lane.b32.xlu1 %v3830_v22, %s6143_s24  ;;  %3846 = vrot.lane.b32.xlu0 %v3845_v49, %s4134_s0 }
 0x70e   :  { %v2080_v3 = vsel %vm750_vm2, %v3564_v59, %v3658_v28  ;;  %v2079_v32 = vsel %vm750_vm2, %v3659_v29, %v3564_v59  ;;  %v1222_v59 = vmul.f32 %v5211_v19, %v4234_v15  ;;  %v3865_v29 = vpack.i.bf16 %v5291_v33, %v2299_v18 }
 0x70f   :  { %v5312_v1 = vpop.permute.xlu1 %3691  ;;  %v3667_v7 = vpop.permute.xlu0 %3666  ;;  %v3140_v31 = vpack.c.bf16 %v2227_v24, %v2080_v3  ;;  %v3142_v49 = vpack.c.bf16 %v2226_v10, %v2079_v32  ;;  %v5330_v24 = vmul.f32 %v4794_v2, %v5209_v8  ;;  %v5335_v10 = vsel %vm209_vm0, %v5253_v9, %v5209_v8 }
 0x710   :  { %v3668_v40 = vunpack.i.l.bf16 %v3667_v7  ;;  %v3669_v28 = vunpack.i.h.bf16 %v3667_v7  ;;  %v1223_v3 = vmul.f32 %v1218_v51, %v4230_v14  ;;  %v2705_v8 = vcombine.high %v2505_v41, %v2505_v41 }
 0x711   :  { %3841 = vrot.lane.b32.xlu1 %v3840_v52, %s4127_s11  ;;  %3856 = vrot.lane.b32.xlu0 %v5295_v58, %s4151_s9  ;;  %v2298_v52 = vmul.f32 %v5267_v54, %v5211_v19  ;;  %v2446_v20 = vmul.f32 %v5106_v13, %v5335_v10  ;;  %v3693_v11 = vunpack.i.l.bf16 %v5312_v1  ;;  %v3694_v51 = vunpack.i.h.bf16 %v5312_v1 }
 0x712   :  { %3141 = vmatprep.subr.bf16.mxu1 %v3140_v31  ;;  %v1548_v18 = vsel %vm178_vm4, %v3304_v63, %v3668_v40  ;;  %v3683_v31 = vunpack.i.l.bf16 %v3682_v23  ;;  %v3875_v40 = vpack.i.bf16 %v1222_v59, %v5291_v33  ;;  %v1547_v19 = vsel %vm178_vm4, %v3669_v28, %v3304_v63  ;;  %2917 = vmatprep.mubr.f32.mxu1 %v2705_v8 }
 0x713   :  { %3143 = vmatpush1.bf16.msra.mxu1 %v3142_v49  ;;  %v5344_v32 = vpop.permute.xlu1 %1245  ;;  %v3677_v7 = vpop.permute.xlu0 %3676  ;;  %v3144_v12 = vpack.c.bf16 %v1548_v18, %v2374_v34  ;;  %2775 = vmatprep.mubr.f32.mxu0 %v2705_v8  ;;  %v3870_v1 = vpack.i.bf16 %v1223_v3, %v2298_v52  ;;  %vm805_vm2 = vcmask 261120  }
 0x714   :  { %v3679_v61 = vunpack.i.h.bf16 %v3677_v7  ;;  %v3678_v22 = vunpack.i.l.bf16 %v3677_v7  ;;  %v6153_v7 = vunpack.i.l.bf16 %v6137_v36  ;;  %v6158_v36 = vunpack.i.l.bf16 %v6146_v16 }
 0x715   :  { %3851 = vrot.lane.b32.xlu1 %v3850_v25, %s4143_s21  ;;  %3866 = vrot.lane.b32.xlu0 %v3865_v29, %s6151_s27  ;;  %v6152_v25 = vld [vmem:[#allocation87_spill] sm:$0xff]  ;;  %s6160_s21 = smov 109  }
 0x716   :  { %3145 = vmatprep.subr.bf16.mxu1 %v3144_v12  ;;  %v1322_v23 = vsel %vm316_vm6, %v3679_v61, %v3683_v31  ;;  %v2373_v33 = vsel %vm316_vm6, %v3678_v22, %v3673_v53  ;;  %v1321_v49 = vsel %vm316_vm6, %v3684_v47, %v3679_v61  ;;  %v3860_v34 = vpack.i.bf16 %v2151_v46, %v6152_v25  ;;  %v6156_v31 = vld [vmem:[#allocation22_spill] sm:$0xff] }
 0x717   :  { %v5359_v59 = vpop.permute.xlu1 %1448  ;;  %v3687_v18 = vpop.permute.xlu0 %3686  ;;  %v3048_v29 = vpack.c.bf16 %v5260_v30, %v1322_v23  ;;  %v3146_v62 = vpack.c.bf16 %v1547_v19, %v2373_v33  ;;  %v3050_v63 = vpack.c.bf16 %v5221_v56, %v1321_v49  ;;  %v1425_v53 = vmul.f32 %v5253_v9, %v4234_v15 }
 0x718   :  { %v3689_v28 = vunpack.i.h.bf16 %v3687_v18  ;;  %v3688_v41 = vunpack.i.l.bf16 %v3687_v18  ;;  %v3885_v61 = vpack.i.bf16 %v5330_v24, %v2446_v20  ;;  %v1842_v30 = vsel %vm612_vm8, %v3444_v48, %v3693_v11 }
 0x719   :  { %3861 = vrot.lane.b32.xlu1 %v3860_v34, %s4122_s1  ;;  %3876 = vrot.lane.b32.xlu0 %v3875_v40, %s6151_s27  ;;  %v3568_v56 = vunpack.i.l.bf16 %v6149_v21  ;;  %v1841_v46 = vsel %vm612_vm8, %v3694_v51, %v3444_v48  ;;  %v396_v12 = vsel %vm395_vm10, %v6153_v7, %v3369_v43  ;;  %v3309_v48 = vunpack.i.h.bf16 %v6156_v31  ;;  %v6168_v7 = vld [vmem:[#allocation91_spill] sm:$0xff]  ;;  %s6192_s1 = smov 77  }
 0x71a   :  { %3049 = vmatprep.subr.bf16.mxu0 %v3048_v29  ;;  %3147 = vmatpush1.bf16.msra.mxu1 %v3146_v62  ;;  %v1695_v47 = vsel %vm395_vm10, %v3374_v44, %v3688_v41  ;;  %v1694_v22 = vsel %vm395_vm10, %v3689_v28, %v3374_v44  ;;  %v6155_v44 = vunpack.i.h.bf16 %v6149_v21  ;;  %v3508_v40 = vunpack.i.l.bf16 %v6147_v57  ;;  %v6165_v28 = vld [vmem:[#allocation17_spill] sm:$0xff] }
 0x71b   :  { %3051 = vmatpush1.bf16.msra.mxu0 %v3050_v63  ;;  %v3702_v52 = vpop.permute.xlu1 %3701  ;;  %v5382_v11 = vpop.permute.xlu0 %1243  ;;  %v3148_v3 = vpack.c.bf16 %v1842_v30, %v1695_v47  ;;  %v3150_v8 = vpack.c.bf16 %v1841_v46, %v1694_v22  ;;  %v6157_v20 = vpack.c.bf16 %v5263_v60, %v5278_v0  ;;  %v3054_v19 = vpack.c.bf16 %v5281_v37, %v396_v12  ;;  %v6161_v60 = vld [vmem:[#allocation59_spill] sm:$0xff]  ;;  %v6162_v37 = vld [vmem:[#allocation60_spill] sm:$0xff]  ;;  %v5453_v46 = vld [vmem:[#allocation2] sm:$0xff] }
 0x71c   :  { %v945_v27 = vsel %vm719_vm15, %v6155_v44, %v6154_v55  ;;  %v6159_v43 = vunpack.i.h.bf16 %v6147_v57  ;;  %v3308_v23 = vunpack.i.l.bf16 %v6156_v31  ;;  %v3895_v33 = vpack.i.bf16 %v1425_v53, %v5330_v24  ;;  %v6164_v63 = vld [vmem:[#allocation16_spill] sm:$0xff] }
 0x71d   :  { %3053 = vmatprep.subr.bf16.mxu0 %v6157_v20  ;;  %v2445_v49 = vmul.f32 %v5267_v54, %v5253_v9  ;;  %v1426_v18 = vmul.f32 %v5335_v10, %v4230_v14  ;;  %3871 = vrot.lane.b32.xlu1 %v3870_v1, %s6151_s27  ;;  %v1915_v0 = vmul.f32 %v4794_v2, %v6161_v60  ;;  %v3703_v47 = vunpack.i.l.bf16 %v3702_v52 }
 0x71e   :  { %v807_v51 = vsel %vm805_vm2, %v6159_v43, %v6158_v36  ;;  %3886 = vrot.lane.b32.xlu0 %v3885_v61, %s6160_s21  ;;  %v1913_v25 = vmul.f32 %v5108_v35, %v6162_v37  ;;  %3149 = vmatprep.subr.bf16.mxu1 %v3148_v3  ;;  %v6163_v24 = vmov %v6155_v44  ;;  %v3880_v62 = vpack.i.bf16 %v5149_v5, %v5143_v6 }
 0x71f   :  { %v3056_v34 = vpack.c.bf16 %v945_v27, %v807_v51  ;;  %v944_v29 = vsel %vm719_vm15, %v3568_v56, %v6163_v24  ;;  %3055 = vmatpush1.bf16.msra.mxu0 %v3054_v19  ;;  %3151 = vmatpush1.bf16.msra.mxu1 %v3150_v8  ;;  %v5420_v9 = vpop.permute.xlu1 %3711  ;;  %v5422_v10 = vpop.permute.xlu0 %1446  ;;  %v5428_v1 = vmul.f32 %v4794_v2, %v6164_v63  ;;  %v3704_v56 = vunpack.i.h.bf16 %v3702_v52  ;;  %v6167_v52 = vld [vmem:[#allocation90_spill] sm:$0xff] }
 0x720   :  { %v5432_v41 = vmul.f32 %v5108_v35, %v6165_v28  ;;  %v6166_v21 = vmov %v6159_v43  ;;  %v3900_v61 = vpack.i.bf16 %v5167_v26, %v5153_v38  ;;  %v3890_v30 = vpack.i.bf16 %v1426_v18, %v2445_v49  ;;  %v6170_v49 = vld [vmem:[#allocation35_spill] sm:$0xff] }
 0x721   :  { %3057 = vmatprep.subr.bf16.mxu0 %v3056_v34  ;;  %v806_v53 = vsel %vm805_vm2, %v3508_v40, %v6166_v21  ;;  %3881 = vrot.lane.b32.xlu1 %v3880_v62, %s4128_s12  ;;  %v1450_v6 = vsel %vm178_vm4, %v5422_v10, %v5359_v59  ;;  %v3905_v5 = vpack.i.bf16 %v1913_v25, %v1915_v0  ;;  %v3514_v26 = vunpack.i.h.bf16 %v6146_v16  ;;  %v6169_v40 = vld [vmem:[#allocation25_spill] sm:$0xff] }
 0x722   :  { %3896 = vrot.lane.b32.xlu0 %v3895_v33, %s6160_s21  ;;  %v3058_v2 = vpack.c.bf16 %v944_v29, %v806_v53  ;;  %v3955_v57 = vpack.i.bf16 %v5207_v4, %v5159_v39  ;;  %v5449_v38 = vsel %vm209_vm0, %v3308_v23, %v3309_v48  ;;  %v3574_v22 = vunpack.i.h.bf16 %v6148_v50 }
 0x723   :  { %v2174_v3 = vmul.f32 %v5453_v46, %v6167_v52  ;;  %v2172_v12 = vmul.f32 %v5315_v42, %v6168_v7  ;;  %v5459_v8 = vpop.permute.xlu1 %3721  ;;  %v3697_v55 = vpop.permute.xlu0 %3696  ;;  %v5463_v44 = vmul.f32 %v5453_v46, %v5359_v59  ;;  %v1247_v16 = vsel %vm395_vm10, %v5382_v11, %v5344_v32  ;;  %vm6203_vm10 = vmmov %vm6202_vm9 }
 0x724   :  { %3059 = vmatpush1.bf16.msra.mxu0 %v3058_v2  ;;  %v3699_v50 = vunpack.i.h.bf16 %v3697_v55  ;;  %v3698_v27 = vunpack.i.l.bf16 %v3697_v55  ;;  %v3313_v20 = vunpack.i.l.bf16 %v6169_v40  ;;  %v2467_v19 = vmul.f32 %v5106_v13, %v1450_v6 }
 0x725   :  { %3891 = vrot.lane.b32.xlu1 %v3890_v30, %s6160_s21  ;;  %v2101_v36 = vsel %vm719_vm15, %v3574_v22, %v3703_v47  ;;  %v2100_v43 = vsel %vm719_vm15, %v3704_v56, %v3574_v22  ;;  %v3714_v59 = vunpack.i.h.bf16 %v5420_v9  ;;  %v3713_v51 = vunpack.i.l.bf16 %v5420_v9  ;;  %v6171_v30 = vld [vmem:[#allocation38_spill] sm:$0xff]  ;;  %vm6210_vm15 = vmmov %vm6202_vm9 }
 0x726   :  { %3906 = vrot.lane.b32.xlu0 %v3905_v5, %s4145_s29  ;;  %v1983_v23 = vsel %vm805_vm2, %v3514_v26, %v3698_v27  ;;  %v1982_v33 = vsel %vm805_vm2, %v3699_v50, %v3514_v26  ;;  %v3379_v18 = vunpack.i.h.bf16 %v6170_v49  ;;  %v3915_v37 = vpack.i.bf16 %v2172_v12, %v2174_v3  ;;  %s6173_s29 = smov 94  }
 0x727   :  { %v3732_v60 = vpop.permute.xlu1 %3731  ;;  %v3707_v0 = vpop.permute.xlu0 %3706  ;;  %v3152_v25 = vpack.c.bf16 %v2101_v36, %v1983_v23  ;;  %v3154_v34 = vpack.c.bf16 %v2100_v43, %v1982_v33  ;;  %v5481_v24 = vmul.f32 %v5453_v46, %v5344_v32  ;;  %v2320_v29 = vmul.f32 %v5106_v13, %v1247_v16 }
 0x728   :  { %v3709_v62 = vunpack.i.h.bf16 %v3707_v0  ;;  %v3708_v63 = vunpack.i.l.bf16 %v3707_v0  ;;  %v3378_v9 = vunpack.i.l.bf16 %v6170_v49  ;;  %v2466_v28 = vmul.f32 %v5267_v54, %v5422_v10 }
 0x729   :  { %v3925_v21 = vpack.i.bf16 %v5463_v44, %v2467_v19  ;;  %v1455_v53 = vmul.f32 %v1450_v6, %v4230_v14  ;;  %3901 = vrot.lane.b32.xlu1 %v3900_v61, %s4135_s15  ;;  %v3383_v32 = vunpack.i.l.bf16 %v6171_v30  ;;  %v3723_v56 = vunpack.i.l.bf16 %v5459_v8  ;;  %3153 = vmatprep.subr.bf16.mxu1 %v3152_v25 }
 0x72a   :  { %3916 = vrot.lane.b32.xlu0 %v3915_v37, %s4121_s6  ;;  %v2248_v47 = vsel %vm502_vm12, %v3708_v63, %v3709_v62  ;;  %v2395_v2 = vsel %vm285_vm5, %v3713_v51, %v3714_v59  ;;  %v3314_v5 = vunpack.i.h.bf16 %v6169_v40  ;;  %3155 = vmatpush1.bf16.msra.mxu1 %v3154_v34  ;;  %v5499_v6 = vsel %vm209_vm0, %v3309_v48, %v3313_v20  ;;  %s6184_s6 = smov 79  }
 0x72b   :  { %v3742_v26 = vpop.permute.xlu1 %3741  ;;  %v3717_v22 = vpop.permute.xlu0 %3716  ;;  %v3156_v52 = vpack.c.bf16 %v2395_v2, %v2248_v47  ;;  %v2319_v61 = vmul.f32 %v5267_v54, %v5382_v11  ;;  %v3920_v3 = vpack.i.bf16 %v5481_v24, %v2320_v29  ;;  %v1252_v7 = vmul.f32 %v1247_v16, %v4230_v14  ;;  %v6174_v29 = vld [vmem:[#allocation70_spill] sm:$0xff] }
 0x72c   :  { %v3718_v12 = vunpack.i.l.bf16 %v3717_v22  ;;  %v1454_v55 = vmul.f32 %v5422_v10, %v4234_v15  ;;  %v3935_v50 = vpack.i.bf16 %v1455_v53, %v2466_v28  ;;  %v3734_v27 = vunpack.i.h.bf16 %v3732_v60  ;;  %v6177_v2 = vld [vmem:[#allocation50_spill] sm:$0xff] }
 0x72d   :  { %v3733_v40 = vunpack.i.l.bf16 %v3732_v60  ;;  %3911 = vrot.lane.b32.xlu1 %v5295_v58, %s4152_s7  ;;  %3157 = vmatprep.subr.bf16.mxu1 %v3156_v52  ;;  %v2394_v48 = vsel %vm285_vm5, %v3723_v56, %v3713_v51  ;;  %v428_v20 = vsel %vm426_vm7, %v3379_v18, %v3383_v32  ;;  %v5514_v16 = vsel %vm426_vm7, %v3378_v9, %v3379_v18  ;;  %v6176_v56 = vld [vmem:[#allocation49_spill] sm:$0xff]  ;;  %s4154_s7 = smov [#allocation10]  }
 0x72e   :  { %3926 = vrot.lane.b32.xlu0 %v3925_v21, %s6172_s28  ;;  %v2247_v31 = vsel %vm502_vm12, %v3718_v12, %v3708_v63  ;;  %v1251_v10 = vmul.f32 %v5382_v11, %v4234_v15  ;;  %v3724_v19 = vunpack.i.h.bf16 %v5459_v8  ;;  %v3930_v59 = vpack.i.bf16 %v1252_v7, %v2319_v61  ;;  %v6175_v63 = vld [vmem:[#allocation71_spill] sm:$0xff] }
 0x72f   :  { %v3727_v36 = vpop.permute.xlu0 %3726  ;;  %v3158_v43 = vpack.c.bf16 %v2394_v48, %v2247_v31  ;;  %v3719_v23 = vunpack.i.h.bf16 %v3717_v22  ;;  %v1275_v33 = vpop.permute.xlu1 %1274  ;;  %v3384_v0 = vunpack.i.h.bf16 %v6171_v30  ;;  %v3945_v51 = vpack.i.bf16 %v1454_v55, %v5463_v44  ;;  %v6178_v31 = vld [vmem:[#allocation63_spill] sm:$0xff] }
 0x730   :  { %v3729_v49 = vunpack.i.h.bf16 %v3727_v36  ;;  %v3728_v60 = vunpack.i.l.bf16 %v3727_v36  ;;  %v1351_v18 = vsel %vm285_vm5, %v3724_v19, %v3733_v40  ;;  %v1350_v11 = vsel %vm285_vm5, %v3734_v27, %v3724_v19 }
 0x731   :  { %3921 = vrot.lane.b32.xlu1 %v3920_v3, %s6173_s29  ;;  %v3744_v8 = vunpack.i.h.bf16 %v3742_v26  ;;  %v3743_v37 = vunpack.i.l.bf16 %v3742_v26  ;;  %3159 = vmatpush1.bf16.msra.mxu1 %v3158_v43  ;;  %v3523_v62 = vunpack.i.l.bf16 %v6174_v29  ;;  %v3519_v9 = vunpack.i.h.bf16 %v6175_v63 }
 0x732   :  { %3936 = vrot.lane.b32.xlu0 %v3935_v50, %s6172_s28  ;;  %v1148_v25 = vsel %vm502_vm12, %v3719_v23, %v3728_v60  ;;  %v1147_v34 = vsel %vm502_vm12, %v3729_v49, %v3719_v23  ;;  %v3064_v32 = vpack.c.bf16 %v428_v20, %v5499_v6  ;;  %vm824_vm4 = vcmask 130048   ;;  %v6179_v20 = vld [vmem:[#allocation64_spill] sm:$0xff] }
 0x733   :  { %v3737_v44 = vpop.permute.xlu0 %3736  ;;  %v3060_v28 = vpack.c.bf16 %v1351_v18, %v1148_v25  ;;  %v3062_v21 = vpack.c.bf16 %v1350_v11, %v1147_v34  ;;  %v3449_v47 = vunpack.i.h.bf16 %v6176_v56  ;;  %v3453_v26 = vunpack.i.l.bf16 %v6177_v2  ;;  %v3752_v61 = vpop.permute.xlu1 %3751  ;;  %v6180_v34 = vld [vmem:[#allocation94_spill] sm:$0xff] }
 0x734   :  { %v3739_v53 = vunpack.i.h.bf16 %v3737_v44  ;;  %v3738_v30 = vunpack.i.l.bf16 %v3737_v44  ;;  %v3518_v22 = vunpack.i.l.bf16 %v6175_v63  ;;  %v3940_v52 = vpack.i.bf16 %v1251_v10, %v5481_v24 }
 0x735   :  { %3931 = vrot.lane.b32.xlu1 %v3930_v59, %s6173_s29  ;;  %3061 = vmatprep.subr.bf16.mxu0 %v3060_v28  ;;  %v1716_v7 = vsel %vm426_vm7, %v3384_v0, %v3743_v37  ;;  %v1715_v12 = vsel %vm426_vm7, %v3744_v8, %v3384_v0  ;;  %v3448_v55 = vunpack.i.l.bf16 %v6176_v56  ;;  %v826_v40 = vsel %vm824_vm4, %v3519_v9, %v3523_v62  ;;  %v6181_v62 = vld [vmem:[#allocation95_spill] sm:$0xff] }
 0x736   :  { %3946 = vrot.lane.b32.xlu0 %v3945_v51, %s6172_s28  ;;  %v1569_v3 = vsel %vm209_vm0, %v3314_v5, %v3738_v30  ;;  %v1568_v6 = vsel %vm209_vm0, %v3739_v53, %v3314_v5  ;;  %3063 = vmatpush1.bf16.msra.mxu0 %v3062_v21  ;;  %v1936_v48 = vmul.f32 %v5453_v46, %v6178_v31  ;;  %v3754_v36 = vunpack.i.h.bf16 %v3752_v61 }
 0x737   :  { %v1273_v50 = vpop.permute.xlu0 %1272  ;;  %v3160_v27 = vpack.c.bf16 %v1716_v7, %v1569_v3  ;;  %v3162_v24 = vpack.c.bf16 %v1715_v12, %v1568_v6  ;;  %v1934_v10 = vmul.f32 %v5108_v35, %v6179_v20  ;;  %3065 = vmatprep.subr.bf16.mxu0 %v3064_v32  ;;  %v3066_v5 = vpack.c.bf16 %v5514_v16, %v5449_v38  ;;  %v6186_v6 = vld [vmem:[#allocation24_spill] sm:$0xff]  ;;  %v6188_v20 = vld [vmem:[#allocation37_spill] sm:$0xff] }
 0x738   :  { %v1276_v19 = vsel %vm364_vm14, %v1273_v50, %v1275_v33  ;;  %v3753_v43 = vunpack.i.l.bf16 %v3752_v61  ;;  %v645_v59 = vsel %vm643_vm3, %v3449_v47, %v3453_v26  ;;  %v825_v23 = vsel %vm824_vm4, %v3518_v22, %v3519_v9  ;;  %v6185_v22 = vld [vmem:[#allocation80_spill] sm:$0xff]  ;;  %vm6209_vm14 = vmmov %vm6202_vm9 }
 0x739   :  { %3941 = vrot.lane.b32.xlu1 %v3940_v52, %s6173_s29  ;;  %v2342_v35 = vmul.f32 %v5453_v46, %v1275_v33  ;;  %v2341_v49 = vmul.f32 %v5106_v13, %v1276_v19  ;;  %3161 = vmatprep.subr.bf16.mxu1 %v3160_v27  ;;  %v3068_v60 = vpack.c.bf16 %v826_v40, %v645_v59  ;;  %v3454_v38 = vunpack.i.h.bf16 %v6177_v2 }
 0x73a   :  { %3956 = vrot.lane.b32.xlu0 %v3955_v57, %s4136_s2  ;;  %v3524_v16 = vunpack.i.h.bf16 %v6174_v29  ;;  %3067 = vmatpush1.bf16.msra.mxu0 %v3066_v5  ;;  %v3950_v39 = vpack.i.bf16 %v5432_v41, %v5428_v1  ;;  %v644_v4 = vsel %vm643_vm3, %v3448_v55, %v3449_v47  ;;  %v3960_v18 = vpack.i.bf16 %v1934_v10, %v1936_v48  ;;  %s6182_s2 = smov 81  }
 0x73b   :  { %3163 = vmatpush1.bf16.msra.mxu1 %v3162_v24  ;;  %v3747_v0 = vpop.permute.xlu0 %3746  ;;  %3069 = vmatprep.subr.bf16.mxu0 %v3068_v60  ;;  %v3070_v33 = vpack.c.bf16 %v825_v23, %v644_v4  ;;  %v1280_v37 = vmul.f32 %v1273_v50, %v4234_v15  ;;  %v3975_v25 = vpack.i.bf16 %v2342_v35, %v2341_v49  ;;  %v3584_v52 = vunpack.i.h.bf16 %v6185_v22  ;;  %v6190_v60 = vld [vmem:[#allocation81_spill] sm:$0xff] }
 0x73c   :  { %v3749_v57 = vunpack.i.h.bf16 %v3747_v0  ;;  %v3748_v51 = vunpack.i.l.bf16 %v3747_v0  ;;  %v2001_v11 = vsel %vm824_vm4, %v3524_v16, %v3753_v43  ;;  %v2000_v8 = vsel %vm824_vm4, %v3754_v36, %v3524_v16 }
 0x73d   :  { %3951 = vrot.lane.b32.xlu1 %v3950_v39, %s4129_s13  ;;  %v2193_v29 = vmul.f32 %v5315_v42, %v6180_v34  ;;  %v2195_v63 = vmul.f32 %v5453_v46, %v6181_v62  ;;  %v2340_v44 = vmul.f32 %v5267_v54, %v1273_v50  ;;  %v1281_v28 = vmul.f32 %v1276_v19, %v4230_v14  ;;  %v6187_v50 = vld [vmem:[#allocation27_spill] sm:$0xff]  ;;  %v6191_v39 = vld [vmem:[#allocation26_spill] sm:$0xff] }
 0x73e   :  { %3966 = vrot.lane.b32.xlu0 %v5295_v58, %s4153_s8  ;;  %v1863_v1 = vsel %vm643_vm3, %v3454_v38, %v3748_v51  ;;  %v1862_v41 = vsel %vm643_vm3, %v3749_v57, %v3454_v38  ;;  %3071 = vmatpush1.bf16.msra.mxu0 %v3070_v33  ;;  %v3985_v21 = vpack.i.bf16 %v1280_v37, %v2342_v35  ;;  %v3319_v12 = vunpack.i.h.bf16 %v6186_v6  ;;  %v6194_v33 = vld [vmem:[#allocation39_spill] sm:$0xff]  ;;  %s3024_s8 = sshll.u32 %s4154_s7, 4  ;;  %s3025_s8 = int_to_ptr.vmem [resolvable:$true] %s3024_s8 }
 0x73f   :  { %v3164_v9 = vpack.c.bf16 %v2001_v11, %v1863_v1  ;;  %v3166_v58 = vpack.c.bf16 %v2000_v8, %v1862_v41  ;;  %v3970_v53 = vpack.i.bf16 %v2193_v29, %v2195_v63  ;;  %v3980_v30 = vpack.i.bf16 %v1281_v28, %v2340_v44  ;;  %v3757_v42 = vpop.permute.xlu0 %3756  ;;  %v6195_v11 = vld [vmem:[#allocation40_spill] sm:$0xff]  ;;  %s4074_s9 = scalar_lea.vmem %s3025_s8, 256  ;;  %p4079_p11 = scmp.lt.s32.totalorder %s3025_s8, %s3025_s8 }
 0x740   :  { %v3759_v56 = vunpack.i.h.bf16 %v3757_v42  ;;  %v3758_v47 = vunpack.i.l.bf16 %v3757_v42  ;;  %v3318_v55 = vunpack.i.l.bf16 %v6186_v6  ;;  %v3323_v27 = vunpack.i.l.bf16 %v6187_v50  ;;  %v6198_v42 = vld [vmem:[#allocation53_spill] sm:$0xff]  ;;  %p4075_p10 = scmp.ne.s32.totalorder %s3025_s8, %s4074_s9  ;;  %p4080_p12 = scmp.lt.s32.totalorder %s4074_s9, %s4074_s9 }
 0x741   :  { %3961 = vrot.lane.b32.xlu1 %v3960_v18, %s6182_s2  ;;  %3165 = vmatprep.subr.bf16.mxu1 %v3164_v9  ;;  %v3389_v10 = vunpack.i.h.bf16 %v6188_v20  ;;  %v3388_v19 = vunpack.i.l.bf16 %v6188_v20  ;;  %vm6189_vm3 = vcmask 416768   ;;  %v3583_v49 = vunpack.i.l.bf16 %v6185_v22 }
 0x742   :  { %3167 = vmatpush1.bf16.msra.mxu1 %v3166_v58  ;;  %3976 = vrot.lane.b32.xlu0 %v3975_v25, %s6183_s5  ;;  %v2122_v24 = vsel %vm688_vm1, %v3584_v52, %v3758_v47  ;;  %v2121_v31 = vsel %vm688_vm1, %v3759_v56, %v3584_v52  ;;  %v3579_v38 = vunpack.i.h.bf16 %v6190_v60  ;;  %v3578_v16 = vunpack.i.l.bf16 %v6190_v60  ;;  %v6199_v47 = vld [vmem:[#allocation54_spill] sm:$0xff]  ;;  %p4081_p13 = por %p4080_p12, %p4079_p11 }
 0x743   :  { %v5582_v32 = vpop.permute.xlu0 %1475  ;;  %v3329_v4 = vunpack.i.h.bf16 %v6191_v39  ;;  %v3328_v57 = vunpack.i.l.bf16 %v6191_v39  ;;  %v3324_v51 = vunpack.i.h.bf16 %v6187_v50  ;;  %vm6193_vm5 = vcmask 23552  }
 0x744   :  { %v3399_v18 = vunpack.i.h.bf16 %v6194_v33  ;;  %v3393_v8 = vunpack.i.l.bf16 %v6195_v11  ;;  %vm6196_vm6 = vmmov %vm6193_vm5  ;;  %vm6197_vm7 = vcmask 15360   ;;  %v2487_v63 = vmul.f32 %v5267_v54, %v5582_v32  ;;  %p4082_p0 = pnand %p4081_p13, %p4075_p10 }
 0x745   :  { %3971 = vrot.lane.b32.xlu1 %v3970_v53, %s6184_s6  ;;  %v5612_v25 = vsel %vm6196_vm6, %v3319_v12, %v3323_v27  ;;  %v5617_v1 = vsel %vm6197_vm7, %v3388_v19, %v3389_v10  ;;  %v974_v58 = vsel %vm688_vm1, %v3579_v38, %v3583_v49  ;;  %v973_v44 = vsel %vm688_vm1, %v3578_v16, %v3579_v38  ;;  %vm6200_vm1 = vmmov %vm6193_vm5  ;;  %v6207_v16 = vld [vmem:[#allocation84_spill] sm:$0xff] }
 0x746   :  { %3986 = vrot.lane.b32.xlu0 %v3985_v21, %s6183_s5  ;;  %v3463_v56 = vunpack.i.l.bf16 %v6198_v42  ;;  %v3394_v50 = vunpack.i.h.bf16 %v6195_v11  ;;  %vm6201_vm8 = vmmov %vm6200_vm1  ;;  %vm6205_vm12 = vcmask 7168   ;;  %v6208_v11 = vld [vmem:[#allocation85_spill] sm:$0xff]  ;;  %vm6212_vm2 = vcmask 1039360  }
 0x747   :  { %vm6206_vm13 = vmmov %vm6205_vm12 }
 0x748   :  { %vm6211_vm0 = vmmov %vm6197_vm7 }
 0x749   :  { %3981 = vrot.lane.b32.xlu1 %v3980_v30, %s6183_s5  ;;  %vm6213_vm4 = vmmov %vm6205_vm12 }
 0x74a   :  { %vm6216_vm6 = vmmov %vm6212_vm2 }
 0x75f   :  { %v3762_v2 = vpop.permute.xlu1 %3761  ;;  %v3767_v26 = vpop.permute.xlu0 %3766 }
 0x760   :  { %v3764_v61 = vunpack.i.h.bf16 %v3762_v2  ;;  %v3763_v3 = vunpack.i.l.bf16 %v3762_v2  ;;  %v3768_v7 = vunpack.i.l.bf16 %v3767_v26  ;;  %v3769_v41 = vunpack.i.h.bf16 %v3767_v26 }
 0x761   :  { %v3459_v2 = vunpack.i.h.bf16 %v6199_v47 }
 0x762   :  { %v2269_v40 = vsel %vm471_vm11, %v3763_v3, %v3764_v61  ;;  %v2268_v48 = vsel %vm471_vm11, %v3768_v7, %v3763_v3  ;;  %v3458_v3 = vunpack.i.l.bf16 %v6199_v47  ;;  %v1483_v7 = vmul.f32 %v5582_v32, %v4234_v15 }
 0x763   :  { %v1478_v5 = vpop.permute.xlu1 %1477  ;;  %v3777_v36 = vpop.permute.xlu0 %3776  ;;  %v3168_v43 = vpack.c.bf16 %v2269_v40, %v2122_v24  ;;  %v3170_v59 = vpack.c.bf16 %v2268_v48, %v2121_v31  ;;  %v676_v60 = vsel %vm6205_vm12, %v3459_v2, %v3463_v56  ;;  %vm6226_vm12 = vcmask 809984  }
 0x764   :  { %v1479_v23 = vsel %vm6189_vm3, %v5582_v32, %v1478_v5  ;;  %v2489_v35 = vmul.f32 %v5453_v46, %v1478_v5  ;;  %v5606_v46 = vsel %vm6193_vm5, %v3318_v55, %v3319_v12  ;;  %v3779_v9 = vunpack.i.h.bf16 %v3777_v36  ;;  %vm6214_vm3 = vmmov %vm6211_vm0 }
 0x765   :  { %v2488_v0 = vmul.f32 %v5106_v13, %v1479_v23  ;;  %3169 = vmatprep.subr.bf16.mxu1 %v3168_v43  ;;  %v1484_v34 = vmul.f32 %v1479_v23, %v4230_v14  ;;  %v3778_v28 = vunpack.i.l.bf16 %v3777_v36  ;;  %v3398_v55 = vunpack.i.l.bf16 %v6194_v33  ;;  %vm6215_vm5 = vmmov %vm6213_vm4  ;;  %v6234_v33 = vld [vmem:[#allocation72_spill] sm:$0xff] }
 0x766   :  { %2497 = vrot.lane.b32.xlu0 %v2489_v35, %s6192_s1  ;;  %3171 = vmatpush1.bf16.msra.mxu1 %v3170_v59  ;;  %v1589_v27 = vsel %vm6200_vm1, %v3779_v9, %v3324_v51  ;;  %v3464_v32 = vunpack.i.h.bf16 %v6198_v42  ;;  %v675_v38 = vsel %vm6206_vm13, %v3458_v3, %v3459_v2  ;;  %vm6218_vm1 = vmmov %vm6212_vm2  ;;  %vm6227_vm13 = vcmask 941056  }
 0x767   :  { %v3772_v37 = vpop.permute.xlu1 %3771  ;;  %2495 = vrot.lane.b32.xlu1 %v2488_v0, %s6192_s1  ;;  %v3787_v13 = vpop.permute.xlu0 %3786  ;;  %v1590_v40 = vsel %vm6201_vm8, %v3324_v51, %v3778_v28  ;;  %v3594_v0 = vunpack.i.h.bf16 %v6207_v16  ;;  %v3593_v51 = vunpack.i.l.bf16 %v6207_v16  ;;  %v3082_v42 = vpack.c.bf16 %v675_v38, %v5617_v1 }
 0x768   :  { %v3774_v29 = vunpack.i.h.bf16 %v3772_v37  ;;  %v3773_v62 = vunpack.i.l.bf16 %v3772_v37  ;;  %v3788_v21 = vunpack.i.l.bf16 %v3787_v13  ;;  %v3789_v24 = vunpack.i.h.bf16 %v3787_v13 }
 0x769   :  { %v3589_v37 = vunpack.i.h.bf16 %v6208_v11  ;;  %vm6219_vm8 = vcmask 1022976  }
 0x76a   :  { %1491 = vrot.lane.b32.xlu0 %v1484_v34, %s6192_s1  ;;  %v1177_v53 = vsel %vm471_vm11, %v3769_v41, %v3773_v62  ;;  %v1176_v30 = vsel %vm471_vm11, %v3774_v29, %v3769_v41  ;;  %vm6204_vm11 = vmmov %vm6197_vm7 }
 0x76b   :  { %v3782_v26 = vpop.permute.xlu1 %3781  ;;  %2493 = vrot.lane.b32.xlu1 %v2487_v63, %s6192_s1  ;;  %v3797_v22 = vpop.permute.xlu0 %3796  ;;  %v3072_v52 = vpack.c.bf16 %v1177_v53, %v974_v58  ;;  %v3074_v61 = vpack.c.bf16 %v1176_v30, %v973_v44  ;;  %v459_v59 = vsel %vm6204_vm11, %v3389_v10, %v3393_v8  ;;  %v3588_v8 = vunpack.i.l.bf16 %v6208_v11  ;;  %vm6217_vm7 = vmmov %vm6212_vm2 }
 0x76c   :  { %v3784_v6 = vunpack.i.h.bf16 %v3782_v26  ;;  %v3783_v12 = vunpack.i.l.bf16 %v3782_v26  ;;  %v3799_v13 = vunpack.i.h.bf16 %v3797_v22  ;;  %v3080_v53 = vpack.c.bf16 %v676_v60, %v459_v59  ;;  %vm6225_vm11 = vmmov %vm6219_vm8 }
 0x76d   :  { %3073 = vmatprep.subr.bf16.mxu0 %v3072_v52  ;;  %v1003_v56 = vsel %vm6212_vm2, %v3589_v37, %v3593_v51  ;;  %vm6232_vm2 = vmmov %vm6219_vm8 }
 0x76e   :  { %1489 = vrot.lane.b32.xlu0 %v1483_v7, %s6192_s1  ;;  %3075 = vmatpush1.bf16.msra.mxu0 %v3074_v61  ;;  %v2416_v31 = vsel %vm6202_vm9, %v3783_v12, %v3784_v6  ;;  %v2415_v48 = vsel %vm6203_vm10, %v3788_v21, %v3783_v12  ;;  %v1736_v2 = vsel %vm6214_vm3, %v3799_v13, %v3394_v50  ;;  %vm6223_vm9 = vcmask 1031168  }
 0x76f   :  { %v3792_v19 = vpop.permute.xlu1 %3791  ;;  %1493 = vrot.lane.b32.xlu1 %v2489_v35, %s6192_s1  ;;  %v3807_v5 = vpop.permute.xlu0 %3806  ;;  %v3172_v36 = vpack.c.bf16 %v1590_v40, %v2416_v31  ;;  %v3174_v43 = vpack.c.bf16 %v1589_v27, %v2415_v48  ;;  %v3798_v35 = vunpack.i.l.bf16 %v3797_v22  ;;  %v1002_v7 = vsel %vm6217_vm7, %v3588_v8, %v3589_v37  ;;  %v6231_v8 = vld [vmem:[#allocation31_spill] sm:$0xff]  ;;  %vm6236_vm3 = vmmov %vm6223_vm9 }
 0x770   :  { %v3794_v23 = vunpack.i.h.bf16 %v3792_v19  ;;  %v3793_v49 = vunpack.i.l.bf16 %v3792_v19  ;;  %v3808_v41 = vunpack.i.l.bf16 %v3807_v5  ;;  %v3809_v34 = vunpack.i.h.bf16 %v3807_v5  ;;  %v6221_v19 = vld [vmem:[#allocation29_spill] sm:$0xff] }
 0x771   :  { %3173 = vmatprep.subr.bf16.mxu1 %v3172_v36  ;;  %v1737_v30 = vsel %vm6211_vm0, %v3394_v50, %v3798_v35  ;;  %v6220_v50 = vld [vmem:[#allocation28_spill] sm:$0xff]  ;;  %v3084_v48 = vpack.c.bf16 %v1003_v56, %v4230_v14  ;;  %v3333_v5 = vunpack.i.l.bf16 %v6221_v19  ;;  %v6222_v36 = vld [vmem:[#allocation42_spill] sm:$0xff]  ;;  %vm6224_vm10 = vcmask 932864  }
 0x772   :  { %3175 = vmatpush1.bf16.msra.mxu1 %v3174_v43  ;;  %v1380_v20 = vsel %vm6209_vm14, %v3789_v24, %v3793_v49  ;;  %v1379_v10 = vsel %vm6210_vm15, %v3794_v23, %v3789_v24  ;;  %v2143_v26 = vsel %vm6216_vm6, %v3594_v0, %v3808_v41  ;;  %v2142_v1 = vsel %vm6218_vm1, %v3809_v34, %v3594_v0  ;;  %vm6228_vm14 = vmmov %vm6223_vm9 }
 0x773   :  { %v3802_v29 = vpop.permute.xlu1 %3801  ;;  %v3817_v62 = vpop.permute.xlu0 %3816  ;;  %v3076_v63 = vpack.c.bf16 %v5612_v25, %v1380_v20  ;;  %v3078_v9 = vpack.c.bf16 %v5606_v46, %v1379_v10  ;;  %v2007_v46 = vld [vmem:[#allocation2 + $0x10] sm:$0xff]  ;;  %v3339_v40 = vunpack.i.h.bf16 %v6220_v50  ;;  %v3338_v31 = vunpack.i.l.bf16 %v6220_v50  ;;  %vm6229_vm15 = vmmov %vm6227_vm13 }
 0x774   :  { %v3804_v58 = vunpack.i.h.bf16 %v3802_v29  ;;  %v3803_v44 = vunpack.i.l.bf16 %v3802_v29  ;;  %v3819_v28 = vunpack.i.h.bf16 %v3817_v62  ;;  %v3818_v21 = vunpack.i.l.bf16 %v3817_v62  ;;  %vm6230_vm0 = vmmov %vm6224_vm10 }
 0x775   :  { %3077 = vmatprep.subr.bf16.mxu0 %v3076_v63  ;;  %v3403_v43 = vunpack.i.l.bf16 %v6222_v36  ;;  %v5676_v23 = vsel %vm6224_vm10, %v3398_v55, %v3399_v18  ;;  %v3086_v14 = vpack.c.bf16 %v1002_v7, %v4234_v15  ;;  %v3182_v16 = vpack.c.bf16 %v2142_v1, %v5267_v54  ;;  %vm6240_vm7 = vmmov %vm6230_vm0 }
 0x776   :  { %3079 = vmatpush1.bf16.msra.mxu0 %v3078_v9  ;;  %v1884_v47 = vsel %vm6213_vm4, %v3464_v32, %v3803_v44  ;;  %v1883_v25 = vsel %vm6215_vm5, %v3804_v58, %v3464_v32  ;;  %v2437_v24 = vsel %vm6219_vm8, %v3818_v21, %v3819_v28  ;;  %v3180_v32 = vpack.c.bf16 %v2143_v26, %v2007_v46  ;;  %vm6233_vm4 = vmmov %vm6232_vm2  ;;  %v6239_v46 = vld [vmem:[#allocation58_spill] sm:$0xff] }
 0x777   :  { %v3812_v22 = vpop.permute.xlu1 %3811  ;;  %v3827_v52 = vpop.permute.xlu0 %3826  ;;  %3081 = vmatprep.subr.bf16.mxu0 %v3080_v53  ;;  %v3176_v61 = vpack.c.bf16 %v1884_v47, %v1737_v30  ;;  %v3178_v3 = vpack.c.bf16 %v1883_v25, %v1736_v2  ;;  %v5684_v55 = vsel %vm6226_vm12, %v3338_v31, %v3339_v40  ;;  %v3334_v13 = vunpack.i.h.bf16 %v6221_v19  ;;  %vm6237_vm5 = vmmov %vm6236_vm3  ;;  %v6238_v2 = vld [vmem:[#allocation57_spill] sm:$0xff] }
 0x778   :  { %v3814_v6 = vunpack.i.h.bf16 %v3812_v22  ;;  %v3813_v12 = vunpack.i.l.bf16 %v3812_v22  ;;  %v3828_v27 = vunpack.i.l.bf16 %v3827_v52  ;;  %v3829_v49 = vunpack.i.h.bf16 %v3827_v52  ;;  %vm6241_vm1 = vmmov %vm6227_vm13 }
 0x779   :  { %3177 = vmatprep.subr.bf16.mxu1 %v3176_v61  ;;  %v5692_v15 = vsel %vm6227_vm13, %v3328_v57, %v3329_v4  ;;  %v273_v20 = vsel %vm6229_vm15, %v3329_v4, %v3333_v5  ;;  %v490_v10 = vsel %vm6230_vm0, %v3399_v18, %v3403_v43  ;;  %v3343_v34 = vunpack.i.l.bf16 %v6231_v8  ;;  %v6235_v18 = vld [vmem:[#allocation73_spill] sm:$0xff]  ;;  %vm6242_vm8 = vmmov %vm6241_vm1 }
 0x77a   :  { %3083 = vmatpush1.bf16.msra.mxu0 %v3082_v42  ;;  %3179 = vmatpush1.bf16.msra.mxu1 %v3178_v3  ;;  %v2290_v59 = vsel %vm6223_vm9, %v3813_v12, %v3814_v6  ;;  %v2436_v35 = vsel %vm6225_vm11, %v3828_v27, %v3818_v21  ;;  %v3404_v29 = vunpack.i.h.bf16 %v6222_v36  ;;  %v3094_v9 = vpack.c.bf16 %v5676_v23, %v5692_v15  ;;  %vm6243_vm9 = vmmov %vm6230_vm0  ;;  %v6246_v15 = vld [vmem:[#allocation41_spill] sm:$0xff] }
 0x77b   :  { %v3822_v60 = vpop.permute.xlu1 %3821  ;;  %v3837_v38 = vpop.permute.xlu0 %3836  ;;  %3085 = vmatprep.subr.bf16.mxu0 %v3084_v48  ;;  %3181 = vmatprep.subr.bf16.mxu1 %v3180_v32  ;;  %v3184_v0 = vpack.c.bf16 %v2437_v24, %v2290_v59  ;;  %v3533_v28 = vunpack.i.l.bf16 %v6234_v33  ;;  %v3529_v21 = vunpack.i.h.bf16 %v6235_v18  ;;  %v3092_v30 = vpack.c.bf16 %v490_v10, %v273_v20  ;;  %vm6245_vm11 = vmmov %vm6226_vm12 }
 0x77c   :  { %v3823_v51 = vunpack.i.l.bf16 %v3822_v60  ;;  %v3839_v11 = vunpack.i.h.bf16 %v3837_v38  ;;  %v3838_v37 = vunpack.i.l.bf16 %v3837_v38  ;;  %v3824_v54 = vunpack.i.h.bf16 %v3822_v60 }
 0x77d   :  { %vm847_vm6 = vcmask 916480   ;;  %v3473_v25 = vunpack.i.l.bf16 %v6238_v2  ;;  %v3469_v26 = vunpack.i.h.bf16 %v6239_v46  ;;  %v3474_v7 = vunpack.i.h.bf16 %v6238_v2 }
 0x77e   :  { %3087 = vmatpush1.bf16.msra.mxu0 %v3086_v14  ;;  %3183 = vmatpush1.bf16.msra.mxu1 %v3182_v16  ;;  %v2289_v41 = vsel %vm6228_vm14, %v3823_v51, %v3813_v12  ;;  %v1409_v39 = vsel %vm6232_vm2, %v3829_v49, %v3838_v37  ;;  %v1408_v4 = vsel %vm6233_vm4, %v3839_v11, %v3829_v49  ;;  %v3468_v1 = vunpack.i.l.bf16 %v6239_v46 }
 0x77f   :  { %v3832_v62 = vpop.permute.xlu1 %3831  ;;  %v3847_v57 = vpop.permute.xlu0 %3846  ;;  %3185 = vmatprep.subr.bf16.mxu1 %v3184_v0  ;;  %v3186_v63 = vpack.c.bf16 %v2436_v35, %v2289_v41  ;;  %v3528_v27 = vunpack.i.l.bf16 %v6235_v18  ;;  %v849_v48 = vsel %vm847_vm6, %v3529_v21, %v3533_v28  ;;  %v3534_v43 = vunpack.i.h.bf16 %v6234_v33  ;;  %v5742_v33 = vld [vmem:[#allocation7 + $0x8] sm:$0xff]  ;;  %v6253_v28 = vld [vmem:[#allocation62_spill] sm:$0xff] }
 0x780   :  { %v3834_v58 = vunpack.i.h.bf16 %v3832_v62  ;;  %v3833_v44 = vunpack.i.l.bf16 %v3832_v62  ;;  %v3848_v53 = vunpack.i.l.bf16 %v3847_v57  ;;  %v3849_v42 = vunpack.i.h.bf16 %v3847_v57 }
 0x781   :  { %vm6244_vm10 = vcmask 924672   ;;  %v848_v35 = vsel %vm847_vm6, %v3528_v27, %v3529_v21  ;;  %vm6252_vm15 = vcmask 900096   ;;  %v3479_v18 = vunpack.i.h.bf16 %v6253_v28  ;;  %v6256_v27 = vld [vmem:[#allocation44_spill] sm:$0xff] }
 0x782   :  { %v1206_v56 = vsel %vm6236_vm3, %v3824_v54, %v3833_v44  ;;  %v1205_v47 = vsel %vm6237_vm5, %v3834_v58, %v3824_v54  ;;  %3187 = vmatpush1.bf16.msra.mxu1 %v3186_v63  ;;  %v1758_v31 = vsel %vm6240_vm7, %v3404_v29, %v3848_v53  ;;  %v1757_v36 = vsel %vm6243_vm9, %v3849_v42, %v3404_v29  ;;  %vm6247_vm12 = vmmov %vm6244_vm10  ;;  %v6249_v29 = vld [vmem:[#allocation61_spill] sm:$0xff] }
 0x783   :  { %v3842_v22 = vpop.permute.xlu1 %3841  ;;  %v3857_v52 = vpop.permute.xlu0 %3856  ;;  %v3088_v61 = vpack.c.bf16 %v1409_v39, %v1206_v56  ;;  %v3090_v3 = vpack.c.bf16 %v1408_v4, %v1205_v47  ;;  %v707_v38 = vsel %vm6244_vm10, %v3469_v26, %v3473_v25  ;;  %v3409_v54 = vunpack.i.h.bf16 %v6246_v15  ;;  %vm6248_vm13 = vmmov %vm6244_vm10  ;;  %v6254_v53 = vld [vmem:[#allocation89_spill] sm:$0xff] }
 0x784   :  { %v3844_v6 = vunpack.i.h.bf16 %v3842_v22  ;;  %v3843_v12 = vunpack.i.l.bf16 %v3842_v22  ;;  %v3858_v24 = vunpack.i.l.bf16 %v3857_v52  ;;  %v3859_v32 = vunpack.i.h.bf16 %v3857_v52  ;;  %vm6250_vm14 = vmmov %vm6244_vm10 }
 0x785   :  { %3089 = vmatprep.subr.bf16.mxu0 %v3088_v61  ;;  %v3096_v11 = vpack.c.bf16 %v849_v48, %v707_v38  ;;  %v3483_v62 = vunpack.i.l.bf16 %v6249_v29  ;;  %v706_v50 = vsel %vm6250_vm14, %v3468_v1, %v3469_v26  ;;  %v3598_v42 = vunpack.i.l.bf16 %v6254_v53 }
 0x786   :  { %3091 = vmatpush1.bf16.msra.mxu0 %v3090_v3  ;;  %v1611_v19 = vsel %vm6241_vm1, %v3334_v13, %v3843_v12  ;;  %v1610_v5 = vsel %vm6242_vm8, %v3844_v6, %v3334_v13  ;;  %v2023_v37 = vsel %vm847_vm6, %v3534_v43, %v3858_v24  ;;  %v5732_v13 = vsel %vm6245_vm11, %v3339_v40, %v3343_v34  ;;  %v6251_v34 = vld [vmem:[#allocation88_spill] sm:$0xff] }
 0x787   :  { %v3852_v59 = vpop.permute.xlu1 %3851  ;;  %v5722_v23 = vpop.permute.xlu0 %3866  ;;  %3093 = vmatprep.subr.bf16.mxu0 %v3092_v30  ;;  %v3188_v49 = vpack.c.bf16 %v1758_v31, %v1611_v19  ;;  %v3190_v60 = vpack.c.bf16 %v1757_v36, %v1610_v5  ;;  %v2022_v10 = vsel %vm847_vm6, %v3859_v32, %v3534_v43  ;;  %v3604_v44 = vunpack.i.h.bf16 %v6251_v34  ;;  %v4005_v32 = vld [vmem:[#allocation7] sm:$0xff]  ;;  %vm6260_vm6 = vmmov %vm6252_vm15 }
 0x788   :  { %v3854_v14 = vunpack.i.h.bf16 %v3852_v59  ;;  %v3853_v16 = vunpack.i.l.bf16 %v3852_v59  ;;  %v3869_v0 = vunpack.i.h.bf16 %v5722_v23  ;;  %v3868_v51 = vunpack.i.l.bf16 %v5722_v23  ;;  %vm6261_vm7 = vmmov %vm6260_vm6 }
 0x789   :  { %3189 = vmatprep.subr.bf16.mxu1 %v3188_v49  ;;  %v3603_v21 = vunpack.i.l.bf16 %v6251_v34  ;;  %v3599_v30 = vunpack.i.h.bf16 %v6254_v53  ;;  %vm6255_vm0 = vcmask 908288   ;;  %v3478_v46 = vunpack.i.l.bf16 %v6253_v28  ;;  %vm6262_vm1 = vmmov %vm6260_vm6 }
 0x78a   :  { %3095 = vmatpush1.bf16.msra.mxu0 %v3094_v9  ;;  %3191 = vmatpush1.bf16.msra.mxu1 %v3190_v60  ;;  %v1905_v41 = vsel %vm6247_vm12, %v3474_v7, %v3853_v16  ;;  %v1904_v20 = vsel %vm6248_vm13, %v3854_v14, %v3474_v7  ;;  %v3098_v9 = vpack.c.bf16 %v848_v35, %v706_v50  ;;  %vm2708_vm2 = vcmask 64512   ;;  %vm6257_vm4 = vmmov %vm6255_vm0 }
 0x78b   :  { %v3862_v57 = vpop.permute.xlu1 %3861  ;;  %v3877_v63 = vpop.permute.xlu0 %3876  ;;  %3097 = vmatprep.subr.bf16.mxu0 %v3096_v11  ;;  %v3192_v58 = vpack.c.bf16 %v2023_v37, %v1905_v41  ;;  %v3194_v40 = vpack.c.bf16 %v2022_v10, %v1904_v20  ;;  %v2311_v4 = vsel %vm6252_vm15, %v3868_v51, %v3869_v0  ;;  %v2706_v61 = vcombine.high %v5742_v33, %v5742_v33  ;;  %vm6258_vm3 = vmmov %vm6255_vm0 }
 0x78c   :  { %v3863_v39 = vunpack.i.l.bf16 %v3862_v57  ;;  %v3864_v56 = vunpack.i.h.bf16 %v3862_v57  ;;  %v3879_v47 = vunpack.i.h.bf16 %v3877_v63  ;;  %v3878_v2 = vunpack.i.l.bf16 %v3877_v63  ;;  %vm6259_vm5 = vmmov %vm6255_vm0 }
 0x78d   :  { %3193 = vmatprep.subr.bf16.mxu1 %v3192_v58  ;;  %v3408_v12 = vunpack.i.l.bf16 %v6246_v15  ;;  %v3413_v24 = vunpack.i.l.bf16 %v6256_v27  ;;  %v1031_v31 = vsel %vm6257_vm4, %v3598_v42, %v3599_v30  ;;  %v1032_v48 = vsel %vm6258_vm3, %v3599_v30, %v3603_v21  ;;  %v6270_v15 = vld [vmem:[#allocation75_spill] sm:$0xff] }
 0x78e   :  { %3099 = vmatpush1.bf16.msra.mxu0 %v3098_v9  ;;  %3195 = vmatpush1.bf16.msra.mxu1 %v3194_v40  ;;  %v2164_v25 = vsel %vm6255_vm0, %v3604_v44, %v3863_v39  ;;  %v2163_v19 = vsel %vm6259_vm5, %v3864_v56, %v3604_v44  ;;  %v3344_v59 = vunpack.i.h.bf16 %v6231_v8  ;;  %vm6263_vm8 = vcmask 793600   ;;  %v6269_v44 = vld [vmem:[#allocation74_spill] sm:$0xff] }
 0x78f   :  { %v3872_v26 = vpop.permute.xlu1 %3871  ;;  %v3196_v52 = vpack.c.bf16 %v2311_v4, %v2164_v25  ;;  %v5764_v16 = vsel %vm6263_vm8, %v3478_v46, %v3479_v18  ;;  %vm6264_vm9 = vcmask 891904   ;;  %vm6265_vm10 = vmmov %vm6263_vm8  ;;  %vm6266_vm11 = vcmask 801792  }
 0x790   :  { %v3887_v22 = vpop.permute.xlu0 %3886  ;;  %v3874_v3 = vunpack.i.h.bf16 %v3872_v26  ;;  %v3873_v7 = vunpack.i.l.bf16 %v3872_v26  ;;  %v738_v11 = vsel %vm6265_vm10, %v3479_v18, %v3483_v62  ;;  %v5771_v8 = vsel %vm6266_vm11, %v3408_v12, %v3409_v54  ;;  %vm6267_vm12 = vmmov %vm6266_vm11  ;;  %v6272_v18 = vld [vmem:[#allocation93_spill] sm:$0xff] }
 0x791   :  { %v3889_v1 = vunpack.i.h.bf16 %v3887_v22  ;;  %v3888_v6 = vunpack.i.l.bf16 %v3887_v22  ;;  %3197 = vmatprep.subr.bf16.mxu1 %v3196_v52  ;;  %2918 = vmatmul.mubr.f32.vlgmr.msra.gmra.mrb[0].mxu1 %v4005_v32  ;;  %v3414_v37 = vunpack.i.h.bf16 %v6256_v27  ;;  %v521_v41 = vsel %vm6267_vm12, %v3409_v54, %v3413_v24  ;;  %vm6274_vm0 = vmmov %vm6264_vm9 }
 0x792   :  { %v1234_v5 = vsel %vm6260_vm6, %v3879_v47, %v3874_v3  ;;  %v2310_v36 = vsel %vm6261_vm7, %v3873_v7, %v3868_v51  ;;  %v1235_v43 = vsel %vm6262_vm1, %v3874_v3, %v3878_v2  ;;  %2776 = vmatmul.mubr.f32.vlgmr.msra.gmra.mrb[0].mxu0 %v4005_v32  ;;  %3035 = vmatprep.mubr.msk.f32.mxu1 %vm2708_vm2, %v2706_v61  ;;  %v3484_v20 = vunpack.i.h.bf16 %v6249_v29  ;;  %v6271_v29 = vld [vmem:[#allocation92_spill] sm:$0xff]  ;;  %vm6276_vm4 = vmmov %vm6274_vm0 }
 0x793   :  { %v3102_v23 = vpack.c.bf16 %v1234_v5, %v1031_v31  ;;  %v3198_v49 = vpack.c.bf16 %v2310_v36, %v2163_v19  ;;  %v3882_v60 = vpop.permute.xlu1 %3881  ;;  %v3100_v14 = vpack.c.bf16 %v1235_v43, %v1032_v48  ;;  %3034 = vmatprep.mubr.msk.f32.mxu0 %vm2708_vm2, %v2706_v61  ;;  %v2458_v51 = vsel %vm6264_vm9, %v3888_v6, %v3889_v1  ;;  %vm6275_vm2 = vmmov %vm6274_vm0 }
 0x794   :  { %v3897_v38 = vpop.permute.xlu0 %3896  ;;  %v3883_v0 = vunpack.i.l.bf16 %v3882_v60  ;;  %v3884_v35 = vunpack.i.h.bf16 %v3882_v60  ;;  %vm6268_vm13 = vcmask 809984   ;;  %vm866_vm14 = vcmask 785408   ;;  %vm6277_vm3 = vmmov %vm6263_vm8 }
 0x795   :  { %3101 = vmatprep.subr.bf16.mxu0 %v3100_v14  ;;  %3199 = vmatpush1.bf16.msra.mxu1 %v3198_v49  ;;  %v3899_v10 = vunpack.i.h.bf16 %v3897_v38  ;;  %v3898_v57 = vunpack.i.l.bf16 %v3897_v38  ;;  %v3108_v40 = vpack.c.bf16 %v738_v11, %v521_v41  ;;  %v3110_v34 = vpack.c.bf16 %v5764_v16, %v5771_v8  ;;  %vm6273_vm15 = vmmov %vm6268_vm13  ;;  %v6284_v11 = vld [vmem:[#allocation43_spill] sm:$0xff] }
 0x796   :  { %3103 = vmatpush1.bf16.msra.mxu0 %v3102_v23  ;;  %v1632_v62 = vsel %vm6268_vm13, %v3344_v59, %v3883_v0  ;;  %v3543_v39 = vunpack.i.l.bf16 %v6269_v44  ;;  %v3539_v9 = vunpack.i.h.bf16 %v6270_v15  ;;  %v3613_v28 = vunpack.i.l.bf16 %v6271_v29  ;;  %vm6279_vm6 = vmmov %vm6266_vm11 }
 0x797   :  { %v3892_v63 = vpop.permute.xlu1 %3891  ;;  %v3200_v50 = vpack.c.bf16 %v1632_v62, %v2458_v51  ;;  %v3609_v21 = vunpack.i.h.bf16 %v6272_v18  ;;  %v1631_v53 = vsel %vm6273_vm15, %v3884_v35, %v3344_v59  ;;  %v3608_v25 = vunpack.i.l.bf16 %v6272_v18  ;;  %vm6280_vm7 = vmmov %vm6279_vm6  ;;  %v6291_v18 = vld [vmem:[#allocation45_spill] sm:$0xff] }
 0x798   :  { %v3907_v58 = vpop.permute.xlu0 %3906  ;;  %v3894_v54 = vunpack.i.h.bf16 %v3892_v63  ;;  %v3893_v4 = vunpack.i.l.bf16 %v3892_v63  ;;  %v3544_v3 = vunpack.i.h.bf16 %v6269_v44  ;;  %v3538_v7 = vunpack.i.l.bf16 %v6270_v15  ;;  %vm6281_vm1 = vmmov %vm6277_vm3 }
 0x799   :  { %v3909_v30 = vunpack.i.h.bf16 %v3907_v58  ;;  %3201 = vmatprep.subr.bf16.mxu1 %v3200_v50  ;;  %v3908_v47 = vunpack.i.l.bf16 %v3907_v58  ;;  %v868_v24 = vsel %vm866_vm14, %v3539_v9, %v3543_v39  ;;  %vm6278_vm5 = vcmask 777216  }
 0x79a   :  { %v1437_v42 = vsel %vm6274_vm0, %v3899_v10, %v3894_v54  ;;  %v2457_v56 = vsel %vm6275_vm2, %v3893_v4, %v3888_v6  ;;  %v1438_v2 = vsel %vm6276_vm4, %v3894_v54, %v3898_v57  ;;  %v3614_v19 = vunpack.i.h.bf16 %v6271_v29  ;;  %vm6282_vm8 = vmmov %vm6278_vm5  ;;  %v6288_v54 = vld [vmem:[#allocation32_spill] sm:$0xff] }
 0x79b   :  { %v3106_v46 = vpack.c.bf16 %v5684_v55, %v1437_v42  ;;  %v3202_v26 = vpack.c.bf16 %v1631_v53, %v2457_v56  ;;  %v3902_v22 = vpop.permute.xlu1 %3901  ;;  %v3104_v61 = vpack.c.bf16 %v5732_v13, %v1438_v2  ;;  %v1925_v6 = vsel %vm6277_vm3, %v3909_v30, %v3484_v20  ;;  %vm6283_vm9 = vmmov %vm6278_vm5 }
 0x79c   :  { %v3917_v52 = vpop.permute.xlu0 %3916  ;;  %v3904_v1 = vunpack.i.h.bf16 %v3902_v22  ;;  %v3903_v12 = vunpack.i.l.bf16 %v3902_v22  ;;  %v1061_v55 = vsel %vm6278_vm5, %v3609_v21, %v3613_v28  ;;  %v1926_v32 = vsel %vm6281_vm1, %v3484_v20, %v3908_v47  ;;  %vm6285_vm10 = vmmov %vm6278_vm5 }
 0x79d   :  { %v3919_v27 = vunpack.i.h.bf16 %v3917_v52  ;;  %3105 = vmatprep.subr.bf16.mxu0 %v3104_v61  ;;  %3203 = vmatpush1.bf16.msra.mxu1 %v3202_v26  ;;  %v3918_v48 = vunpack.i.l.bf16 %v3917_v52  ;;  %v1060_v5 = vsel %vm6282_vm8, %v3608_v25, %v3609_v21  ;;  %v867_v16 = vsel %vm866_vm14, %v3538_v7, %v3539_v9 }
 0x79e   :  { %v1778_v31 = vsel %vm6279_vm6, %v3904_v1, %v3414_v37  ;;  %3107 = vmatpush1.bf16.msra.mxu0 %v3106_v46  ;;  %v1779_v13 = vsel %vm6280_vm7, %v3414_v37, %v3903_v12  ;;  %v3112_v51 = vpack.c.bf16 %v1061_v55, %v868_v24  ;;  %v3419_v8 = vunpack.i.h.bf16 %v6284_v11 }
 0x79f   :  { %v3206_v36 = vpack.c.bf16 %v1925_v6, %v1778_v31  ;;  %v3912_v43 = vpop.permute.xlu1 %3911  ;;  %3109 = vmatprep.subr.bf16.mxu0 %v3108_v40  ;;  %v3204_v23 = vpack.c.bf16 %v1926_v32, %v1779_v13  ;;  %v2184_v0 = vsel %vm6283_vm9, %v3919_v27, %v3614_v19  ;;  %v2185_v41 = vsel %vm6285_vm10, %v3614_v19, %v3918_v48  ;;  %v6299_v32 = vld [vmem:[#allocation76_spill] sm:$0xff] }
 0x7a0   :  { %v3927_v59 = vpop.permute.xlu0 %3926  ;;  %v3914_v49 = vunpack.i.h.bf16 %v3912_v43  ;;  %v3913_v60 = vunpack.i.l.bf16 %v3912_v43  ;;  %v3418_v20 = vunpack.i.l.bf16 %v6284_v11  ;;  %v3114_v58 = vpack.c.bf16 %v1060_v5, %v867_v16  ;;  %v6300_v5 = vld [vmem:[#allocation77_spill] sm:$0xff] }
 0x7a1   :  { %v3929_v38 = vunpack.i.h.bf16 %v3927_v59  ;;  %v3928_v14 = vunpack.i.l.bf16 %v3927_v59  ;;  %3205 = vmatprep.subr.bf16.mxu1 %v3204_v23  ;;  %vm6286_vm11 = vcmask 760832   ;;  %v3353_v4 = vunpack.i.l.bf16 %v6288_v54 }
 0x7a2   :  { %v2040_v37 = vsel %vm866_vm14, %v3914_v49, %v3544_v3  ;;  %3111 = vmatpush1.bf16.msra.mxu0 %v3110_v34  ;;  %3207 = vmatpush1.bf16.msra.mxu1 %v3206_v36  ;;  %v2041_v35 = vsel %vm866_vm14, %v3544_v3, %v3913_v60  ;;  %v6287_v34 = vld [vmem:[#allocation30_spill] sm:$0xff]  ;;  %vm6289_vm12 = vcmask 769024   ;;  %vm6290_vm13 = vcmask 670720   ;;  %vm6292_vm14 = vmmov %vm6286_vm11  ;;  %v6303_v60 = vld [vmem:[#allocation65_spill] sm:$0xff] }
 0x7a3   :  { %v3210_v10 = vpack.c.bf16 %v2184_v0, %v2040_v37  ;;  %v3922_v57 = vpop.permute.xlu1 %3921  ;;  %3113 = vmatprep.subr.bf16.mxu0 %v3112_v51  ;;  %v3208_v63 = vpack.c.bf16 %v2185_v41, %v2041_v35  ;;  %v2479_v39 = vsel %vm6286_vm11, %v3928_v14, %v3929_v38  ;;  %v3349_v15 = vunpack.i.h.bf16 %v6287_v34  ;;  %vm6294_vm0 = vmmov %vm6289_vm12 }
 0x7a4   :  { %v3937_v62 = vpop.permute.xlu0 %3936  ;;  %v3924_v50 = vunpack.i.h.bf16 %v3922_v57  ;;  %v3923_v40 = vunpack.i.l.bf16 %v3922_v57  ;;  %v3348_v9 = vunpack.i.l.bf16 %v6287_v34  ;;  %v5815_v28 = vsel %vm6290_vm13, %v3418_v20, %v3419_v8  ;;  %vm6296_vm4 = vmmov %vm6290_vm13 }
 0x7a5   :  { %v3938_v44 = vunpack.i.l.bf16 %v3937_v62  ;;  %3209 = vmatprep.subr.bf16.mxu1 %v3208_v63  ;;  %v3423_v21 = vunpack.i.l.bf16 %v6291_v18  ;;  %v3939_v53 = vunpack.i.h.bf16 %v3937_v62  ;;  %vm6293_vm15 = vcmask 678912   ;;  %vm6297_vm3 = vmmov %vm6286_vm11 }
 0x7a6   :  { %3115 = vmatpush1.bf16.msra.mxu0 %v3114_v58  ;;  %3211 = vmatpush1.bf16.msra.mxu1 %v3210_v10  ;;  %v2332_v29 = vsel %vm6289_vm12, %v3923_v40, %v3924_v50  ;;  %v334_v26 = vsel %vm6293_vm15, %v3348_v9, %v3349_v15  ;;  %v3354_v22 = vunpack.i.h.bf16 %v6288_v54  ;;  %vm6295_vm2 = vmmov %vm6293_vm15  ;;  %v3424_v13 = vunpack.i.h.bf16 %v6291_v18 }
 0x7a7   :  { %v3932_v30 = vpop.permute.xlu1 %3931  ;;  %v3212_v56 = vpack.c.bf16 %v2479_v39, %v2332_v29  ;;  %v2478_v47 = vsel %vm6292_vm14, %v3938_v44, %v3928_v14  ;;  %v335_v12 = vsel %vm6295_vm2, %v3349_v15, %v3353_v4  ;;  %v552_v6 = vsel %vm6296_vm4, %v3419_v8, %v3423_v21  ;;  %vm6298_vm5 = vmmov %vm6297_vm3  ;;  %v6304_v8 = vld [vmem:[#allocation66_spill] sm:$0xff] }
 0x7a8   :  { %v3947_v42 = vpop.permute.xlu0 %3946  ;;  %v3933_v2 = vunpack.i.l.bf16 %v3932_v30  ;;  %v3934_v52 = vunpack.i.h.bf16 %v3932_v30  ;;  %v3122_v27 = vpack.c.bf16 %v5815_v28, %v334_v26  ;;  %v3553_v19 = vunpack.i.l.bf16 %v6299_v32  ;;  %vm6301_vm7 = vmmov %vm6294_vm0 }
 0x7a9   :  { %v3949_v25 = vunpack.i.h.bf16 %v3947_v42  ;;  %v3948_v46 = vunpack.i.l.bf16 %v3947_v42  ;;  %3213 = vmatprep.subr.bf16.mxu1 %v3212_v56  ;;  %v3549_v36 = vunpack.i.h.bf16 %v6300_v5  ;;  %vm885_vm6 = vcmask 654336   ;;  %vm6302_vm1 = vmmov %vm6294_vm0 }
 0x7aa   :  { %v2331_v61 = vsel %vm6294_vm0, %v3933_v2, %v3923_v40  ;;  %v3493_v38 = vunpack.i.l.bf16 %v6303_v60  ;;  %v3120_v11 = vpack.c.bf16 %v552_v6, %v335_v12  ;;  %v3489_v37 = vunpack.i.h.bf16 %v6304_v8  ;;  %vm6305_vm8 = vmmov %vm6296_vm4 }
 0x7ab   :  { %v3214_v3 = vpack.c.bf16 %v2478_v47, %v2331_v61  ;;  %v3942_v7 = vpop.permute.xlu1 %3941  ;;  %v1466_v24 = vsel %vm6297_vm3, %v3949_v25, %v3939_v53  ;;  %v1467_v48 = vsel %vm6298_vm5, %v3939_v53, %v3948_v46  ;;  %v3548_v35 = vunpack.i.l.bf16 %v6300_v5  ;;  %vm6306_vm9 = vmmov %vm6295_vm2 }
 0x7ac   :  { %v3957_v1 = vpop.permute.xlu0 %3956  ;;  %v3944_v55 = vunpack.i.h.bf16 %v3942_v7  ;;  %v3943_v31 = vunpack.i.l.bf16 %v3942_v7  ;;  %v3494_v10 = vunpack.i.h.bf16 %v6303_v60  ;;  %v887_v63 = vsel %vm885_vm6, %v3549_v36, %v3553_v19  ;;  %vm6307_vm10 = vmmov %vm6295_vm2 }
 0x7ad   :  { %v3959_v43 = vunpack.i.h.bf16 %v3957_v1  ;;  %3215 = vmatpush1.bf16.msra.mxu1 %v3214_v3  ;;  %v3958_v23 = vunpack.i.l.bf16 %v3957_v1  ;;  %vm6308_vm11 = vmmov %vm6296_vm4  ;;  %v3488_v39 = vunpack.i.l.bf16 %v6304_v8  ;;  %v3554_v34 = vunpack.i.h.bf16 %v6299_v32 }
 0x7ae   :  { %v1263_v59 = vsel %vm6301_vm7, %v3944_v55, %v3934_v52  ;;  %v1264_v49 = vsel %vm6302_vm1, %v3934_v52, %v3943_v31  ;;  %v886_v4 = vsel %vm885_vm6, %v3548_v35, %v3549_v36  ;;  %vm6309_vm12 = vcmask 662528  }
 0x7af   :  { %v3118_v14 = vpack.c.bf16 %v1466_v24, %v1263_v59  ;;  %v3952_v16 = vpop.permute.xlu1 %3951  ;;  %v3116_v51 = vpack.c.bf16 %v1467_v48, %v1264_v49  ;;  %v1799_v57 = vsel %vm6305_vm8, %v3959_v43, %v3424_v13  ;;  %v1800_v44 = vsel %vm6308_vm11, %v3424_v13, %v3958_v23  ;;  %vm6310_vm13 = vmmov %vm6309_vm12 }
 0x7b0   :  { %v3967_v0 = vpop.permute.xlu0 %3966  ;;  %v3954_v41 = vunpack.i.h.bf16 %v3952_v16  ;;  %v3953_v20 = vunpack.i.l.bf16 %v3952_v16  ;;  %v769_v21 = vsel %vm6309_vm12, %v3489_v37, %v3493_v38  ;;  %vm6311_vm14 = vmmov %vm6309_vm12  ;;  %v3624_v61 = vunpack.i.h.bf16 %v5075_v45 }
 0x7b1   :  { %v3969_v62 = vunpack.i.h.bf16 %v3967_v0  ;;  %3117 = vmatprep.subr.bf16.mxu0 %v3116_v51  ;;  %v3968_v50 = vunpack.i.l.bf16 %v3967_v0  ;;  %v3124_v56 = vpack.c.bf16 %v887_v63, %v769_v21  ;;  %vm6312_vm15 = vmmov %vm6309_vm12  ;;  %vm6313_vm0 = vcmask 637952  }
 0x7b2   :  { %v1652_v58 = vsel %vm6306_vm9, %v3954_v41, %v3354_v22  ;;  %3119 = vmatpush1.bf16.msra.mxu0 %v3118_v14  ;;  %v1653_v40 = vsel %vm6307_vm10, %v3354_v22, %v3953_v20  ;;  %v768_v46 = vsel %vm6312_vm15, %v3488_v39, %v3489_v37  ;;  %v3623_v6 = vunpack.i.l.bf16 %v5075_v45  ;;  %vm6319_vm7 = vmmov %vm6313_vm0 }
 0x7b3   :  { %v3218_v15 = vpack.c.bf16 %v1799_v57, %v1652_v58  ;;  %v3962_v9 = vpop.permute.xlu1 %3961  ;;  %3121 = vmatprep.subr.bf16.mxu0 %v3120_v11  ;;  %v3216_v54 = vpack.c.bf16 %v1800_v44, %v1653_v40  ;;  %v2058_v53 = vsel %vm885_vm6, %v3969_v62, %v3554_v34  ;;  %v2059_v25 = vsel %vm885_vm6, %v3554_v34, %v3968_v50  ;;  %vm6318_vm6 = vmmov %vm6313_vm0 }
 0x7b4   :  { %v3964_v29 = vunpack.i.h.bf16 %v3962_v9  ;;  %v3963_v28 = vunpack.i.l.bf16 %v3962_v9  ;;  %v3977_v18 = vpop.permute.xlu0 %3976  ;;  %v3126_v7 = vpack.c.bf16 %v886_v4, %v768_v46  ;;  %v3618_v24 = vunpack.i.l.bf16 %v5077_v17  ;;  %vm6320_vm1 = vmmov %vm6313_vm0 }
 0x7b5   :  { %3217 = vmatprep.subr.bf16.mxu1 %v3216_v54  ;;  %v3979_v30 = vunpack.i.h.bf16 %v3977_v18  ;;  %v3978_v42 = vunpack.i.l.bf16 %v3977_v18  ;;  %vm6314_vm2 = vcmask 646144   ;;  %vm6321_vm8 = vcmask 629760   ;;  %v4006_v18 = vld [vmem:[#allocation4] sm:$0xf0] }
 0x7b6   :  { %v1946_v47 = vsel %vm6310_vm13, %v3964_v29, %v3494_v10  ;;  %3123 = vmatpush1.bf16.msra.mxu0 %v3122_v27  ;;  %3219 = vmatpush1.bf16.msra.mxu1 %v3218_v15  ;;  %v1947_v2 = vsel %vm6311_vm14, %v3494_v10, %v3963_v28  ;;  %v3619_v27 = vunpack.i.h.bf16 %v5077_v17  ;;  %vm6315_vm4 = vmmov %vm6314_vm2  ;;  %vm3013_vm12 = vcmask 1043456   ;;  %v6325_v29 = vld [vmem:[#allocation15_spill] sm:$0xff] }
 0x7b7   :  { %v3222_v26 = vpack.c.bf16 %v2058_v53, %v1946_v47  ;;  %v3972_v22 = vpop.permute.xlu1 %3971  ;;  %3125 = vmatprep.subr.bf16.mxu0 %v3124_v56  ;;  %v3220_v52 = vpack.c.bf16 %v2059_v25, %v1947_v2  ;;  %v2353_v12 = vsel %vm6313_vm0, %v3978_v42, %v3979_v30  ;;  %vm6316_vm3 = vmmov %vm6314_vm2  ;;  %v6326_v53 = vld [vmem:[#allocation14_spill] sm:$0xff] }
 0x7b8   :  { %v3973_v3 = vunpack.i.l.bf16 %v3972_v22  ;;  %v3987_v1 = vpop.permute.xlu0 %3986  ;;  %v3974_v55 = vunpack.i.h.bf16 %v3972_v22  ;;  %v1089_v43 = vsel %vm6315_vm4, %v3618_v24, %v3619_v27  ;;  %v1090_v45 = vsel %vm6316_vm3, %v3619_v27, %v3623_v6  ;;  %vm6317_vm5 = vmmov %vm6314_vm2 }
 0x7b9   :  { %3221 = vmatprep.subr.bf16.mxu1 %v3220_v52  ;;  %v3989_v31 = vunpack.i.h.bf16 %v3987_v1  ;;  %v3988_v48 = vunpack.i.l.bf16 %v3987_v1  ;;  %vm6322_vm9 = vmmov %vm6321_vm8 }
 0x7ba   :  { %3127 = vmatpush1.bf16.msra.mxu0 %v3126_v7  ;;  %3223 = vmatpush1.bf16.msra.mxu1 %v3222_v26  ;;  %v2206_v13 = vsel %vm6314_vm2, %v3624_v61, %v3973_v3  ;;  %v2205_v59 = vsel %vm6317_vm5, %v3974_v55, %v3624_v61  ;;  %vm6323_vm10 = vmmov %vm6321_vm8 }
 0x7bb   :  { %v3982_v32 = vpop.permute.xlu1 %3981  ;;  %v3224_v19 = vpack.c.bf16 %v2353_v12, %v2206_v13  ;;  %vm6324_vm11 = vmmov %vm6321_vm8 }
 0x7bc   :  { %v3984_v5 = vunpack.i.h.bf16 %v3982_v32  ;;  %v3983_v36 = vunpack.i.l.bf16 %v3982_v32 }
 0x7bd   :  { %3225 = vmatprep.subr.bf16.mxu1 %v3224_v19 }
 0x7be   :  { %v2352_v17 = vsel %vm6318_vm6, %v3983_v36, %v3978_v42  ;;  %v1292_v23 = vsel %vm6319_vm7, %v3989_v31, %v3984_v5  ;;  %v1293_v49 = vsel %vm6320_vm1, %v3984_v5, %v3988_v48  ;;  %v4007_v42 = vld [vmem:[#allocation4 + $0x8] sm:$0xf0] }
 0x7bf   :  { %v3226_v60 = vpack.c.bf16 %v2352_v17, %v2205_v59  ;;  %v3130_v38 = vpack.c.bf16 %v1292_v23, %v1089_v43  ;;  %v3128_v14 = vpack.c.bf16 %v1293_v49, %v1090_v45 }
 0x7c1   :  { %3129 = vmatprep.subr.bf16.mxu0 %v3128_v14  ;;  %3227 = vmatpush1.bf16.msra.mxu1 %v3226_v60 }
 0x7c2   :  { %3131 = vmatpush1.bf16.msra.mxu0 %v3130_v38 }
 0x7d8   :  { %v2498_v16 = vpop.permute.xlu0 %2497 }
 0x7d9   :  { %v2496_v0 = vpop.permute.xlu1 %2495 }
 0x7da   :  { %v2500_v51 = vsel %vm6321_vm8, %v2496_v0, %v2498_v16 }
 0x7db   :  { %2956 = vmatprep.subr.mxu1 %v2500_v51 }
 0x7dc   :  { %v1492_v11 = vpop.permute.xlu0 %1491 }
 0x7dd   :  { %v2494_v8 = vpop.permute.xlu1 %2493 }
 0x7de   :  { %v2499_v37 = vsel %vm6322_vm9, %v2494_v8, %v2496_v0 }
 0x7df   :  { %2957 = vmatpush1.msra.mxu1 %v2499_v37 }
 0x7e0   :  { %v1490_v35 = vpop.permute.xlu0 %1489  ;;  %2989 = vmatmul.mubr.f32.vlgmr.msra.gmra.mrb[0].mxu1 %v5742_v33 }
 0x7e1   :  { %v1494_v41 = vpop.permute.xlu1 %1493  ;;  %v1495_v10 = vsel %vm6324_vm11, %v1490_v35, %v1492_v11 }
 0x7e2   :  { %v1496_v20 = vsel %vm6323_vm10, %v1492_v11, %v1494_v41 }
 0x7e3   :  { %2814 = vmatprep.subr.mxu0 %v1496_v20 }
 0x7e4   :  { %2815 = vmatpush1.msra.mxu0 %v1495_v10 }
 0x7e5   :  { %2847 = vmatmul.mubr.f32.vlgmr.msra.gmra.mrb[0].mxu0 %v5742_v33 }
 0x8b3   :  { %v2990_v57 = vpop.f32.mrb[0].mxu1 }
 0x8b4   :  { %v3001_v62 = vadd.f32 1.0, %v2990_v57  ;;  %v2992_v63 = vpop.f32.mrb[1].mxu1 }
 0x8b5   :  { %v3002_v58 = vadd.f32 1.0, %v2992_v63 }
 0x8b6   :  { %v3005_v50 = vrot.slane %v3001_v62, 4 }
 0x8b7   :  { %v3006_v40 = vrot.slane %v3002_v58, 4 }
 0x8b8   :  { %v2848_v44 = vpop.f32.mrb[0].mxu0  ;;  %3992 = vrcp.f32 %v3005_v50 }
 0x8b9   :  { %v2995_v39 = vadd.f32 1.0, %v2848_v44  ;;  %v2850_v34 = vpop.f32.mrb[1].mxu0  ;;  %3994 = vrcp.f32 %v3006_v40 }
 0x8ba   :  { %v2996_v15 = vadd.f32 1.0, %v2850_v34 }
 0x8bb   :  { %3996 = vrcp.f32 %v2995_v39 }
 0x8bc   :  { %3998 = vrcp.f32 %v2996_v15 }
 0x8c2   :  { %v3993_v9 = vpop.eup %3992 }
 0x8c3   :  { %v3995_v54 = vpop.eup %3994  ;;  %v3010_v21 = vmul.f32 %v4006_v18, %v3993_v9 }
 0x8c4   :  { %v3012_v56 = vmul.f32 %v4007_v42, %v3995_v54 }
 0x8c5   :  { %v3997_v4 = vpop.eup %3996 }
 0x8c6   :  { %v3999_v33 = vpop.eup %3998  ;;  %v2998_v28 = vmul.f32 %v3997_v4, %v6325_v29 }
 0x8c7   :  { %v3000_v30 = vmul.f32 %v3999_v33, %v6326_v53 }
 0x8c8   :  { %v3014_v47 = vsel %vm3013_vm12, %v2998_v28, %v3010_v21 }
 0x8c9   :  { %v3015_v2 = vsel %vm3013_vm12, %v3000_v30, %v3012_v56  ;;  %3016 = vst [vmem:[#allocation10] sm:$0xff] %v3014_v47 }
 0x8ca   :  { %3017 = vst [vmem:[#allocation10 + $0x8] sm:$0xff] %v3015_v2 }
 0x8cb   :  { %4085 = shalt.err (!%p4082_p0)
}
 0x8cc   :  { %s4086_s12 = scalar_lea.hbm %s5885_s3, 256 }
 0x8cd   :  { %p4087_p1 = scmp.ne.s32.totalorder %s5885_s3, %s4086_s12  ;;  %p4090_p2 = scmp.lt.u32.totalorder %s4086_s12, %s5885_s3 }
 0x8cf   :  { %p4092_p3 = pnand %p4090_p2, %p4087_p1 }
 0x8d1   :  { %4095 = shalt.err (!%p4092_p3)
}
 0x8d2   :  { %3027 = dma.vmem_to_hbm [thread:$0]  %s3025_s8, 256, %s5885_s3, [#allocation6]  }
 0x8d3   :  { %4100 = dma.done.wait [#allocation6], 256  }
 0x8d4   :  { %4101 = vsyncadd [#allocation6], 4294967040 }
 0x8d5   :  { %3031 = vsyncpa [#allocation5], 1 }
 0x8d6   :  { %3032 = vsyncpa [#allocation8], 1 }
 0x8d7   :  { %3033 = vsyncpa [#allocation6], 1 }

</bundles_post_ra>
